<compile_context>
chip_gen: v6e
topology: v6e:2x2x1
jax: 0.10.0
libtpu: 0.0.40
codegen_flags: <defaults>
</compile_context>

<pallas_src>
import functools

import jax
import jax.numpy as jnp
from jax.experimental import pallas as pl
from jax.experimental.pallas import tpu as pltpu

LANES = 128


def _round_up(x, m):
    return ((x + m - 1) // m) * m


def _pick_tile_m(m, max_tile_m):
    """Row tile: multiple of 8, <= max_tile_m, and >=2 grid steps whenever M allows
    (keeps both v7x TensorCores busy on the 'parallel' axis at small batch)."""
    tm = _round_up(max(1, -(-m // 2)), 8)          # ceil(M/2) rounded up to 8
    return max(8, min(max_tile_m, tm))


def _vmem_limit(workset_bytes):
    """Explicit scoped-VMEM budget: double-buffered working set + headroom, floored at
    32 MiB and capped at 48 MiB (safe on v5e/v6e 128 MiB and v7x 64 MiB physical)."""
    return int(min(max(2 * workset_bytes + (8 << 20), 32 << 20), 48 << 20))


# ---------------------------------------------------------------------------
# Pallas kernels
# ---------------------------------------------------------------------------
def _conv_relu_pool_kernel(p_ref, w_ref, b_ref, o_ref):
    """Fused conv (im2col taps as ONE matmul) + 2x2 max-pool + bias + ReLU.

    p_ref: (4, tm, Kpad) bf16 -- patches for the 4 conv-output positions of each 2x2
                                 pool window (tap-major); rows = (n, h_pool, w_pool)
    w_ref: (Kpad, 128)  bf16  -- (kh, kw, cin)-ordered weights, Cout padded to 128 lanes
    b_ref: (1, 128)     f32
    o_ref: (tm, 128)    bf16  -- pooled activations, lane-dense
    """
    tm, kpad = p_ref.shape[1], p_ref.shape[2]
    # One 4x-taller matmul instead of four (single uninterrupted MXU stream).
    p = p_ref[...].reshape(4 * tm, kpad)
    acc = jnp.dot(p, w_ref[...], preferred_element_type=jnp.float32)
    acc = acc.reshape(4, tm, LANES)
    pooled = jnp.max(acc, axis=0)
    # maxpool(relu(conv + b)) == relu(max_taps(conv) + b): max first, bias+relu once.
    o_ref[...] = jnp.maximum(pooled + b_ref[...], 0.0).astype(o_ref.dtype)


def _matmul_bias_kernel(a_ref, w_ref, b_ref, o_ref, acc_ref, *, relu):
    """(tm, tk) @ (tk, 128) accumulated over the K grid axis; bias/ReLU only in finalize.
    First K step writes the partial directly (no zero-init + RMW round trip)."""
    partial = jnp.dot(a_ref[...], w_ref[...], preferred_element_type=jnp.float32)

    @pl.when(pl.program_id(1) == 0)
    def _():
        acc_ref[...] = partial

    @pl.when(pl.program_id(1) != 0)
    def _():
        acc_ref[...] += partial

    @pl.when(pl.program_id(1) == pl.num_programs(1) - 1)
    def _():
        out = acc_ref[...] + b_ref[...]
        if relu:
            out = jnp.maximum(out, 0.0)
        o_ref[...] = out.astype(o_ref.dtype)


# ---------------------------------------------------------------------------
# Wrappers (glue: padding, patch extraction, one-time weight re-layout)
# ---------------------------------------------------------------------------
def _pooled_patches(xp, k, kpad):
    """Tap-stacked im2col of an already spatially-padded bf16 NHWC batch.

    Returns (4, N*Hop*Wop, kpad): tap t=(ph,pw) holds the patch feeding conv-output
    position (2*hp+ph, 2*wp+pw), i.e. the 4 members of each 2x2 pool window.
    Patch columns are (kh, kw, cin)-ordered and built ALREADY zero-padded to kpad,
    so no separate full-tensor jnp.pad copy is needed afterwards.
    """
    N, Hp, Wp, Cin = xp.shape
    Ho, Wo = Hp - k + 1, Wp - k + 1
    Hop, Wop = Ho // 2, Wo // 2
    K = k * k * Cin
    assert K <= kpad
    taps = []
    for ph in (0, 1):
        for pw in (0, 1):
            cols = [
                xp[:, ph + kh: ph + kh + 2 * Hop: 2,
                      pw + kw: pw + kw + 2 * Wop: 2, :]
                for kh in range(k) for kw in range(k)
            ]
            if kpad > K:
                cols.append(jnp.zeros((N, Hop, Wop, kpad - K), xp.dtype))
            t = jnp.concatenate(cols, axis=-1)            # (N, Hop, Wop, kpad)
            taps.append(t.reshape(N * Hop * Wop, kpad))
    return jnp.stack(taps, axis=0), (Hop, Wop)


def conv_relu_pool(x, w_mat, b_mat, *, k=5, padding=1, max_tile_m=1024):
    """x: (N,H,W,Cin) bf16; w_mat: (Kpad,128) bf16; b_mat: (1,128) f32.
    Returns pooled activations (N, Hop, Wop, 128) bf16 (valid channels in low lanes)."""
    N = x.shape[0]
    Kpad = w_mat.shape[0]
    xp = jnp.pad(x, ((0, 0), (padding, padding), (padding, padding), (0, 0)))
    # TODO(synk): patch extraction (strided slices + concat) stays in XLA glue; a fully
    # in-kernel im2col needs strided VMEM gathers we chose not to risk in lowering.
    patches, (Hop, Wop) = _pooled_patches(xp, k, Kpad)    # (4, M, Kpad) bf16, K-padded
    M = patches.shape[1]
    tm = _pick_tile_m(M, max_tile_m)
    Mp = _round_up(M, tm)
    if Mp != M:
        patches = jnp.pad(patches, ((0, 0), (0, Mp - M), (0, 0)))

    workset = (2 * 4 * tm * Kpad * 2      # patches (double-buffered, bf16)
               + 2 * Kpad * LANES * 2     # weights
               + 2 * LANES * 4            # bias
               + 2 * tm * LANES * 2)      # bf16 output

    out = pl.pallas_call(
        _conv_relu_pool_kernel,
        out_shape=jax.ShapeDtypeStruct((Mp, LANES), jnp.bfloat16),
        grid_spec=pltpu.PrefetchScalarGridSpec(
            num_scalar_prefetch=0,
            grid=(Mp // tm,),
            in_specs=[
                pl.BlockSpec((4, tm, Kpad), lambda i: (0, i, 0)),
                pl.BlockSpec((Kpad, LANES), lambda i: (0, 0)),
                pl.BlockSpec((1, LANES), lambda i: (0, 0)),
            ],
            out_specs=pl.BlockSpec((tm, LANES), lambda i: (i, 0)),
        ),
        compiler_params=pltpu.CompilerParams(
            dimension_semantics=("parallel",),
            vmem_limit_bytes=_vmem_limit(workset)),
    )(patches, w_mat, b_mat)
    return out[:M].reshape(N, Hop, Wop, LANES)


def linear(a, w_mat, b_mat, *, tile_k, relu=False, max_tile_m=512):
    """a: (M,K) bf16; w_mat: (K,128) bf16; b_mat: (1,128) f32 -> (M,128) f32."""
    M, K = a.shape
    assert K % tile_k == 0 and tile_k % LANES == 0
    tm = _pick_tile_m(M, max_tile_m)
    Mp = _round_up(M, tm)
    if Mp != M:
        a = jnp.pad(a, ((0, Mp - M), (0, 0)))

    workset = (2 * tm * tile_k * 2        # activations (double-buffered, bf16)
               + 2 * tile_k * LANES * 2   # weight block
               + 2 * LANES * 4            # bias
               + 2 * tm * LANES * 4       # f32 output
               + tm * LANES * 4)          # f32 accumulator scratch

    out = pl.pallas_call(
        functools.partial(_matmul_bias_kernel, relu=relu),
        out_shape=jax.ShapeDtypeStruct((Mp, LANES), jnp.float32),
        grid_spec=pltpu.PrefetchScalarGridSpec(
            num_scalar_prefetch=0,
            grid=(Mp // tm, K // tile_k),
            in_specs=[
                pl.BlockSpec((tm, tile_k), lambda i, kk: (i, kk)),
                pl.BlockSpec((tile_k, LANES), lambda i, kk: (kk, 0)),
                pl.BlockSpec((1, LANES), lambda i, kk: (0, 0)),
            ],
            out_specs=pl.BlockSpec((tm, LANES), lambda i, kk: (i, 0)),
            scratch_shapes=[pltpu.VMEM((tm, LANES), jnp.float32)],
        ),
        compiler_params=pltpu.CompilerParams(
            dimension_semantics=("parallel", "arbitrary"),
            vmem_limit_bytes=_vmem_limit(workset)),
    )(a, w_mat, b_mat)
    return out[:M]


# ---------------------------------------------------------------------------
# Model
# ---------------------------------------------------------------------------
def init_params(key, output_size):
    k1, k2, k3, k4, k5, k6 = jax.random.split(key, 6)
    return {
        "conv1_w": jax.random.normal(k1, (16, 1, 5, 5), jnp.float32) * 0.1,
        "conv1_b": jax.random.normal(k2, (16,), jnp.float32) * 0.1,
        "conv2_w": jax.random.normal(k3, (32, 16, 5, 5), jnp.float32) * 0.05,
        "conv2_b": jax.random.normal(k4, (32,), jnp.float32) * 0.05,
        "fc_w": jax.random.normal(k5, (output_size, 64 * 50), jnp.float32) * 0.02,
        "fc_b": jax.random.normal(k6, (output_size,), jnp.float32) * 0.02,
    }


def prepare_params(params):
    """One-time weight re-layout (outside the jitted forward):
       * conv weights -> (round_up(kh*kw*cin,16), 128) bf16, (kh,kw,cin)-row order,
         Cout zero-padded to 128 lanes; biases -> (1,128) f32.
       * fc weight -> the REAL (3200, 128) bf16 matrix permuted to NHWC-flatten order
         (h, w, c), output lanes padded to 128 (no 32->128 channel-pad rows folded in);
         fc bias -> (1,128) f32.
    """
    def conv_mat(w, b):
        Cout, Cin, KH, KW = w.shape
        K = KH * KW * Cin
        Kpad = _round_up(K, 16)
        wm = jnp.transpose(w, (2, 3, 1, 0)).reshape(K, Cout)
        wm = jnp.pad(wm, ((0, Kpad - K), (0, LANES - Cout))).astype(jnp.bfloat16)
        bm = jnp.pad(b, (0, LANES - Cout)).reshape(1, LANES).astype(jnp.float32)
        return wm, bm

    w1, b1 = conv_mat(params["conv1_w"], params["conv1_b"])
    w2, b2 = conv_mat(params["conv2_w"], params["conv2_b"])

    out_size, in_feat = params["fc_w"].shape
    assert in_feat == 32 * 10 * 10 and out_size <= LANES
    wf = params["fc_w"].reshape(out_size, 32, 10, 10)        # torch (o, c, h, w)
    wf = jnp.transpose(wf, (2, 3, 1, 0))                     # (h, w, c, o): NHWC flatten order
    wf = jnp.pad(wf, ((0, 0), (0, 0), (0, 0), (0, LANES - out_size)))
    wf = wf.reshape(32 * 10 * 10, LANES).astype(jnp.bfloat16)    # (3200, 128), real K
    bf = jnp.pad(params["fc_b"], (0, LANES - out_size)).reshape(1, LANES).astype(jnp.float32)
    return {"w1": w1, "b1": b1, "w2": w2, "b2": b2, "wf": wf, "bf": bf}


def simple_cnn_forward(prepped, x_nchw, *, output_size):
    # x_nchw: (N, 1, H, W) just like PyTorch; kernels run NHWC with 128 channel lanes.
    N, Cin, H, W = x_nchw.shape
    assert Cin == 1
    # Cin == 1 -> NCHW->NHWC is layout-wise a no-op: reshape instead of transpose,
    # and cast to bf16 BEFORE any patch extraction / padding.
    x = x_nchw.reshape(N, H, W, 1).astype(jnp.bfloat16)
    # layer1: Conv2d(1, 16, 5, padding=1) + ReLU + MaxPool2d(2, 2)   (single fused kernel)
    y = conv_relu_pool(x, prepped["w1"], prepped["b1"])               # (N, 22, 22, 128) bf16
    # layer2: Conv2d(16, 32, 5, padding=1) + ReLU + MaxPool2d(2, 2)  (single fused kernel)
    y = conv_relu_pool(y[..., :16], prepped["w2"], prepped["b2"])     # (N, 10, 10, 128) bf16
    # fc: Linear(64*50, output_size). Slice to the 32 real channels and flatten NHWC;
    # the fc weight is pre-permuted to the same (h, w, c) order, so no transpose here.
    Hf, Wf = y.shape[1], y.shape[2]
    flat = y[..., :32].reshape(N, Hf * Wf * 32)                       # (N, 3200) bf16
    out = linear(flat, prepped["wf"], prepped["bf"], tile_k=640)
    return out[:, :output_size]


# ---------------------------------------------------------------------------
# Pure-JAX f32 reference (same semantics as the PyTorch module)
# ---------------------------------------------------------------------------
def _reference_forward(params, x_nchw):
    x = jnp.transpose(x_nchw, (0, 2, 3, 1)).astype(jnp.float32)

    def conv_relu(x, w, b, padding):
        Cout, Cin, KH, KW = w.shape
        xp = jnp.pad(x, ((0, 0), (padding, padding), (padding, padding), (0, 0)))
        N, Hp, Wp, _ = xp.shape
        Ho, Wo = Hp - KH + 1, Wp - KW + 1
        cols = [xp[:, kh:kh + Ho, kw:kw + Wo, :] for kh in range(KH) for kw in range(KW)]
        patches = jnp.concatenate(cols, axis=-1).reshape(N * Ho * Wo, KH * KW * Cin)
        wm = jnp.transpose(w, (2, 3, 1, 0)).reshape(KH * KW * Cin, Cout)
        return jnp.maximum(patches @ wm + b, 0.0).reshape(N, Ho, Wo, Cout)

    def pool(y):
        return jnp.maximum(jnp.maximum(y[:, 0::2, 0::2], y[:, 0::2, 1::2]),
                           jnp.maximum(y[:, 1::2, 0::2], y[:, 1::2, 1::2]))

    y = pool(conv_relu(x, params["conv1_w"], params["conv1_b"], 1))
    y = pool(conv_relu(y, params["conv2_w"], params["conv2_b"], 1))
    flat = jnp.transpose(y, (0, 3, 1, 2)).reshape(y.shape[0], -1)
    return flat @ params["fc_w"].T + params["fc_b"]


if __name__ == "__main__":
    output_size = 10
    key = jax.random.PRNGKey(0)
    pkey, xkey = jax.random.split(key)
    params = init_params(pkey, output_size)
    prepped = prepare_params(params)     # one-time weight re-layout, not per forward pass

    # 46x46 single-channel input: 46 -> conv(p=1) 44 -> pool 22 -> conv(p=1) 20 -> pool 10,
    # so the flatten is 32*10*10 = 3200 = 64*50, matching the module's fc layer.
    x = jax.random.normal(xkey, (2, 1, 46, 46), jnp.float32)

    fwd = jax.jit(functools.partial(simple_cnn_forward, output_size=output_size))
    out = fwd(prepped, x)
    jax.block_until_ready(out)
    assert out.shape == (2, output_size)

    ref = _reference_forward(params, x)
    assert jnp.allclose(out, ref, rtol=1e-1, atol=1e-1), (
        f"max abs err {jnp.max(jnp.abs(out - ref))}")
    print("KERNEL_OK")
</pallas_src>

<mosaic_0001>
module attributes {stable_mosaic.version = 11 : i64} {
  func.func @_conv_relu_pool_kernel(%arg0: i32, %arg1: memref<4x488x32xbf16, #tpu.memory_space<vmem>>, %arg2: memref<32x128xbf16, #tpu.memory_space<vmem>>, %arg3: memref<1x128xf32, #tpu.memory_space<vmem>>, %arg4: memref<488x128xbf16, #tpu.memory_space<vmem>>) attributes {dimension_semantics = [#tpu.dimension_semantics<parallel>], iteration_bounds = array<i64: 2>, scalar_prefetch = 0 : i64, scratch_operands = 0 : i64, tpu.core_type = #tpu.core_type<tc>, window_params = [{transform_indices = @transform_0, window_bounds = array<i64: 4, 488, 32>}, {pipeline_mode = #tpu.pipeline_mode<synchronous>, transform_indices = @transform_1, window_bounds = array<i64: 32, 128>}, {pipeline_mode = #tpu.pipeline_mode<synchronous>, transform_indices = @transform_2, window_bounds = array<i64: 1, 128>}, {transform_indices = @transform_3, window_bounds = array<i64: 488, 128>}]} {
    %c0 = arith.constant 0 : index
    %c0_0 = arith.constant 0 : index
    %c0_1 = arith.constant 0 : index
    %0 = vector.load %arg1[%c0, %c0_0, %c0_1] : memref<4x488x32xbf16, #tpu.memory_space<vmem>>, vector<4x488x32xbf16>
    %1 = vector.shape_cast %0 : vector<4x488x32xbf16> to vector<1952x32xbf16>
    %c0_2 = arith.constant 0 : index
    %c0_3 = arith.constant 0 : index
    %2 = vector.load %arg2[%c0_2, %c0_3] : memref<32x128xbf16, #tpu.memory_space<vmem>>, vector<32x128xbf16>
    %cst = arith.constant dense<0.000000e+00> : vector<1952x128xf32>
    %3 = tpu.matmul %1, %2, %cst {dimension_numbers = #tpu.dot_dimension_numbers<[1], [0], [0], [1], [0, 0, 1, 1], [], []>} : vector<1952x32xbf16>, vector<32x128xbf16>, vector<1952x128xf32> -> vector<1952x128xf32>
    %4 = vector.shape_cast %3 : vector<1952x128xf32> to vector<4x488x128xf32>
    %cst_4 = arith.constant dense<0xFF800000> : vector<488x128xf32>
    %5 = vector.multi_reduction <maximumf>, %4, %cst_4 [0] : vector<4x488x128xf32> to vector<488x128xf32>
    %c0_5 = arith.constant 0 : index
    %c0_6 = arith.constant 0 : index
    %6 = vector.load %arg3[%c0_5, %c0_6] : memref<1x128xf32, #tpu.memory_space<vmem>>, vector<1x128xf32>
    %7 = vector.broadcast %6 : vector<1x128xf32> to vector<488x128xf32>
    %8 = arith.addf %5, %7 : vector<488x128xf32>
    %cst_7 = arith.constant 0.000000e+00 : f32
    %9 = vector.broadcast %cst_7 : f32 to vector<488x128xf32>
    %10 = arith.maximumf %8, %9 : vector<488x128xf32>
    %11 = arith.truncf %10 : vector<488x128xf32> to vector<488x128xbf16>
    %c0_8 = arith.constant 0 : index
    %c0_9 = arith.constant 0 : index
    %12 = vector.load %arg4[%c0_8, %c0_9] : memref<488x128xbf16, #tpu.memory_space<vmem>>, vector<488x128xbf16>
    tpu.vector_store %arg4[%c0_8, %c0_9], %11 {strides = array<i32>} : memref<488x128xbf16, #tpu.memory_space<vmem>>, vector<488x128xbf16>,
    return
  }
  func.func @transform_0(%arg0: i32) -> (i32, i32, i32) {
    %c0_i32 = arith.constant 0 : i32
    %c0_i32_0 = arith.constant 0 : i32
    %c0_i32_1 = arith.constant 0 : i32
    return %c0_i32, %arg0, %c0_i32_0 : i32, i32, i32
  }
  func.func @transform_1(%arg0: i32) -> (i32, i32) {
    %c0_i32 = arith.constant 0 : i32
    %c0_i32_0 = arith.constant 0 : i32
    %c0_i32_1 = arith.constant 0 : i32
    return %c0_i32, %c0_i32_0 : i32, i32
  }
  func.func @transform_2(%arg0: i32) -> (i32, i32) {
    %c0_i32 = arith.constant 0 : i32
    %c0_i32_0 = arith.constant 0 : i32
    %c0_i32_1 = arith.constant 0 : i32
    return %c0_i32, %c0_i32_0 : i32, i32
  }
  func.func @transform_3(%arg0: i32) -> (i32, i32) {
    %c0_i32 = arith.constant 0 : i32
    %c0_i32_0 = arith.constant 0 : i32
    return %arg0, %c0_i32 : i32, i32
  }
}

module attributes {stable_mosaic.version = 11 : i64} {
  func.func @_conv_relu_pool_kernel(%arg0: i32, %arg1: memref<4x104x400xbf16, #tpu.memory_space<vmem>>, %arg2: memref<400x128xbf16, #tpu.memory_space<vmem>>, %arg3: memref<1x128xf32, #tpu.memory_space<vmem>>, %arg4: memref<104x128xbf16, #tpu.memory_space<vmem>>) attributes {dimension_semantics = [#tpu.dimension_semantics<parallel>], iteration_bounds = array<i64: 2>, scalar_prefetch = 0 : i64, scratch_operands = 0 : i64, tpu.core_type = #tpu.core_type<tc>, window_params = [{transform_indices = @transform_0, window_bounds = array<i64: 4, 104, 400>}, {pipeline_mode = #tpu.pipeline_mode<synchronous>, transform_indices = @transform_1, window_bounds = array<i64: 400, 128>}, {pipeline_mode = #tpu.pipeline_mode<synchronous>, transform_indices = @transform_2, window_bounds = array<i64: 1, 128>}, {transform_indices = @transform_3, window_bounds = array<i64: 104, 128>}]} {
    %c0 = arith.constant 0 : index
    %c0_0 = arith.constant 0 : index
    %c0_1 = arith.constant 0 : index
    %0 = vector.load %arg1[%c0, %c0_0, %c0_1] : memref<4x104x400xbf16, #tpu.memory_space<vmem>>, vector<4x104x400xbf16>
    %1 = vector.shape_cast %0 : vector<4x104x400xbf16> to vector<416x400xbf16>
    %c0_2 = arith.constant 0 : index
    %c0_3 = arith.constant 0 : index
    %2 = vector.load %arg2[%c0_2, %c0_3] : memref<400x128xbf16, #tpu.memory_space<vmem>>, vector<400x128xbf16>
    %cst = arith.constant dense<0.000000e+00> : vector<416x128xf32>
    %3 = tpu.matmul %1, %2, %cst {dimension_numbers = #tpu.dot_dimension_numbers<[1], [0], [0], [1], [0, 0, 1, 1], [], []>} : vector<416x400xbf16>, vector<400x128xbf16>, vector<416x128xf32> -> vector<416x128xf32>
    %4 = vector.shape_cast %3 : vector<416x128xf32> to vector<4x104x128xf32>
    %cst_4 = arith.constant dense<0xFF800000> : vector<104x128xf32>
    %5 = vector.multi_reduction <maximumf>, %4, %cst_4 [0] : vector<4x104x128xf32> to vector<104x128xf32>
    %c0_5 = arith.constant 0 : index
    %c0_6 = arith.constant 0 : index
    %6 = vector.load %arg3[%c0_5, %c0_6] : memref<1x128xf32, #tpu.memory_space<vmem>>, vector<1x128xf32>
    %7 = vector.broadcast %6 : vector<1x128xf32> to vector<104x128xf32>
    %8 = arith.addf %5, %7 : vector<104x128xf32>
    %cst_7 = arith.constant 0.000000e+00 : f32
    %9 = vector.broadcast %cst_7 : f32 to vector<104x128xf32>
    %10 = arith.maximumf %8, %9 : vector<104x128xf32>
    %11 = arith.truncf %10 : vector<104x128xf32> to vector<104x128xbf16>
    %c0_8 = arith.constant 0 : index
    %c0_9 = arith.constant 0 : index
    %12 = vector.load %arg4[%c0_8, %c0_9] : memref<104x128xbf16, #tpu.memory_space<vmem>>, vector<104x128xbf16>
    tpu.vector_store %arg4[%c0_8, %c0_9], %11 {strides = array<i32>} : memref<104x128xbf16, #tpu.memory_space<vmem>>, vector<104x128xbf16>,
    return
  }
  func.func @transform_0(%arg0: i32) -> (i32, i32, i32) {
    %c0_i32 = arith.constant 0 : i32
    %c0_i32_0 = arith.constant 0 : i32
    %c0_i32_1 = arith.constant 0 : i32
    return %c0_i32, %arg0, %c0_i32_0 : i32, i32, i32
  }
  func.func @transform_1(%arg0: i32) -> (i32, i32) {
    %c0_i32 = arith.constant 0 : i32
    %c0_i32_0 = arith.constant 0 : i32
    %c0_i32_1 = arith.constant 0 : i32
    return %c0_i32, %c0_i32_0 : i32, i32
  }
  func.func @transform_2(%arg0: i32) -> (i32, i32) {
    %c0_i32 = arith.constant 0 : i32
    %c0_i32_0 = arith.constant 0 : i32
    %c0_i32_1 = arith.constant 0 : i32
    return %c0_i32, %c0_i32_0 : i32, i32
  }
  func.func @transform_3(%arg0: i32) -> (i32, i32) {
    %c0_i32 = arith.constant 0 : i32
    %c0_i32_0 = arith.constant 0 : i32
    return %arg0, %c0_i32 : i32, i32
  }
}

module attributes {stable_mosaic.version = 11 : i64} {
  func.func @_matmul_bias_kernel(%arg0: i32, %arg1: i32, %arg2: memref<8x640xbf16, #tpu.memory_space<vmem>>, %arg3: memref<640x128xbf16, #tpu.memory_space<vmem>>, %arg4: memref<1x128xf32, #tpu.memory_space<vmem>>, %arg5: memref<8x128xf32, #tpu.memory_space<vmem>>, %arg6: memref<8x128xf32, #tpu.memory_space<vmem>>) attributes {dimension_semantics = [#tpu.dimension_semantics<parallel>, #tpu.dimension_semantics<arbitrary>], iteration_bounds = array<i64: 1, 5>, scalar_prefetch = 0 : i64, scratch_operands = 1 : i64, tpu.core_type = #tpu.core_type<tc>, window_params = [{transform_indices = @transform_0, window_bounds = array<i64: 8, 640>}, {transform_indices = @transform_1, window_bounds = array<i64: 640, 128>}, {pipeline_mode = #tpu.pipeline_mode<synchronous>, transform_indices = @transform_2, window_bounds = array<i64: 1, 128>}, {transform_indices = @transform_3, window_bounds = array<i64: 8, 128>}]} {
    %c0 = arith.constant 0 : index
    %c0_0 = arith.constant 0 : index
    %0 = vector.load %arg2[%c0, %c0_0] : memref<8x640xbf16, #tpu.memory_space<vmem>>, vector<8x640xbf16>
    %c0_1 = arith.constant 0 : index
    %c0_2 = arith.constant 0 : index
    %1 = vector.load %arg3[%c0_1, %c0_2] : memref<640x128xbf16, #tpu.memory_space<vmem>>, vector<640x128xbf16>
    %cst = arith.constant dense<0.000000e+00> : vector<8x128xf32>
    %2 = tpu.matmul %0, %1, %cst {dimension_numbers = #tpu.dot_dimension_numbers<[1], [0], [0], [1], [0, 0, 1, 1], [], []>} : vector<8x640xbf16>, vector<640x128xbf16>, vector<8x128xf32> -> vector<8x128xf32>
    %c0_i32 = arith.constant 0 : i32
    %3 = arith.cmpi eq, %arg1, %c0_i32 : i32
    %4 = arith.extui %3 : i1 to i32
    %c0_i32_3 = arith.constant 0 : i32
    %5 = arith.cmpi ne, %4, %c0_i32_3 : i32
    scf.if %5 {
      %c0_7 = arith.constant 0 : index
      %c0_8 = arith.constant 0 : index
      %12 = vector.load %arg6[%c0_7, %c0_8] : memref<8x128xf32, #tpu.memory_space<vmem>>, vector<8x128xf32>
      tpu.vector_store %arg6[%c0_7, %c0_8], %2 {strides = array<i32>} : memref<8x128xf32, #tpu.memory_space<vmem>>, vector<8x128xf32>,
    } else {
    }
    %c0_i32_4 = arith.constant 0 : i32
    %6 = arith.cmpi ne, %arg1, %c0_i32_4 : i32
    %7 = arith.extui %6 : i1 to i32
    %c0_i32_5 = arith.constant 0 : i32
    %8 = arith.cmpi ne, %7, %c0_i32_5 : i32
    scf.if %8 {
      %c0_7 = arith.constant 0 : index
      %c0_8 = arith.constant 0 : index
      %12 = vector.load %arg6[%c0_7, %c0_8] : memref<8x128xf32, #tpu.memory_space<vmem>>, vector<8x128xf32>
      %13 = arith.addf %12, %2 : vector<8x128xf32>
      %c0_9 = arith.constant 0 : index
      %c0_10 = arith.constant 0 : index
      %14 = vector.load %arg6[%c0_9, %c0_10] : memref<8x128xf32, #tpu.memory_space<vmem>>, vector<8x128xf32>
      tpu.vector_store %arg6[%c0_9, %c0_10], %13 {strides = array<i32>} : memref<8x128xf32, #tpu.memory_space<vmem>>, vector<8x128xf32>,
    } else {
    }
    %c4_i32 = arith.constant 4 : i32
    %9 = arith.cmpi eq, %arg1, %c4_i32 : i32
    %10 = arith.extui %9 : i1 to i32
    %c0_i32_6 = arith.constant 0 : i32
    %11 = arith.cmpi ne, %10, %c0_i32_6 : i32
    scf.if %11 {
      %c0_7 = arith.constant 0 : index
      %c0_8 = arith.constant 0 : index
      %12 = vector.load %arg6[%c0_7, %c0_8] : memref<8x128xf32, #tpu.memory_space<vmem>>, vector<8x128xf32>
      %c0_9 = arith.constant 0 : index
      %c0_10 = arith.constant 0 : index
      %13 = vector.load %arg4[%c0_9, %c0_10] : memref<1x128xf32, #tpu.memory_space<vmem>>, vector<1x128xf32>
      %14 = vector.broadcast %13 : vector<1x128xf32> to vector<8x128xf32>
      %15 = arith.addf %12, %14 : vector<8x128xf32>
      %c0_11 = arith.constant 0 : index
      %c0_12 = arith.constant 0 : index
      %16 = vector.load %arg5[%c0_11, %c0_12] : memref<8x128xf32, #tpu.memory_space<vmem>>, vector<8x128xf32>
      tpu.vector_store %arg5[%c0_11, %c0_12], %15 {strides = array<i32>} : memref<8x128xf32, #tpu.memory_space<vmem>>, vector<8x128xf32>,
    } else {
    }
    return
  }
  func.func @transform_0(%arg0: i32, %arg1: i32) -> (i32, i32) {
    %c0_i32 = arith.constant 0 : i32
    return %arg0, %arg1 : i32, i32
  }
  func.func @transform_1(%arg0: i32, %arg1: i32) -> (i32, i32) {
    %c0_i32 = arith.constant 0 : i32
    %c0_i32_0 = arith.constant 0 : i32
    return %arg1, %c0_i32 : i32, i32
  }
  func.func @transform_2(%arg0: i32, %arg1: i32) -> (i32, i32) {
    %c0_i32 = arith.constant 0 : i32
    %c0_i32_0 = arith.constant 0 : i32
    %c0_i32_1 = arith.constant 0 : i32
    return %c0_i32, %c0_i32_0 : i32, i32
  }
  func.func @transform_3(%arg0: i32, %arg1: i32) -> (i32, i32) {
    %c0_i32 = arith.constant 0 : i32
    %c0_i32_0 = arith.constant 0 : i32
    return %arg0, %c0_i32 : i32, i32
  }
}

</mosaic_0001>

<bundles_post_ra>
// kernel: simple_cnn_forward.3
= control target key start
LH: loop header
LB: loop body
LE: loop exit
PB: predicated region body
PF: predicated region fallthrough
CT: control target
= control target key end

     0   :  { %s5244_s12 = smov 0   ;;  %s5246_s13 = smov 0   ;;  %s6349_s0 = inlined_call_operand.vmem [shape: bf16[4,976,32], index: 0, kind: input, shape index: {}]   ;;  %s6350_s1 = inlined_call_operand.vmem [shape: bf16[32,128], index: 1, kind: input, shape index: {}]   ;;  %s6351_s2 = inlined_call_operand.vmem [shape: f32[1,128], index: 2, kind: input, shape index: {}]   ;;  %s6352_s3 = inlined_call_operand.vmem [shape: bf16[976,128], index: 3, kind: output, shape index: {}]  }
   0x1   :  { %s5248_s14 = smov 0  }
   0x2 LB: > { %s4116_s15 = sadd.s32 4294967295, %s5222_s14   ;;  %s5261_s16 = sadd.s32 1, %s5222_s14   ;;  %s5222_s14 = sphi %s5248_s14, %s6509_s14   ;;  %s5218_s13 = sphi %s5246_s13, %s6508_s13   ;;  %s5214_s12 = sphi %s5244_s12, %s6507_s12  }
   0x3   : > { %s17_s17 = ssub.s32 %s5222_s14, %s5261_s16  ;;  %s20_s18 = sadd.s32 1, %s5218_s13 }
   0x4   : > { %p18_p0 = scmp.eq.s32.totalorder %s17_s17, 0  ;;  %p27_p1 = scmp.ne.s32.totalorder %s5218_s13, %s5214_s12 }
   0x5   : > { %p28_p2 = scmp.eq.s32.totalorder %s5222_s14, 0  ;;  %p4119_p4 = scmp.ge.s32.totalorder %s5222_s14, 2 }
   0x6   : > { %s5270_s19 = scalar_select %p18_p0, %s5218_s13, %s20_s18  }
   0x7   : > { %p29_p3 = por %p28_p2, %p27_p1  ;;  %127 = sbr.rel (%p4119_p4) target bundleno = 79 (0x4f), region = 24 }
   0xc   : > { %130 = sbr.rel (!%p29_p3) target bundleno = 79 (0x4f), region = 28  ;;  %s132_s20 = sand.u32 (%p29_p3), 1, %s5218_s13  }
   0xd   : > { %s4433_s21 = smul.u32 (%p29_p3), 244, %s5222_s14 }
   0xe   : > { %s5050_s22 = smul.u32 (%p29_p3), 976, %s132_s20 }
   0xf   : > { %s5278_s25 = scalar_lea.vmem (%p29_p3), %s6349_s0, %s4433_s21 }
  0x10   : > { %v154_v0 = vld [vmem:[%s5278_s25] sm:$0xff] (%p29_p3)   ;;  %v158_v1 = vld [vmem:[%s5278_s25 + $0x8] sm:$0xff] (%p29_p3)   ;;  %v162_v2 = vld [vmem:[%s5278_s25 + $0x10] sm:$0xff] (%p29_p3)   ;;  %s5283_s26 = scalar_lea.vmem (%p29_p3), [#allocation2], %s5050_s22 }
  0x11   : > { %155 = vst [vmem:[%s5283_s26] sm:$0xff] %v154_v0   ;;  %159 = vst [vmem:[%s5283_s26 + $0x8] sm:$0xff] %v158_v1   ;;  %v166_v3 = vld [vmem:[%s5278_s25 + $0x18] sm:$0xff]   ;;  %v170_v4 = vld [vmem:[%s5278_s25 + $0x20] sm:$0xff]  }
  0x12   : > { %163 = vst [vmem:[%s5283_s26 + $0x10] sm:$0xff] %v162_v2   ;;  %v174_v5 = vld [vmem:[%s5278_s25 + $0x28] sm:$0xff]   ;;  %167 = vst [vmem:[%s5283_s26 + $0x18] sm:$0xff] %v166_v3   ;;  %v178_v6 = vld [vmem:[%s5278_s25 + $0x30] sm:$0xff]  }
  0x13   : > { %171 = vst [vmem:[%s5283_s26 + $0x20] sm:$0xff] %v170_v4   ;;  %175 = vst [vmem:[%s5283_s26 + $0x28] sm:$0xff] %v174_v5   ;;  %v182_v7 = vld [vmem:[%s5278_s25 + $0x38] sm:$0xff]   ;;  %v186_v8 = vld [vmem:[%s5278_s25 + $0x40] sm:$0xff]  }
  0x14   : > { %179 = vst [vmem:[%s5283_s26 + $0x30] sm:$0xff] %v178_v6   ;;  %183 = vst [vmem:[%s5283_s26 + $0x38] sm:$0xff] %v182_v7   ;;  %v190_v9 = vld [vmem:[%s5278_s25 + $0x48] sm:$0xff]   ;;  %v194_v10 = vld [vmem:[%s5278_s25 + $0x50] sm:$0xff]  }
  0x15   : > { %187 = vst [vmem:[%s5283_s26 + $0x40] sm:$0xff] %v186_v8   ;;  %v198_v11 = vld [vmem:[%s5278_s25 + $0x58] sm:$0xff]   ;;  %191 = vst [vmem:[%s5283_s26 + $0x48] sm:$0xff] %v190_v9   ;;  %v202_v12 = vld [vmem:[%s5278_s25 + $0x60] sm:$0xff]  }
  0x16   : > { %195 = vst [vmem:[%s5283_s26 + $0x50] sm:$0xff] %v194_v10   ;;  %199 = vst [vmem:[%s5283_s26 + $0x58] sm:$0xff] %v198_v11   ;;  %v206_v13 = vld [vmem:[%s5278_s25 + $0x68] sm:$0xff]   ;;  %v210_v14 = vld [vmem:[%s5278_s25 + $0x70] sm:$0xff]  }
  0x17   : > { %203 = vst [vmem:[%s5283_s26 + $0x60] sm:$0xff] %v202_v12   ;;  %207 = vst [vmem:[%s5283_s26 + $0x68] sm:$0xff] %v206_v13   ;;  %v214_v15 = vld [vmem:[%s5278_s25 + $0x78] sm:$0xff]   ;;  %v218_v16 = vld [vmem:[%s5278_s25 + $0x80] sm:$0xff]  }
  0x18   : > { %211 = vst [vmem:[%s5283_s26 + $0x70] sm:$0xff] %v210_v14   ;;  %v222_v17 = vld [vmem:[%s5278_s25 + $0x88] sm:$0xff]   ;;  %215 = vst [vmem:[%s5283_s26 + $0x78] sm:$0xff] %v214_v15   ;;  %v226_v18 = vld [vmem:[%s5278_s25 + $0x90] sm:$0xff]  }
  0x19   : > { %219 = vst [vmem:[%s5283_s26 + $0x80] sm:$0xff] %v218_v16   ;;  %223 = vst [vmem:[%s5283_s26 + $0x88] sm:$0xff] %v222_v17   ;;  %v230_v19 = vld [vmem:[%s5278_s25 + $0x98] sm:$0xff]   ;;  %v234_v20 = vld [vmem:[%s5278_s25 + $0xa0] sm:$0xff]  }
  0x1a   : > { %227 = vst [vmem:[%s5283_s26 + $0x90] sm:$0xff] %v226_v18   ;;  %231 = vst [vmem:[%s5283_s26 + $0x98] sm:$0xff] %v230_v19   ;;  %v238_v21 = vld [vmem:[%s5278_s25 + $0xa8] sm:$0xff]   ;;  %v242_v22 = vld [vmem:[%s5278_s25 + $0xb0] sm:$0xff]  }
  0x1b   : > { %235 = vst [vmem:[%s5283_s26 + $0xa0] sm:$0xff] %v234_v20   ;;  %v246_v23 = vld [vmem:[%s5278_s25 + $0xb8] sm:$0xff]   ;;  %239 = vst [vmem:[%s5283_s26 + $0xa8] sm:$0xff] %v238_v21   ;;  %v250_v24 = vld [vmem:[%s5278_s25 + $0xc0] sm:$0xff]  }
  0x1c   : > { %243 = vst [vmem:[%s5283_s26 + $0xb0] sm:$0xff] %v242_v22   ;;  %247 = vst [vmem:[%s5283_s26 + $0xb8] sm:$0xff] %v246_v23   ;;  %v254_v25 = vld [vmem:[%s5278_s25 + $0xc8] sm:$0xff]   ;;  %v258_v26 = vld [vmem:[%s5278_s25 + $0xd0] sm:$0xff]  }
  0x1d   : > { %251 = vst [vmem:[%s5283_s26 + $0xc0] sm:$0xff] %v250_v24   ;;  %255 = vst [vmem:[%s5283_s26 + $0xc8] sm:$0xff] %v254_v25   ;;  %v262_v27 = vld [vmem:[%s5278_s25 + $0xd8] sm:$0xff]   ;;  %v266_v28 = vld [vmem:[%s5278_s25 + $0xe0] sm:$0xff]  }
  0x1e   : > { %259 = vst [vmem:[%s5283_s26 + $0xd0] sm:$0xff] %v258_v26   ;;  %v270_v29 = vld [vmem:[%s5278_s25 + $0xe8] sm:$0xff]   ;;  %263 = vst [vmem:[%s5283_s26 + $0xd8] sm:$0xff] %v262_v27   ;;  %v274_v30 = vld [vmem:[%s5278_s25 + $0xf0] sm:$0xf] }
  0x1f   : > { %267 = vst [vmem:[%s5283_s26 + $0xe0] sm:$0xff] %v266_v28   ;;  %271 = vst [vmem:[%s5283_s26 + $0xe8] sm:$0xff] %v270_v29   ;;  %v276_v31 = vld [vmem:[%s5278_s25 + $0x1e8] sm:$0xff]   ;;  %v280_v32 = vld [vmem:[%s5278_s25 + $0x1f0] sm:$0xff]  }
  0x20   : > { %275 = vst [vmem:[%s5283_s26 + $0xf0] sm:$0xf] %v274_v30  ;;  %277 = vst [vmem:[%s5283_s26 + $0xf4] sm:$0xff] %v276_v31   ;;  %v284_v33 = vld [vmem:[%s5278_s25 + $0x1f8] sm:$0xff]   ;;  %v288_v34 = vld [vmem:[%s5278_s25 + $0x200] sm:$0xff]  }
  0x21   : > { %281 = vst [vmem:[%s5283_s26 + $0xfc] sm:$0xff] %v280_v32   ;;  %v292_v35 = vld [vmem:[%s5278_s25 + $0x208] sm:$0xff]   ;;  %285 = vst [vmem:[%s5283_s26 + $0x104] sm:$0xff] %v284_v33   ;;  %v296_v36 = vld [vmem:[%s5278_s25 + $0x210] sm:$0xff]  }
  0x22   : > { %289 = vst [vmem:[%s5283_s26 + $0x10c] sm:$0xff] %v288_v34   ;;  %293 = vst [vmem:[%s5283_s26 + $0x114] sm:$0xff] %v292_v35   ;;  %v300_v37 = vld [vmem:[%s5278_s25 + $0x218] sm:$0xff]   ;;  %v304_v38 = vld [vmem:[%s5278_s25 + $0x220] sm:$0xff]  }
  0x23   : > { %297 = vst [vmem:[%s5283_s26 + $0x11c] sm:$0xff] %v296_v36   ;;  %301 = vst [vmem:[%s5283_s26 + $0x124] sm:$0xff] %v300_v37   ;;  %v308_v39 = vld [vmem:[%s5278_s25 + $0x228] sm:$0xff]   ;;  %v312_v40 = vld [vmem:[%s5278_s25 + $0x230] sm:$0xff]  }
  0x24   : > { %305 = vst [vmem:[%s5283_s26 + $0x12c] sm:$0xff] %v304_v38   ;;  %v316_v41 = vld [vmem:[%s5278_s25 + $0x238] sm:$0xff]   ;;  %309 = vst [vmem:[%s5283_s26 + $0x134] sm:$0xff] %v308_v39   ;;  %v320_v42 = vld [vmem:[%s5278_s25 + $0x240] sm:$0xff]  }
  0x25   : > { %313 = vst [vmem:[%s5283_s26 + $0x13c] sm:$0xff] %v312_v40   ;;  %317 = vst [vmem:[%s5283_s26 + $0x144] sm:$0xff] %v316_v41   ;;  %v324_v43 = vld [vmem:[%s5278_s25 + $0x248] sm:$0xff]   ;;  %v328_v44 = vld [vmem:[%s5278_s25 + $0x250] sm:$0xff]  }
  0x26   : > { %321 = vst [vmem:[%s5283_s26 + $0x14c] sm:$0xff] %v320_v42   ;;  %325 = vst [vmem:[%s5283_s26 + $0x154] sm:$0xff] %v324_v43   ;;  %v332_v45 = vld [vmem:[%s5278_s25 + $0x258] sm:$0xff]   ;;  %v336_v46 = vld [vmem:[%s5278_s25 + $0x260] sm:$0xff]  }
  0x27   : > { %329 = vst [vmem:[%s5283_s26 + $0x15c] sm:$0xff] %v328_v44   ;;  %v340_v47 = vld [vmem:[%s5278_s25 + $0x268] sm:$0xff]   ;;  %333 = vst [vmem:[%s5283_s26 + $0x164] sm:$0xff] %v332_v45   ;;  %v344_v48 = vld [vmem:[%s5278_s25 + $0x270] sm:$0xff]  }
  0x28   : > { %337 = vst [vmem:[%s5283_s26 + $0x16c] sm:$0xff] %v336_v46   ;;  %341 = vst [vmem:[%s5283_s26 + $0x174] sm:$0xff] %v340_v47   ;;  %v348_v49 = vld [vmem:[%s5278_s25 + $0x278] sm:$0xff]   ;;  %v352_v50 = vld [vmem:[%s5278_s25 + $0x280] sm:$0xff]  }
  0x29   : > { %345 = vst [vmem:[%s5283_s26 + $0x17c] sm:$0xff] %v344_v48   ;;  %349 = vst [vmem:[%s5283_s26 + $0x184] sm:$0xff] %v348_v49   ;;  %v356_v51 = vld [vmem:[%s5278_s25 + $0x288] sm:$0xff]   ;;  %v360_v52 = vld [vmem:[%s5278_s25 + $0x290] sm:$0xff]  }
  0x2a   : > { %353 = vst [vmem:[%s5283_s26 + $0x18c] sm:$0xff] %v352_v50   ;;  %v364_v53 = vld [vmem:[%s5278_s25 + $0x298] sm:$0xff]   ;;  %357 = vst [vmem:[%s5283_s26 + $0x194] sm:$0xff] %v356_v51   ;;  %v368_v54 = vld [vmem:[%s5278_s25 + $0x2a0] sm:$0xff]  }
  0x2b   : > { %361 = vst [vmem:[%s5283_s26 + $0x19c] sm:$0xff] %v360_v52   ;;  %365 = vst [vmem:[%s5283_s26 + $0x1a4] sm:$0xff] %v364_v53   ;;  %v372_v55 = vld [vmem:[%s5278_s25 + $0x2a8] sm:$0xff]   ;;  %v376_v56 = vld [vmem:[%s5278_s25 + $0x2b0] sm:$0xff]  }
  0x2c   : > { %369 = vst [vmem:[%s5283_s26 + $0x1ac] sm:$0xff] %v368_v54   ;;  %373 = vst [vmem:[%s5283_s26 + $0x1b4] sm:$0xff] %v372_v55   ;;  %v380_v57 = vld [vmem:[%s5278_s25 + $0x2b8] sm:$0xff]   ;;  %v384_v58 = vld [vmem:[%s5278_s25 + $0x2c0] sm:$0xff]  }
  0x2d   : > { %377 = vst [vmem:[%s5283_s26 + $0x1bc] sm:$0xff] %v376_v56   ;;  %v388_v59 = vld [vmem:[%s5278_s25 + $0x2c8] sm:$0xff]   ;;  %381 = vst [vmem:[%s5283_s26 + $0x1c4] sm:$0xff] %v380_v57   ;;  %v392_v60 = vld [vmem:[%s5278_s25 + $0x2d0] sm:$0xff]  }
  0x2e   : > { %385 = vst [vmem:[%s5283_s26 + $0x1cc] sm:$0xff] %v384_v58   ;;  %389 = vst [vmem:[%s5283_s26 + $0x1d4] sm:$0xff] %v388_v59   ;;  %v396_v61 = vld [vmem:[%s5278_s25 + $0x2d8] sm:$0xf]  ;;  %v398_v62 = vld [vmem:[%s5278_s25 + $0x3d0] sm:$0xff]  }
  0x2f   : > { %393 = vst [vmem:[%s5283_s26 + $0x1dc] sm:$0xff] %v392_v60   ;;  %397 = vst [vmem:[%s5283_s26 + $0x1e4] sm:$0xf] %v396_v61  ;;  %v402_v63 = vld [vmem:[%s5278_s25 + $0x3d8] sm:$0xff]   ;;  %v406_v0 = vld [vmem:[%s5278_s25 + $0x3e0] sm:$0xff]  }
  0x30   : > { %399 = vst [vmem:[%s5283_s26 + $0x1e8] sm:$0xff] %v398_v62   ;;  %v410_v1 = vld [vmem:[%s5278_s25 + $0x3e8] sm:$0xff]   ;;  %403 = vst [vmem:[%s5283_s26 + $0x1f0] sm:$0xff] %v402_v63   ;;  %v414_v2 = vld [vmem:[%s5278_s25 + $0x3f0] sm:$0xff]  }
  0x31   : > { %407 = vst [vmem:[%s5283_s26 + $0x1f8] sm:$0xff] %v406_v0   ;;  %411 = vst [vmem:[%s5283_s26 + $0x200] sm:$0xff] %v410_v1   ;;  %v418_v3 = vld [vmem:[%s5278_s25 + $0x3f8] sm:$0xff]   ;;  %v422_v4 = vld [vmem:[%s5278_s25 + $0x400] sm:$0xff]  }
  0x32   : > { %415 = vst [vmem:[%s5283_s26 + $0x208] sm:$0xff] %v414_v2   ;;  %419 = vst [vmem:[%s5283_s26 + $0x210] sm:$0xff] %v418_v3   ;;  %v426_v5 = vld [vmem:[%s5278_s25 + $0x408] sm:$0xff]   ;;  %v430_v6 = vld [vmem:[%s5278_s25 + $0x410] sm:$0xff]  }
  0x33   : > { %423 = vst [vmem:[%s5283_s26 + $0x218] sm:$0xff] %v422_v4   ;;  %v434_v7 = vld [vmem:[%s5278_s25 + $0x418] sm:$0xff]   ;;  %427 = vst [vmem:[%s5283_s26 + $0x220] sm:$0xff] %v426_v5   ;;  %v438_v8 = vld [vmem:[%s5278_s25 + $0x420] sm:$0xff]  }
  0x34   : > { %431 = vst [vmem:[%s5283_s26 + $0x228] sm:$0xff] %v430_v6   ;;  %435 = vst [vmem:[%s5283_s26 + $0x230] sm:$0xff] %v434_v7   ;;  %v442_v9 = vld [vmem:[%s5278_s25 + $0x428] sm:$0xff]   ;;  %v446_v10 = vld [vmem:[%s5278_s25 + $0x430] sm:$0xff]  }
  0x35   : > { %439 = vst [vmem:[%s5283_s26 + $0x238] sm:$0xff] %v438_v8   ;;  %443 = vst [vmem:[%s5283_s26 + $0x240] sm:$0xff] %v442_v9   ;;  %v450_v11 = vld [vmem:[%s5278_s25 + $0x438] sm:$0xff]   ;;  %v454_v12 = vld [vmem:[%s5278_s25 + $0x440] sm:$0xff]  }
  0x36   : > { %447 = vst [vmem:[%s5283_s26 + $0x248] sm:$0xff] %v446_v10   ;;  %v458_v13 = vld [vmem:[%s5278_s25 + $0x448] sm:$0xff]   ;;  %451 = vst [vmem:[%s5283_s26 + $0x250] sm:$0xff] %v450_v11   ;;  %v462_v14 = vld [vmem:[%s5278_s25 + $0x450] sm:$0xff]  }
  0x37   : > { %455 = vst [vmem:[%s5283_s26 + $0x258] sm:$0xff] %v454_v12   ;;  %459 = vst [vmem:[%s5283_s26 + $0x260] sm:$0xff] %v458_v13   ;;  %v466_v15 = vld [vmem:[%s5278_s25 + $0x458] sm:$0xff]   ;;  %v470_v16 = vld [vmem:[%s5278_s25 + $0x460] sm:$0xff]  }
  0x38   : > { %463 = vst [vmem:[%s5283_s26 + $0x268] sm:$0xff] %v462_v14   ;;  %467 = vst [vmem:[%s5283_s26 + $0x270] sm:$0xff] %v466_v15   ;;  %v474_v17 = vld [vmem:[%s5278_s25 + $0x468] sm:$0xff]   ;;  %v478_v18 = vld [vmem:[%s5278_s25 + $0x470] sm:$0xff]  }
  0x39   : > { %471 = vst [vmem:[%s5283_s26 + $0x278] sm:$0xff] %v470_v16   ;;  %v482_v19 = vld [vmem:[%s5278_s25 + $0x478] sm:$0xff]   ;;  %475 = vst [vmem:[%s5283_s26 + $0x280] sm:$0xff] %v474_v17   ;;  %v486_v20 = vld [vmem:[%s5278_s25 + $0x480] sm:$0xff]  }
  0x3a   : > { %479 = vst [vmem:[%s5283_s26 + $0x288] sm:$0xff] %v478_v18   ;;  %483 = vst [vmem:[%s5283_s26 + $0x290] sm:$0xff] %v482_v19   ;;  %v490_v21 = vld [vmem:[%s5278_s25 + $0x488] sm:$0xff]   ;;  %v494_v22 = vld [vmem:[%s5278_s25 + $0x490] sm:$0xff]  }
  0x3b   : > { %487 = vst [vmem:[%s5283_s26 + $0x298] sm:$0xff] %v486_v20   ;;  %491 = vst [vmem:[%s5283_s26 + $0x2a0] sm:$0xff] %v490_v21   ;;  %v498_v23 = vld [vmem:[%s5278_s25 + $0x498] sm:$0xff]   ;;  %v502_v24 = vld [vmem:[%s5278_s25 + $0x4a0] sm:$0xff]  }
  0x3c   : > { %495 = vst [vmem:[%s5283_s26 + $0x2a8] sm:$0xff] %v494_v22   ;;  %v506_v25 = vld [vmem:[%s5278_s25 + $0x4a8] sm:$0xff]   ;;  %499 = vst [vmem:[%s5283_s26 + $0x2b0] sm:$0xff] %v498_v23   ;;  %v510_v26 = vld [vmem:[%s5278_s25 + $0x4b0] sm:$0xff]  }
  0x3d   : > { %503 = vst [vmem:[%s5283_s26 + $0x2b8] sm:$0xff] %v502_v24   ;;  %507 = vst [vmem:[%s5283_s26 + $0x2c0] sm:$0xff] %v506_v25   ;;  %v514_v27 = vld [vmem:[%s5278_s25 + $0x4b8] sm:$0xff]   ;;  %v518_v28 = vld [vmem:[%s5278_s25 + $0x4c0] sm:$0xf] }
  0x3e   : > { %511 = vst [vmem:[%s5283_s26 + $0x2c8] sm:$0xff] %v510_v26   ;;  %515 = vst [vmem:[%s5283_s26 + $0x2d0] sm:$0xff] %v514_v27   ;;  %v520_v29 = vld [vmem:[%s5278_s25 + $0x5b8] sm:$0xff]   ;;  %v524_v30 = vld [vmem:[%s5278_s25 + $0x5c0] sm:$0xff]  }
  0x3f   : > { %519 = vst [vmem:[%s5283_s26 + $0x2d8] sm:$0xf] %v518_v28  ;;  %v528_v31 = vld [vmem:[%s5278_s25 + $0x5c8] sm:$0xff]   ;;  %521 = vst [vmem:[%s5283_s26 + $0x2dc] sm:$0xff] %v520_v29   ;;  %v532_v32 = vld [vmem:[%s5278_s25 + $0x5d0] sm:$0xff]  }
  0x40   : > { %525 = vst [vmem:[%s5283_s26 + $0x2e4] sm:$0xff] %v524_v30   ;;  %529 = vst [vmem:[%s5283_s26 + $0x2ec] sm:$0xff] %v528_v31   ;;  %v536_v33 = vld [vmem:[%s5278_s25 + $0x5d8] sm:$0xff]   ;;  %v540_v34 = vld [vmem:[%s5278_s25 + $0x5e0] sm:$0xff]  }
  0x41   : > { %533 = vst [vmem:[%s5283_s26 + $0x2f4] sm:$0xff] %v532_v32   ;;  %537 = vst [vmem:[%s5283_s26 + $0x2fc] sm:$0xff] %v536_v33   ;;  %v544_v35 = vld [vmem:[%s5278_s25 + $0x5e8] sm:$0xff]   ;;  %v548_v36 = vld [vmem:[%s5278_s25 + $0x5f0] sm:$0xff]  }
  0x42   : > { %541 = vst [vmem:[%s5283_s26 + $0x304] sm:$0xff] %v540_v34   ;;  %v552_v37 = vld [vmem:[%s5278_s25 + $0x5f8] sm:$0xff]   ;;  %545 = vst [vmem:[%s5283_s26 + $0x30c] sm:$0xff] %v544_v35   ;;  %v556_v38 = vld [vmem:[%s5278_s25 + $0x600] sm:$0xff]  }
  0x43   : > { %549 = vst [vmem:[%s5283_s26 + $0x314] sm:$0xff] %v548_v36   ;;  %553 = vst [vmem:[%s5283_s26 + $0x31c] sm:$0xff] %v552_v37   ;;  %v560_v39 = vld [vmem:[%s5278_s25 + $0x608] sm:$0xff]   ;;  %v564_v40 = vld [vmem:[%s5278_s25 + $0x610] sm:$0xff]  }
  0x44   : > { %557 = vst [vmem:[%s5283_s26 + $0x324] sm:$0xff] %v556_v38   ;;  %561 = vst [vmem:[%s5283_s26 + $0x32c] sm:$0xff] %v560_v39   ;;  %v568_v41 = vld [vmem:[%s5278_s25 + $0x618] sm:$0xff]   ;;  %v572_v42 = vld [vmem:[%s5278_s25 + $0x620] sm:$0xff]  }
  0x45   : > { %565 = vst [vmem:[%s5283_s26 + $0x334] sm:$0xff] %v564_v40   ;;  %v576_v43 = vld [vmem:[%s5278_s25 + $0x628] sm:$0xff]   ;;  %569 = vst [vmem:[%s5283_s26 + $0x33c] sm:$0xff] %v568_v41   ;;  %v580_v44 = vld [vmem:[%s5278_s25 + $0x630] sm:$0xff]  }
  0x46   : > { %573 = vst [vmem:[%s5283_s26 + $0x344] sm:$0xff] %v572_v42   ;;  %577 = vst [vmem:[%s5283_s26 + $0x34c] sm:$0xff] %v576_v43   ;;  %v584_v45 = vld [vmem:[%s5278_s25 + $0x638] sm:$0xff]   ;;  %v588_v46 = vld [vmem:[%s5278_s25 + $0x640] sm:$0xff]  }
  0x47   : > { %581 = vst [vmem:[%s5283_s26 + $0x354] sm:$0xff] %v580_v44   ;;  %585 = vst [vmem:[%s5283_s26 + $0x35c] sm:$0xff] %v584_v45   ;;  %v592_v47 = vld [vmem:[%s5278_s25 + $0x648] sm:$0xff]   ;;  %v596_v48 = vld [vmem:[%s5278_s25 + $0x650] sm:$0xff]  }
  0x48   : > { %589 = vst [vmem:[%s5283_s26 + $0x364] sm:$0xff] %v588_v46   ;;  %v600_v49 = vld [vmem:[%s5278_s25 + $0x658] sm:$0xff]   ;;  %593 = vst [vmem:[%s5283_s26 + $0x36c] sm:$0xff] %v592_v47   ;;  %v604_v50 = vld [vmem:[%s5278_s25 + $0x660] sm:$0xff]  }
  0x49   : > { %597 = vst [vmem:[%s5283_s26 + $0x374] sm:$0xff] %v596_v48   ;;  %601 = vst [vmem:[%s5283_s26 + $0x37c] sm:$0xff] %v600_v49   ;;  %v608_v51 = vld [vmem:[%s5278_s25 + $0x668] sm:$0xff]   ;;  %v612_v52 = vld [vmem:[%s5278_s25 + $0x670] sm:$0xff]  }
  0x4a   : > { %605 = vst [vmem:[%s5283_s26 + $0x384] sm:$0xff] %v604_v50   ;;  %609 = vst [vmem:[%s5283_s26 + $0x38c] sm:$0xff] %v608_v51   ;;  %v616_v53 = vld [vmem:[%s5278_s25 + $0x678] sm:$0xff]   ;;  %v620_v54 = vld [vmem:[%s5278_s25 + $0x680] sm:$0xff]  }
  0x4b   : > { %613 = vst [vmem:[%s5283_s26 + $0x394] sm:$0xff] %v612_v52   ;;  %v624_v55 = vld [vmem:[%s5278_s25 + $0x688] sm:$0xff]   ;;  %617 = vst [vmem:[%s5283_s26 + $0x39c] sm:$0xff] %v616_v53   ;;  %v628_v56 = vld [vmem:[%s5278_s25 + $0x690] sm:$0xff]  }
  0x4c   : > { %621 = vst [vmem:[%s5283_s26 + $0x3a4] sm:$0xff] %v620_v54   ;;  %625 = vst [vmem:[%s5283_s26 + $0x3ac] sm:$0xff] %v624_v55   ;;  %v632_v57 = vld [vmem:[%s5278_s25 + $0x698] sm:$0xff]   ;;  %v636_v58 = vld [vmem:[%s5278_s25 + $0x6a0] sm:$0xff]  }
  0x4d   : > { %629 = vst [vmem:[%s5283_s26 + $0x3b4] sm:$0xff] %v628_v56   ;;  %633 = vst [vmem:[%s5283_s26 + $0x3bc] sm:$0xff] %v632_v57   ;;  %v640_v59 = vld [vmem:[%s5278_s25 + $0x6a8] sm:$0xf] }
  0x4e   : > { %637 = vst [vmem:[%s5283_s26 + $0x3c4] sm:$0xff] %v636_v58   ;;  %641 = vst [vmem:[%s5283_s26 + $0x3cc] sm:$0xf] %v640_v59 }
  0x4f PF: > { %p4121_p5 = scmp.ge.s32.totalorder %s5222_s14, 1  ;;  %p1152_p6 = scmp.lt.s32.totalorder %s5222_s14, 3 }
  0x51   : > { %p1153_p7 = pnand %p4121_p5, %p1152_p6 }
  0x53   : > { %1156 = sbr.rel (%p1153_p7) target bundleno = 549 (0x225), region = 69 }
  0x58   : > { %v5076_v60 = vld [vmem:[%s6350_s1 + $0x8] sm:$0xff]   ;;  %s1159_s29 = sand.u32 1, %s5214_s12   ;;  %v5077_v61 = vld [vmem:[%s6350_s1] sm:$0xff]   ;;  %vm2060_vm0 = vcmask 261120   ;;  %s1183_s7 = smul.u32 61, %s4116_s15 }
  0x59   : > { %s5051_s5 = smul.u32 976, %s1159_s29  ;;  %4798 = vmatprep.subr.bf16.mxu0 %v5076_v60  ;;  %5046 = vmatprep.subr.bf16.mxu1 %v5076_v60 }
  0x5a   : > { %4799 = vmatpush3.bf16.msra.mxu0 %v5076_v60  ;;  %5048 = vmatpush3.bf16.msra.mxu1 %v5076_v60  ;;  %p1184_p8 = scmp.lt.s32.totalorder %s1183_s7, 121 }
  0x5b   : > { %4800 = vmatprep.subr.bf16.mxu0 %v5077_v61  ;;  %5047 = vmatprep.subr.bf16.mxu1 %v5077_v61  ;;  %s5539_s6 = scalar_lea.vmem [#allocation2], %s5051_s5 }
  0x5c   : > { %v5078_v62 = vld [vmem:[%s5539_s6] sm:$0xff]   ;;  %v5079_v63 = vld [vmem:[%s5539_s6 + $0x8] sm:$0xff]   ;;  %v5080_v0 = vld [vmem:[%s5539_s6 + $0x1f0] sm:$0xff]   ;;  %s6511_s7 = smov (!%p1184_p8, %s1183_s7), 121 }
  0x5d   : > { %4802 = vmatprep.mubr.msk.bf16.mxu0 %vm2060_vm0, %v5078_v62  ;;  %v5081_v1 = vld [vmem:[%s5539_s6 + $0x1f8] sm:$0xff]   ;;  %4926 = vmatprep.mubr.msk.bf16.mxu1 %vm2060_vm0, %v5080_v0  ;;  %v5082_v2 = vld [vmem:[%s5539_s6 + $0x10] sm:$0xff]   ;;  %v5084_v3 = vld [vmem:[%s5539_s6 + $0x200] sm:$0xff]   ;;  %s4122_s10 = sshll.u32 %s6511_s7, 2 }
  0x5e   : > { %4801 = vmatpush3.bf16.msra.mxu0 %v5077_v61  ;;  %5049 = vmatpush3.bf16.msra.mxu1 %v5077_v61  ;;  %v5083_v4 = vld [vmem:[%s5539_s6 + $0x18] sm:$0xff]   ;;  %v5085_v5 = vld [vmem:[%s5539_s6 + $0x208] sm:$0xff]   ;;  %v5086_v6 = vld [vmem:[%s5539_s6 + $0x20] sm:$0xff]   ;;  %s6063_s14 = scalar_lea.vmem %s6352_s3, %s4122_s10 }
  0x5f   : > { %v5088_v7 = vld [vmem:[%s5539_s6 + $0x210] sm:$0xff]   ;;  %v5087_v8 = vld [vmem:[%s5539_s6 + $0x28] sm:$0xff]   ;;  %v5089_v9 = vld [vmem:[%s5539_s6 + $0x218] sm:$0xff]  }
  0x60   : > { %v5090_v10 = vld [vmem:[%s5539_s6 + $0x30] sm:$0xff]   ;;  %v5092_v11 = vld [vmem:[%s5539_s6 + $0x220] sm:$0xff]   ;;  %v5091_v12 = vld [vmem:[%s5539_s6 + $0x38] sm:$0xff]  }
  0x61   : > { %4803 = vmatmul.mubr.msk.bf16.vlgmr.msra.gmra.mxu0 %vm2060_vm0, %v5079_v63  ;;  %4927 = vmatmul.mubr.msk.bf16.vlgmr.msra.gmra.mxu1 %vm2060_vm0, %v5081_v1  ;;  %v5093_v13 = vld [vmem:[%s5539_s6 + $0x228] sm:$0xff]   ;;  %v5094_v14 = vld [vmem:[%s5539_s6 + $0x40] sm:$0xff]   ;;  %v5096_v15 = vld [vmem:[%s5539_s6 + $0x230] sm:$0xff]  }
  0x62   : > { %4806 = vmatprep.mubr.msk.bf16.mxu0 %vm2060_vm0, %v5082_v2  ;;  %4930 = vmatprep.mubr.msk.bf16.mxu1 %vm2060_vm0, %v5084_v3  ;;  %v5095_v16 = vld [vmem:[%s5539_s6 + $0x48] sm:$0xff]   ;;  %v5097_v17 = vld [vmem:[%s5539_s6 + $0x238] sm:$0xff]   ;;  %v5098_v18 = vld [vmem:[%s5539_s6 + $0x50] sm:$0xff]  }
  0x63   : > { %v5100_v19 = vld [vmem:[%s5539_s6 + $0x240] sm:$0xff]   ;;  %v5099_v20 = vld [vmem:[%s5539_s6 + $0x58] sm:$0xff]   ;;  %v5101_v21 = vld [vmem:[%s5539_s6 + $0x248] sm:$0xff]  }
  0x64   : > { %v5102_v22 = vld [vmem:[%s5539_s6 + $0x60] sm:$0xff]   ;;  %v5104_v23 = vld [vmem:[%s5539_s6 + $0x250] sm:$0xff]   ;;  %v5103_v24 = vld [vmem:[%s5539_s6 + $0x68] sm:$0xff]  }
  0x65   : > { %v5105_v25 = vld [vmem:[%s5539_s6 + $0x258] sm:$0xff]   ;;  %v5106_v26 = vld [vmem:[%s5539_s6 + $0x70] sm:$0xff]   ;;  %v5108_v27 = vld [vmem:[%s5539_s6 + $0x260] sm:$0xff]  }
  0x66   : > { %v5107_v28 = vld [vmem:[%s5539_s6 + $0x78] sm:$0xff]   ;;  %v5109_v29 = vld [vmem:[%s5539_s6 + $0x268] sm:$0xff]   ;;  %v5110_v30 = vld [vmem:[%s5539_s6 + $0x80] sm:$0xff]  }
  0x67   : > { %v5112_v31 = vld [vmem:[%s5539_s6 + $0x270] sm:$0xff]   ;;  %v5111_v32 = vld [vmem:[%s5539_s6 + $0x88] sm:$0xff]   ;;  %v5113_v33 = vld [vmem:[%s5539_s6 + $0x278] sm:$0xff]  }
  0x68   : > { %v5114_v34 = vld [vmem:[%s5539_s6 + $0x90] sm:$0xff]   ;;  %v5116_v35 = vld [vmem:[%s5539_s6 + $0x280] sm:$0xff]   ;;  %v5115_v36 = vld [vmem:[%s5539_s6 + $0x98] sm:$0xff]  }
  0x69   : > { %4807 = vmatmul.mubr.msk.bf16.gmra.mxu0 %vm2060_vm0, %v5083_v4  ;;  %4931 = vmatmul.mubr.msk.bf16.gmra.mxu1 %vm2060_vm0, %v5085_v5  ;;  %v5117_v37 = vld [vmem:[%s5539_s6 + $0x288] sm:$0xff]   ;;  %v5118_v38 = vld [vmem:[%s5539_s6 + $0xa0] sm:$0xff]   ;;  %v5120_v39 = vld [vmem:[%s5539_s6 + $0x290] sm:$0xff]  }
  0x6a   : > { %4810 = vmatprep.mubr.msk.bf16.mxu0 %vm2060_vm0, %v5086_v6  ;;  %4934 = vmatprep.mubr.msk.bf16.mxu1 %vm2060_vm0, %v5088_v7  ;;  %v5119_v40 = vld [vmem:[%s5539_s6 + $0xa8] sm:$0xff]   ;;  %v5121_v41 = vld [vmem:[%s5539_s6 + $0x298] sm:$0xff]   ;;  %v5122_v42 = vld [vmem:[%s5539_s6 + $0xb0] sm:$0xff]  }
  0x6b   : > { %v5124_v43 = vld [vmem:[%s5539_s6 + $0x2a0] sm:$0xff]   ;;  %v5123_v44 = vld [vmem:[%s5539_s6 + $0xb8] sm:$0xff]   ;;  %v5125_v45 = vld [vmem:[%s5539_s6 + $0x2a8] sm:$0xff]  }
  0x6c   : > { %v5126_v46 = vld [vmem:[%s5539_s6 + $0xc0] sm:$0xff]   ;;  %v5128_v47 = vld [vmem:[%s5539_s6 + $0x2b0] sm:$0xff]   ;;  %v5127_v48 = vld [vmem:[%s5539_s6 + $0xc8] sm:$0xff]  }
  0x6d   : > { %v5129_v49 = vld [vmem:[%s5539_s6 + $0x2b8] sm:$0xff]   ;;  %v5130_v50 = vld [vmem:[%s5539_s6 + $0xd0] sm:$0xff]   ;;  %v5132_v51 = vld [vmem:[%s5539_s6 + $0x2c0] sm:$0xff]  }
  0x6e   : > { %v5131_v52 = vld [vmem:[%s5539_s6 + $0xd8] sm:$0xff]   ;;  %v5133_v53 = vld [vmem:[%s5539_s6 + $0x2c8] sm:$0xff]   ;;  %v5134_v54 = vld [vmem:[%s5539_s6 + $0xe0] sm:$0xff]  }
  0x6f   : > { %v5136_v55 = vld [vmem:[%s5539_s6 + $0x2d0] sm:$0xff]   ;;  %v5135_v56 = vld [vmem:[%s5539_s6 + $0xe8] sm:$0xff]   ;;  %v5137_v57 = vld [vmem:[%s5539_s6 + $0x2d8] sm:$0xff]  }
  0x70   : > { %v5138_v58 = vld [vmem:[%s5539_s6 + $0xf0] sm:$0xff]   ;;  %v5140_v59 = vld [vmem:[%s5539_s6 + $0x2e0] sm:$0xff]   ;;  %v5139_v60 = vld [vmem:[%s5539_s6 + $0xf8] sm:$0xff]  }
  0x71   : > { %4811 = vmatmul.mubr.msk.bf16.gmra.mxu0 %vm2060_vm0, %v5087_v8  ;;  %4935 = vmatmul.mubr.msk.bf16.gmra.mxu1 %vm2060_vm0, %v5089_v9  ;;  %v5141_v61 = vld [vmem:[%s5539_s6 + $0x2e8] sm:$0xff]   ;;  %v5142_v62 = vld [vmem:[%s5539_s6 + $0x100] sm:$0xff]   ;;  %v5144_v63 = vld [vmem:[%s5539_s6 + $0x2f0] sm:$0xff]  }
  0x72   : > { %4814 = vmatprep.mubr.msk.bf16.mxu0 %vm2060_vm0, %v5090_v10  ;;  %4938 = vmatprep.mubr.msk.bf16.mxu1 %vm2060_vm0, %v5092_v11  ;;  %v5143_v0 = vld [vmem:[%s5539_s6 + $0x108] sm:$0xff]   ;;  %v5145_v1 = vld [vmem:[%s5539_s6 + $0x2f8] sm:$0xff]   ;;  %v5146_v2 = vld [vmem:[%s5539_s6 + $0x110] sm:$0xff]  }
  0x73   : > { %v5148_v3 = vld [vmem:[%s5539_s6 + $0x300] sm:$0xff]   ;;  %v5147_v4 = vld [vmem:[%s5539_s6 + $0x118] sm:$0xff]   ;;  %v5149_v5 = vld [vmem:[%s5539_s6 + $0x308] sm:$0xff]  }
  0x74   : > { %v5150_v6 = vld [vmem:[%s5539_s6 + $0x120] sm:$0xff]   ;;  %v5152_v7 = vld [vmem:[%s5539_s6 + $0x310] sm:$0xff]   ;;  %v5151_v8 = vld [vmem:[%s5539_s6 + $0x128] sm:$0xff]  }
  0x75   : > { %v5153_v9 = vld [vmem:[%s5539_s6 + $0x318] sm:$0xff]   ;;  %v5154_v10 = vld [vmem:[%s5539_s6 + $0x130] sm:$0xff]   ;;  %v5156_v11 = vld [vmem:[%s5539_s6 + $0x320] sm:$0xff]  }
  0x79   : > { %4815 = vmatmul.mubr.msk.bf16.gmra.mxu0 %vm2060_vm0, %v5091_v12  ;;  %4939 = vmatmul.mubr.msk.bf16.gmra.mxu1 %vm2060_vm0, %v5093_v13  ;;  %v5155_v12 = vld [vmem:[%s5539_s6 + $0x138] sm:$0xff]   ;;  %v5157_v13 = vld [vmem:[%s5539_s6 + $0x328] sm:$0xff]  }
  0x7a   : > { %4818 = vmatprep.mubr.msk.bf16.mxu0 %vm2060_vm0, %v5094_v14  ;;  %4942 = vmatprep.mubr.msk.bf16.mxu1 %vm2060_vm0, %v5096_v15  ;;  %v5158_v14 = vld [vmem:[%s5539_s6 + $0x140] sm:$0xff]   ;;  %v5160_v15 = vld [vmem:[%s5539_s6 + $0x330] sm:$0xff]  }
  0x81   : > { %4819 = vmatmul.mubr.msk.bf16.gmra.mxu0 %vm2060_vm0, %v5095_v16  ;;  %4943 = vmatmul.mubr.msk.bf16.gmra.mxu1 %vm2060_vm0, %v5097_v17  ;;  %v5159_v16 = vld [vmem:[%s5539_s6 + $0x148] sm:$0xff]   ;;  %v5161_v17 = vld [vmem:[%s5539_s6 + $0x338] sm:$0xff]  }
  0x82   : > { %4822 = vmatprep.mubr.msk.bf16.mxu0 %vm2060_vm0, %v5098_v18  ;;  %4946 = vmatprep.mubr.msk.bf16.mxu1 %vm2060_vm0, %v5100_v19  ;;  %v5162_v18 = vld [vmem:[%s5539_s6 + $0x150] sm:$0xff]   ;;  %v5164_v19 = vld [vmem:[%s5539_s6 + $0x340] sm:$0xff]  }
  0x89   : > { %4823 = vmatmul.mubr.msk.bf16.gmra.mxu0 %vm2060_vm0, %v5099_v20  ;;  %4947 = vmatmul.mubr.msk.bf16.gmra.mxu1 %vm2060_vm0, %v5101_v21  ;;  %v5163_v20 = vld [vmem:[%s5539_s6 + $0x158] sm:$0xff]   ;;  %v5165_v21 = vld [vmem:[%s5539_s6 + $0x348] sm:$0xff]  }
  0x8a   : > { %4826 = vmatprep.mubr.msk.bf16.mxu0 %vm2060_vm0, %v5102_v22  ;;  %4950 = vmatprep.mubr.msk.bf16.mxu1 %vm2060_vm0, %v5104_v23  ;;  %v5166_v22 = vld [vmem:[%s5539_s6 + $0x160] sm:$0xff]   ;;  %v5168_v23 = vld [vmem:[%s5539_s6 + $0x350] sm:$0xff]  }
  0x91   : > { %4827 = vmatmul.mubr.msk.bf16.gmra.mxu0 %vm2060_vm0, %v5103_v24  ;;  %4951 = vmatmul.mubr.msk.bf16.gmra.mxu1 %vm2060_vm0, %v5105_v25  ;;  %v5167_v24 = vld [vmem:[%s5539_s6 + $0x168] sm:$0xff]   ;;  %v5169_v25 = vld [vmem:[%s5539_s6 + $0x358] sm:$0xff]  }
  0x92   : > { %4830 = vmatprep.mubr.msk.bf16.mxu0 %vm2060_vm0, %v5106_v26  ;;  %4954 = vmatprep.mubr.msk.bf16.mxu1 %vm2060_vm0, %v5108_v27  ;;  %v5170_v26 = vld [vmem:[%s5539_s6 + $0x170] sm:$0xff]   ;;  %v5172_v27 = vld [vmem:[%s5539_s6 + $0x360] sm:$0xff]  }
  0x99   : > { %4831 = vmatmul.mubr.msk.bf16.gmra.mxu0 %vm2060_vm0, %v5107_v28  ;;  %4955 = vmatmul.mubr.msk.bf16.gmra.mxu1 %vm2060_vm0, %v5109_v29  ;;  %v5171_v28 = vld [vmem:[%s5539_s6 + $0x178] sm:$0xff]   ;;  %v5173_v29 = vld [vmem:[%s5539_s6 + $0x368] sm:$0xff]  }
  0x9a   : > { %4834 = vmatprep.mubr.msk.bf16.mxu0 %vm2060_vm0, %v5110_v30  ;;  %4958 = vmatprep.mubr.msk.bf16.mxu1 %vm2060_vm0, %v5112_v31  ;;  %v5174_v30 = vld [vmem:[%s5539_s6 + $0x180] sm:$0xff]   ;;  %v5176_v31 = vld [vmem:[%s5539_s6 + $0x370] sm:$0xff]  }
  0xa1   : > { %4835 = vmatmul.mubr.msk.bf16.gmra.mxu0 %vm2060_vm0, %v5111_v32  ;;  %4959 = vmatmul.mubr.msk.bf16.gmra.mxu1 %vm2060_vm0, %v5113_v33  ;;  %v5175_v32 = vld [vmem:[%s5539_s6 + $0x188] sm:$0xff]   ;;  %v5177_v33 = vld [vmem:[%s5539_s6 + $0x378] sm:$0xff]  }
  0xa2   : > { %4838 = vmatprep.mubr.msk.bf16.mxu0 %vm2060_vm0, %v5114_v34  ;;  %4962 = vmatprep.mubr.msk.bf16.mxu1 %vm2060_vm0, %v5116_v35  ;;  %v5178_v34 = vld [vmem:[%s5539_s6 + $0x190] sm:$0xff]   ;;  %v5180_v35 = vld [vmem:[%s5539_s6 + $0x380] sm:$0xff]  }
  0xa9   : > { %4839 = vmatmul.mubr.msk.bf16.gmra.mxu0 %vm2060_vm0, %v5115_v36  ;;  %4963 = vmatmul.mubr.msk.bf16.gmra.mxu1 %vm2060_vm0, %v5117_v37 }
  0xaa   : > { %4842 = vmatprep.mubr.msk.bf16.mxu0 %vm2060_vm0, %v5118_v38  ;;  %4966 = vmatprep.mubr.msk.bf16.mxu1 %vm2060_vm0, %v5120_v39 }
  0xb1   : > { %4843 = vmatmul.mubr.msk.bf16.gmra.mxu0 %vm2060_vm0, %v5119_v40  ;;  %4967 = vmatmul.mubr.msk.bf16.gmra.mxu1 %vm2060_vm0, %v5121_v41 }
  0xb2   : > { %4846 = vmatprep.mubr.msk.bf16.mxu0 %vm2060_vm0, %v5122_v42  ;;  %4970 = vmatprep.mubr.msk.bf16.mxu1 %vm2060_vm0, %v5124_v43  ;;  %v5179_v42 = vld [vmem:[%s5539_s6 + $0x198] sm:$0xff]   ;;  %v5181_v43 = vld [vmem:[%s5539_s6 + $0x388] sm:$0xff]  }
  0xb9   : > { %4847 = vmatmul.mubr.msk.bf16.gmra.mxu0 %vm2060_vm0, %v5123_v44  ;;  %4971 = vmatmul.mubr.msk.bf16.gmra.mxu1 %vm2060_vm0, %v5125_v45  ;;  %v5182_v44 = vld [vmem:[%s5539_s6 + $0x1a0] sm:$0xff]   ;;  %v5184_v45 = vld [vmem:[%s5539_s6 + $0x390] sm:$0xff]  }
  0xba   : > { %4850 = vmatprep.mubr.msk.bf16.mxu0 %vm2060_vm0, %v5126_v46  ;;  %4974 = vmatprep.mubr.msk.bf16.mxu1 %vm2060_vm0, %v5128_v47 }
  0xc1   : > { %4851 = vmatmul.mubr.msk.bf16.gmra.mxu0 %vm2060_vm0, %v5127_v48  ;;  %4975 = vmatmul.mubr.msk.bf16.gmra.mxu1 %vm2060_vm0, %v5129_v49 }
  0xc2   : > { %4854 = vmatprep.mubr.msk.bf16.mxu0 %vm2060_vm0, %v5130_v50  ;;  %4978 = vmatprep.mubr.msk.bf16.mxu1 %vm2060_vm0, %v5132_v51 }
  0xc9   : > { %4855 = vmatmul.mubr.msk.bf16.gmra.mxu0 %vm2060_vm0, %v5131_v52  ;;  %4979 = vmatmul.mubr.msk.bf16.gmra.mxu1 %vm2060_vm0, %v5133_v53 }
  0xca   : > { %4858 = vmatprep.mubr.msk.bf16.mxu0 %vm2060_vm0, %v5134_v54  ;;  %4982 = vmatprep.mubr.msk.bf16.mxu1 %vm2060_vm0, %v5136_v55  ;;  %v5183_v54 = vld [vmem:[%s5539_s6 + $0x1a8] sm:$0xff]   ;;  %v5185_v55 = vld [vmem:[%s5539_s6 + $0x398] sm:$0xff]  }
  0xd1   : > { %4859 = vmatmul.mubr.msk.bf16.gmra.mxu0 %vm2060_vm0, %v5135_v56  ;;  %4983 = vmatmul.mubr.msk.bf16.gmra.mxu1 %vm2060_vm0, %v5137_v57  ;;  %v5186_v56 = vld [vmem:[%s5539_s6 + $0x1b0] sm:$0xff]   ;;  %v5188_v57 = vld [vmem:[%s5539_s6 + $0x3a0] sm:$0xff]  }
  0xd2   : > { %4862 = vmatprep.mubr.msk.bf16.mxu0 %vm2060_vm0, %v5138_v58  ;;  %4986 = vmatprep.mubr.msk.bf16.mxu1 %vm2060_vm0, %v5140_v59 }
  0xd9   : > { %4863 = vmatmul.mubr.msk.bf16.gmra.mxu0 %vm2060_vm0, %v5139_v60  ;;  %4987 = vmatmul.mubr.msk.bf16.gmra.mxu1 %vm2060_vm0, %v5141_v61 }
  0xda   : > { %4866 = vmatprep.mubr.msk.bf16.mxu0 %vm2060_vm0, %v5142_v62  ;;  %4990 = vmatprep.mubr.msk.bf16.mxu1 %vm2060_vm0, %v5144_v63 }
  0xe1   : > { %4867 = vmatmul.mubr.msk.bf16.gmra.mxu0 %vm2060_vm0, %v5143_v0  ;;  %4991 = vmatmul.mubr.msk.bf16.gmra.mxu1 %vm2060_vm0, %v5145_v1 }
  0xe2   : > { %4870 = vmatprep.mubr.msk.bf16.mxu0 %vm2060_vm0, %v5146_v2  ;;  %4994 = vmatprep.mubr.msk.bf16.mxu1 %vm2060_vm0, %v5148_v3  ;;  %v5187_v2 = vld [vmem:[%s5539_s6 + $0x1b8] sm:$0xff]   ;;  %v5189_v3 = vld [vmem:[%s5539_s6 + $0x3a8] sm:$0xff]  }
  0xe9   : > { %4871 = vmatmul.mubr.msk.bf16.gmra.mxu0 %vm2060_vm0, %v5147_v4  ;;  %4995 = vmatmul.mubr.msk.bf16.gmra.mxu1 %vm2060_vm0, %v5149_v5  ;;  %v5190_v4 = vld [vmem:[%s5539_s6 + $0x1c0] sm:$0xff]   ;;  %v5192_v5 = vld [vmem:[%s5539_s6 + $0x3b0] sm:$0xff]  }
  0xea   : > { %4874 = vmatprep.mubr.msk.bf16.mxu0 %vm2060_vm0, %v5150_v6  ;;  %4998 = vmatprep.mubr.msk.bf16.mxu1 %vm2060_vm0, %v5152_v7 }
  0xf1   : > { %4875 = vmatmul.mubr.msk.bf16.gmra.mxu0 %vm2060_vm0, %v5151_v8  ;;  %4999 = vmatmul.mubr.msk.bf16.gmra.mxu1 %vm2060_vm0, %v5153_v9 }
  0xf2   : > { %4878 = vmatprep.mubr.msk.bf16.mxu0 %vm2060_vm0, %v5154_v10  ;;  %5002 = vmatprep.mubr.msk.bf16.mxu1 %vm2060_vm0, %v5156_v11 }
  0xf9   : > { %4879 = vmatmul.mubr.msk.bf16.gmra.mxu0 %vm2060_vm0, %v5155_v12  ;;  %5003 = vmatmul.mubr.msk.bf16.gmra.mxu1 %vm2060_vm0, %v5157_v13 }
  0xfa   : > { %4882 = vmatprep.mubr.msk.bf16.mxu0 %vm2060_vm0, %v5158_v14  ;;  %5006 = vmatprep.mubr.msk.bf16.mxu1 %vm2060_vm0, %v5160_v15  ;;  %v5191_v14 = vld [vmem:[%s5539_s6 + $0x1c8] sm:$0xff]   ;;  %v5193_v15 = vld [vmem:[%s5539_s6 + $0x3b8] sm:$0xff]  }
 0x101   : > { %4883 = vmatmul.mubr.msk.bf16.gmra.mxu0 %vm2060_vm0, %v5159_v16  ;;  %5007 = vmatmul.mubr.msk.bf16.gmra.mxu1 %vm2060_vm0, %v5161_v17  ;;  %v5194_v16 = vld [vmem:[%s5539_s6 + $0x1d0] sm:$0xff]   ;;  %v5196_v17 = vld [vmem:[%s5539_s6 + $0x3c0] sm:$0xff]  }
 0x102   : > { %4886 = vmatprep.mubr.msk.bf16.mxu0 %vm2060_vm0, %v5162_v18  ;;  %5010 = vmatprep.mubr.msk.bf16.mxu1 %vm2060_vm0, %v5164_v19 }
 0x109   : > { %4887 = vmatmul.mubr.msk.bf16.gmra.mxu0 %vm2060_vm0, %v5163_v20  ;;  %5011 = vmatmul.mubr.msk.bf16.gmra.mxu1 %vm2060_vm0, %v5165_v21 }
 0x10a   : > { %4890 = vmatprep.mubr.msk.bf16.mxu0 %vm2060_vm0, %v5166_v22  ;;  %5014 = vmatprep.mubr.msk.bf16.mxu1 %vm2060_vm0, %v5168_v23 }
 0x111   : > { %4891 = vmatmul.mubr.msk.bf16.gmra.mxu0 %vm2060_vm0, %v5167_v24  ;;  %5015 = vmatmul.mubr.msk.bf16.gmra.mxu1 %vm2060_vm0, %v5169_v25 }
 0x112   : > { %4894 = vmatprep.mubr.msk.bf16.mxu0 %vm2060_vm0, %v5170_v26  ;;  %5018 = vmatprep.mubr.msk.bf16.mxu1 %vm2060_vm0, %v5172_v27  ;;  %v5195_v26 = vld [vmem:[%s5539_s6 + $0x1d8] sm:$0xff]   ;;  %v5197_v27 = vld [vmem:[%s5539_s6 + $0x3c8] sm:$0xff]  }
 0x119   : > { %4895 = vmatmul.mubr.msk.bf16.gmra.mxu0 %vm2060_vm0, %v5171_v28  ;;  %5019 = vmatmul.mubr.msk.bf16.gmra.mxu1 %vm2060_vm0, %v5173_v29  ;;  %v5198_v28 = vld [vmem:[%s5539_s6 + $0x1e0] sm:$0xff]  }
 0x11a   : > { %4898 = vmatprep.mubr.msk.bf16.mxu0 %vm2060_vm0, %v5174_v30  ;;  %5022 = vmatprep.mubr.msk.bf16.mxu1 %vm2060_vm0, %v5176_v31 }
 0x121   : > { %v5741_v36 = vpop.f32.mrf.mxu0  ;;  %4899 = vmatmul.mubr.msk.bf16.gmra.mxu0 %vm2060_vm0, %v5175_v32  ;;  %v5744_v37 = vpop.f32.mrf.mxu1  ;;  %5023 = vmatmul.mubr.msk.bf16.gmra.mxu1 %vm2060_vm0, %v5177_v33 }
 0x122   : > { %4902 = vmatprep.mubr.msk.bf16.mxu0 %vm2060_vm0, %v5178_v34  ;;  %5026 = vmatprep.mubr.msk.bf16.mxu1 %vm2060_vm0, %v5180_v35 }
 0x123   : > { %v5749_v38 = vpop.f32.mrf.mxu0  ;;  %v5751_v39 = vpop.f32.mrf.mxu1 }
 0x124   : > { %6353 = vst [vmem:[#allocation3_spill] sm:$0xff] %v5749_v38 }
 0x125   : > { %v5753_v40 = vpop.f32.mrf.mxu0  ;;  %v5755_v41 = vpop.f32.mrf.mxu1 }
 0x127   : > { %v5761_v46 = vpop.f32.mrf.mxu0  ;;  %v5763_v47 = vpop.f32.mrf.mxu1 }
 0x128   : > { %6354 = vst [vmem:[#allocation4_spill] sm:$0xff] %v5761_v46 }
 0x129   : > { %v5765_v48 = vpop.f32.mrf.mxu0  ;;  %4903 = vmatmul.mubr.msk.bf16.gmra.mxu0 %vm2060_vm0, %v5179_v42  ;;  %v5768_v49 = vpop.f32.mrf.mxu1  ;;  %5027 = vmatmul.mubr.msk.bf16.gmra.mxu1 %vm2060_vm0, %v5181_v43  ;;  %v5199_v43 = vld [vmem:[%s5539_s6 + $0x1e8] sm:$0xff]  }
 0x12a   : > { %4906 = vmatprep.mubr.msk.bf16.mxu0 %vm2060_vm0, %v5182_v44  ;;  %5030 = vmatprep.mubr.msk.bf16.mxu1 %vm2060_vm0, %v5184_v45 }
 0x12b   : > { %v5773_v50 = vpop.f32.mrf.mxu0  ;;  %v5775_v51 = vpop.f32.mrf.mxu1 }
 0x12d   : > { %v5777_v52 = vpop.f32.mrf.mxu0  ;;  %v5779_v53 = vpop.f32.mrf.mxu1 }
 0x12f   : > { %v5785_v58 = vpop.f32.mrf.mxu0  ;;  %v5787_v59 = vpop.f32.mrf.mxu1 }
 0x131   : > { %v5789_v60 = vpop.f32.mrf.mxu0  ;;  %4907 = vmatmul.mubr.msk.bf16.gmra.mxu0 %vm2060_vm0, %v5183_v54  ;;  %v5792_v61 = vpop.f32.mrf.mxu1  ;;  %5031 = vmatmul.mubr.msk.bf16.gmra.mxu1 %vm2060_vm0, %v5185_v55 }
 0x132   : > { %4910 = vmatprep.mubr.msk.bf16.mxu0 %vm2060_vm0, %v5186_v56  ;;  %5034 = vmatprep.mubr.msk.bf16.mxu1 %vm2060_vm0, %v5188_v57 }
 0x133   : > { %v5797_v62 = vpop.f32.mrf.mxu0  ;;  %v5799_v63 = vpop.f32.mrf.mxu1 }
 0x135   : > { %v5801_v0 = vpop.f32.mrf.mxu0  ;;  %v5803_v1 = vpop.f32.mrf.mxu1 }
 0x137   : > { %v5809_v6 = vpop.f32.mrf.mxu0  ;;  %v5811_v7 = vpop.f32.mrf.mxu1 }
 0x139   : > { %v5813_v8 = vpop.f32.mrf.mxu0  ;;  %4911 = vmatmul.mubr.msk.bf16.gmra.mxu0 %vm2060_vm0, %v5187_v2  ;;  %v5816_v9 = vpop.f32.mrf.mxu1  ;;  %5035 = vmatmul.mubr.msk.bf16.gmra.mxu1 %vm2060_vm0, %v5189_v3 }
 0x13a   : > { %4914 = vmatprep.mubr.msk.bf16.mxu0 %vm2060_vm0, %v5190_v4  ;;  %5038 = vmatprep.mubr.msk.bf16.mxu1 %vm2060_vm0, %v5192_v5 }
 0x13b   : > { %v5821_v10 = vpop.f32.mrf.mxu0  ;;  %v5823_v11 = vpop.f32.mrf.mxu1 }
 0x13d   : > { %v5825_v12 = vpop.f32.mrf.mxu0  ;;  %v5827_v13 = vpop.f32.mrf.mxu1 }
 0x13f   : > { %v5833_v18 = vpop.f32.mrf.mxu0  ;;  %v5835_v19 = vpop.f32.mrf.mxu1 }
 0x141   : > { %v5837_v20 = vpop.f32.mrf.mxu0  ;;  %4915 = vmatmul.mubr.msk.bf16.gmra.mxu0 %vm2060_vm0, %v5191_v14  ;;  %v5840_v21 = vpop.f32.mrf.mxu1  ;;  %5039 = vmatmul.mubr.msk.bf16.gmra.mxu1 %vm2060_vm0, %v5193_v15 }
 0x142   : > { %4918 = vmatprep.mubr.msk.bf16.mxu0 %vm2060_vm0, %v5194_v16  ;;  %5042 = vmatprep.mubr.msk.bf16.mxu1 %vm2060_vm0, %v5196_v17 }
 0x143   : > { %v5845_v22 = vpop.f32.mrf.mxu0  ;;  %v5847_v23 = vpop.f32.mrf.mxu1 }
 0x145   : > { %v5849_v24 = vpop.f32.mrf.mxu0  ;;  %v5851_v25 = vpop.f32.mrf.mxu1 }
 0x147   : > { %v5856_v29 = vpop.f32.mrf.mxu0  ;;  %v5858_v30 = vpop.f32.mrf.mxu1 }
 0x149   : > { %v5860_v31 = vpop.f32.mrf.mxu0  ;;  %4919 = vmatmul.mubr.msk.bf16.gmra.mxu0 %vm2060_vm0, %v5195_v26  ;;  %v5863_v32 = vpop.f32.mrf.mxu1  ;;  %5043 = vmatmul.mubr.msk.bf16.gmra.mxu1 %vm2060_vm0, %v5197_v27 }
 0x14a   : > { %6355 = vst [vmem:[#allocation5_spill] sm:$0xff] %v5863_v32  ;;  %4922 = vmatprep.mubr.msk.bf16.mxu0 %vm2060_vm0, %v5198_v28 }
 0x14b   : > { %v5867_v33 = vpop.f32.mrf.mxu0  ;;  %v5869_v34 = vpop.f32.mrf.mxu1 }
 0x14d   : > { %v5871_v35 = vpop.f32.mrf.mxu0  ;;  %v5873_v42 = vpop.f32.mrf.mxu1 }
 0x14f   : > { %v5876_v44 = vpop.f32.mrf.mxu0  ;;  %v5878_v45 = vpop.f32.mrf.mxu1 }
 0x151   : > { %v5880_v54 = vpop.f32.mrf.mxu0  ;;  %4923 = vmatmul.mubr.msk.bf16.gmra.mxu0 %vm2060_vm0, %v5199_v43  ;;  %v5883_v55 = vpop.f32.mrf.mxu1 }
 0x152   : > { %6356 = vst [vmem:[#allocation6_spill] sm:$0xff] %v5883_v55 }
 0x153   : > { %v5885_v56 = vpop.f32.mrf.mxu0  ;;  %v5887_v57 = vpop.f32.mrf.mxu1 }
 0x154   : > { %6357 = vst [vmem:[#allocation7_spill] sm:$0xff] %v5885_v56  ;;  %6358 = vst [vmem:[#allocation8_spill] sm:$0xff] %v5887_v57 }
 0x155   : > { %v5889_v2 = vpop.f32.mrf.mxu0  ;;  %v5891_v3 = vpop.f32.mrf.mxu1 }
 0x156   : > { %6359 = vst [vmem:[#allocation9_spill] sm:$0xff] %v5889_v2  ;;  %6360 = vst [vmem:[#allocation10_spill] sm:$0xff] %v5891_v3 }
 0x157   : > { %v5893_v4 = vpop.f32.mrf.mxu0  ;;  %v5895_v5 = vpop.f32.mrf.mxu1 }
 0x158   : > { %6361 = vst [vmem:[#allocation11_spill] sm:$0xff] %v5895_v5 }
 0x159   : > { %v5897_v14 = vpop.f32.mrf.mxu0  ;;  %v5899_v15 = vpop.f32.mrf.mxu1 }
 0x15a   : > { %6362 = vst [vmem:[#allocation12_spill] sm:$0xff] %v5897_v14  ;;  %6363 = vst [vmem:[#allocation13_spill] sm:$0xff] %v5899_v15 }
 0x15b   : > { %v5901_v16 = vpop.f32.mrf.mxu0  ;;  %v5903_v17 = vpop.f32.mrf.mxu1 }
 0x15c   : > { %6364 = vst [vmem:[#allocation14_spill] sm:$0xff] %v5901_v16  ;;  %6365 = vst [vmem:[#allocation15_spill] sm:$0xff] %v5903_v17 }
 0x15d   : > { %v5905_v26 = vpop.f32.mrf.mxu0  ;;  %v5907_v27 = vpop.f32.mrf.mxu1 }
 0x15e   : > { %6366 = vst [vmem:[#allocation16_spill] sm:$0xff] %v5905_v26  ;;  %6367 = vst [vmem:[#allocation17_spill] sm:$0xff] %v5907_v27 }
 0x15f   : > { %v5909_v28 = vpop.f32.mrf.mxu0  ;;  %v5911_v43 = vpop.f32.mrf.mxu1 }
 0x160   : > { %6368 = vst [vmem:[#allocation18_spill] sm:$0xff] %v5909_v28  ;;  %6369 = vst [vmem:[#allocation19_spill] sm:$0xff] %v5911_v43 }
 0x161   : > { %v5913_v46 = vpop.f32.mrf.mxu0  ;;  %v5915_v38 = vpop.f32.mrf.mxu1 }
 0x162   : > { %6370 = vst [vmem:[#allocation20_spill] sm:$0xff] %v5913_v46  ;;  %6371 = vst [vmem:[#allocation21_spill] sm:$0xff] %v5915_v38 }
 0x163   : > { %v5917_v55 = vpop.f32.mrf.mxu0  ;;  %v5919_v14 = vpop.f32.mrf.mxu1 }
 0x164   : > { %6372 = vst [vmem:[#allocation22_spill] sm:$0xff] %v5917_v55  ;;  %6373 = vst [vmem:[#allocation23_spill] sm:$0xff] %v5919_v14 }
 0x165   : > { %v5921_v15 = vpop.f32.mrf.mxu0  ;;  %v5923_v16 = vpop.f32.mrf.mxu1 }
 0x166   : > { %6374 = vst [vmem:[#allocation24_spill] sm:$0xff] %v5921_v15  ;;  %6375 = vst [vmem:[#allocation25_spill] sm:$0xff] %v5923_v16 }
 0x167   : > { %v5925_v17 = vpop.f32.mrf.mxu0  ;;  %v5927_v26 = vpop.f32.mrf.mxu1 }
 0x168   : > { %6376 = vst [vmem:[#allocation26_spill] sm:$0xff] %v5925_v17  ;;  %6377 = vst [vmem:[#allocation27_spill] sm:$0xff] %v5927_v26 }
 0x169   : > { %v5929_v27 = vpop.f32.mrf.mxu0  ;;  %v5931_v5 = vpop.f32.mrf.mxu1 }
 0x16a   : > { %6378 = vst [vmem:[#allocation28_spill] sm:$0xff] %v5929_v27  ;;  %6379 = vst [vmem:[#allocation29_spill] sm:$0xff] %v5931_v5 }
 0x16b   : > { %v5933_v43 = vpop.f32.mrf.mxu0  ;;  %v5935_v46 = vpop.f32.mrf.mxu1 }
 0x16c   : > { %6380 = vst [vmem:[#allocation30_spill] sm:$0xff] %v5933_v43  ;;  %6381 = vst [vmem:[#allocation31_spill] sm:$0xff] %v5935_v46 }
 0x16d   : > { %v5937_v38 = vpop.f32.mrf.mxu0  ;;  %v5939_v55 = vpop.f32.mrf.mxu1 }
 0x16e   : > { %6382 = vst [vmem:[#allocation32_spill] sm:$0xff] %v5937_v38  ;;  %6383 = vst [vmem:[#allocation33_spill] sm:$0xff] %v5939_v55 }
 0x16f   : > { %v5941_v14 = vpop.f32.mrf.mxu0  ;;  %v5943_v15 = vpop.f32.mrf.mxu1 }
 0x170   : > { %6384 = vst [vmem:[#allocation34_spill] sm:$0xff] %v5941_v14  ;;  %6385 = vst [vmem:[#allocation35_spill] sm:$0xff] %v5943_v15 }
 0x171   : > { %v5945_v16 = vpop.f32.mrf.mxu0  ;;  %v5947_v17 = vpop.f32.mrf.mxu1 }
 0x172   : > { %6386 = vst [vmem:[#allocation36_spill] sm:$0xff] %v5945_v16  ;;  %6387 = vst [vmem:[#allocation37_spill] sm:$0xff] %v5947_v17 }
 0x173   : > { %v5949_v26 = vpop.f32.mrf.mxu0  ;;  %v5951_v27 = vpop.f32.mrf.mxu1 }
 0x174   : > { %6388 = vst [vmem:[#allocation38_spill] sm:$0xff] %v5949_v26  ;;  %6389 = vst [vmem:[#allocation39_spill] sm:$0xff] %v5951_v27 }
 0x175   : > { %v5953_v5 = vpop.f32.mrf.mxu0  ;;  %v5955_v43 = vpop.f32.mrf.mxu1 }
 0x176   : > { %6390 = vst [vmem:[#allocation40_spill] sm:$0xff] %v5953_v5  ;;  %6391 = vst [vmem:[#allocation41_spill] sm:$0xff] %v5955_v43 }
 0x177   : > { %v5957_v46 = vpop.f32.mrf.mxu0  ;;  %v5959_v38 = vpop.f32.mrf.mxu1 }
 0x178   : > { %6392 = vst [vmem:[#allocation42_spill] sm:$0xff] %v5957_v46  ;;  %6393 = vst [vmem:[#allocation43_spill] sm:$0xff] %v5959_v38 }
 0x179   : > { %v5961_v55 = vpop.f32.mrf.mxu0  ;;  %v5963_v14 = vpop.f32.mrf.mxu1 }
 0x17a   : > { %6394 = vst [vmem:[#allocation44_spill] sm:$0xff] %v5961_v55  ;;  %6395 = vst [vmem:[#allocation45_spill] sm:$0xff] %v5963_v14 }
 0x17b   : > { %v5965_v15 = vpop.f32.mrf.mxu0  ;;  %v5967_v16 = vpop.f32.mrf.mxu1 }
 0x17c   : > { %6396 = vst [vmem:[#allocation46_spill] sm:$0xff] %v5965_v15  ;;  %6397 = vst [vmem:[#allocation47_spill] sm:$0xff] %v5967_v16 }
 0x17d   : > { %v5969_v17 = vpop.f32.mrf.mxu0  ;;  %v5971_v26 = vpop.f32.mrf.mxu1 }
 0x17e   : > { %6398 = vst [vmem:[#allocation48_spill] sm:$0xff] %v5969_v17  ;;  %6399 = vst [vmem:[#allocation49_spill] sm:$0xff] %v5971_v26 }
 0x17f   : > { %v5973_v27 = vpop.f32.mrf.mxu0  ;;  %v5975_v5 = vpop.f32.mrf.mxu1 }
 0x180   : > { %6400 = vst [vmem:[#allocation50_spill] sm:$0xff] %v5973_v27  ;;  %6401 = vst [vmem:[#allocation51_spill] sm:$0xff] %v5975_v5 }
 0x181   : > { %v5977_v43 = vpop.f32.mrf.mxu0  ;;  %v5979_v46 = vpop.f32.mrf.mxu1 }
 0x182   : > { %6402 = vst [vmem:[#allocation52_spill] sm:$0xff] %v5977_v43  ;;  %6403 = vst [vmem:[#allocation53_spill] sm:$0xff] %v5979_v46 }
 0x183   : > { %v5981_v38 = vpop.f32.mrf.mxu0  ;;  %v5983_v55 = vpop.f32.mrf.mxu1 }
 0x184   : > { %6404 = vst [vmem:[#allocation54_spill] sm:$0xff] %v5981_v38  ;;  %6405 = vst [vmem:[#allocation55_spill] sm:$0xff] %v5983_v55 }
 0x185   : > { %v5985_v14 = vpop.f32.mrf.mxu0  ;;  %v5987_v15 = vpop.f32.mrf.mxu1 }
 0x186   : > { %6406 = vst [vmem:[#allocation56_spill] sm:$0xff] %v5985_v14  ;;  %6407 = vst [vmem:[#allocation57_spill] sm:$0xff] %v5987_v15 }
 0x187   : > { %v5989_v16 = vpop.f32.mrf.mxu0  ;;  %v5991_v17 = vpop.f32.mrf.mxu1 }
 0x188   : > { %6408 = vst [vmem:[#allocation58_spill] sm:$0xff] %v5989_v16  ;;  %6409 = vst [vmem:[#allocation59_spill] sm:$0xff] %v5991_v17 }
 0x189   : > { %v5993_v26 = vpop.f32.mrf.mxu0  ;;  %v5995_v27 = vpop.f32.mrf.mxu1 }
 0x18a   : > { %6410 = vst [vmem:[#allocation60_spill] sm:$0xff] %v5993_v26  ;;  %6411 = vst [vmem:[#allocation61_spill] sm:$0xff] %v5995_v27 }
 0x18b   : > { %v5997_v5 = vpop.f32.mrf.mxu0  ;;  %v5999_v43 = vpop.f32.mrf.mxu1 }
 0x18c   : > { %6412 = vst [vmem:[#allocation62_spill] sm:$0xff] %v5997_v5  ;;  %6413 = vst [vmem:[#allocation63_spill] sm:$0xff] %v5999_v43 }
 0x18d   : > { %v6001_v46 = vpop.f32.mrf.mxu0  ;;  %v6003_v38 = vpop.f32.mrf.mxu1 }
 0x18e   : > { %6414 = vst [vmem:[#allocation64_spill] sm:$0xff] %v6001_v46  ;;  %6415 = vst [vmem:[#allocation65_spill] sm:$0xff] %v6003_v38 }
 0x18f   : > { %v6005_v55 = vpop.f32.mrf.mxu0  ;;  %v6007_v14 = vpop.f32.mrf.mxu1 }
 0x190   : > { %6416 = vst [vmem:[#allocation66_spill] sm:$0xff] %v6005_v55  ;;  %6417 = vst [vmem:[#allocation67_spill] sm:$0xff] %v6007_v14 }
 0x191   : > { %v6009_v15 = vpop.f32.mrf.mxu0  ;;  %v6011_v17 = vpop.f32.mrf.mxu1 }
 0x192   : > { %6418 = vst [vmem:[#allocation68_spill] sm:$0xff] %v6009_v15  ;;  %6419 = vst [vmem:[#allocation69_spill] sm:$0xff] %v6011_v17 }
 0x193   : > { %v6013_v26 = vpop.f32.mrf.mxu0  ;;  %v6015_v27 = vpop.f32.mrf.mxu1 }
 0x194   : > { %6420 = vst [vmem:[#allocation70_spill] sm:$0xff] %v6013_v26  ;;  %6421 = vst [vmem:[#allocation71_spill] sm:$0xff] %v6015_v27 }
 0x195   : > { %v6017_v5 = vpop.f32.mrf.mxu0  ;;  %v6019_v43 = vpop.f32.mrf.mxu1 }
 0x196   : > { %6422 = vst [vmem:[#allocation72_spill] sm:$0xff] %v6017_v5  ;;  %6423 = vst [vmem:[#allocation73_spill] sm:$0xff] %v6019_v43 }
 0x197   : > { %v6021_v46 = vpop.f32.mrf.mxu0  ;;  %v6023_v38 = vpop.f32.mrf.mxu1 }
 0x198   : > { %6424 = vst [vmem:[#allocation74_spill] sm:$0xff] %v6021_v46  ;;  %6425 = vst [vmem:[#allocation75_spill] sm:$0xff] %v6023_v38 }
 0x199   : > { %v6025_v55 = vpop.f32.mrf.mxu0  ;;  %v4988_v14 = vpop.f32.mrf.mxu1 }
 0x19a   : > { %6426 = vst [vmem:[#allocation76_spill] sm:$0xff] %v6025_v55 }
 0x19b   : > { %v6027_v16 = vpop.f32.mrf.mxu0  ;;  %v6029_v15 = vpop.f32.mrf.mxu1 }
 0x19c   : > { %6427 = vst [vmem:[#allocation77_spill] sm:$0xff] %v6027_v16  ;;  %6428 = vst [vmem:[#allocation78_spill] sm:$0xff] %v6029_v15  ;;  %v6041_v15 = vld [vmem:[%s6351_s2] ss:$0 sm:$0xff] }
 0x19d   : > { %v4865_v17 = vpop.f32.mrf.mxu0  ;;  %v4989_v3 = vpop.f32.mrf.mxu1 }
 0x19e   : > { %v3442_v26 = vmax.f32 %v5741_v36, %v4865_v17 }
 0x19f   : > { %v6034_v5 = vpop.f32.mrf.mxu0  ;;  %v3200_v43 = vpop.f32.mrf.mxu1 }
 0x1a0   : > { %6429 = vst [vmem:[#allocation79_spill] sm:$0xff] %v6034_v5  ;;  %v3443_v27 = vmax.f32 %v3442_v26, %v5751_v39 }
 0x1a1   : > { %v4868_v46 = vpop.f32.mrf.mxu0  ;;  %v4992_v38 = vpop.f32.mrf.mxu1 }
 0x1a2   : > { %v3451_v55 = vmax.f32 %v5785_v58, %v4868_v46  ;;  %v3444_v2 = vmax.f32 %v3443_v27, %v3200_v43 }
 0x1a3   : > { %v2717_v16 = vpop.f32.mrf.mxu0  ;;  %v3213_v28 = vpop.f32.mrf.mxu1 }
 0x1a4   : > { %v3445_v36 = vmax.f32 %v5753_v40, %v2717_v16  ;;  %v3452_v17 = vmax.f32 %v3451_v55, %v5755_v41  ;;  %v3628_v58 = vadd.f32 %v6041_v15, %v3444_v2 }
 0x1a5   : > { %v4869_v5 = vpop.f32.mrf.mxu0  ;;  %v6045_v32 = vpop.f32.mrf.mxu1 }
 0x1a6   : > { %v3446_v39 = vmax.f32 %v3445_v36, %v5763_v47  ;;  %v3454_v46 = vmax.f32 %v5765_v48, %v4869_v5  ;;  %v3453_v26 = vmax.f32 %v3452_v17, %v3213_v28  ;;  %v3689_v5 = vmax.f32 %v3628_v58, 0.0 }
 0x1a7   : > { %v2720_v27 = vpop.f32.mrf.mxu0  ;;  %v3216_v43 = vpop.f32.mrf.mxu1 }
 0x1a8   : > { %v3447_v57 = vmax.f32 %v3446_v39, %v4988_v14  ;;  %v3448_v56 = vmax.f32 %v5773_v50, %v2720_v27  ;;  %v3455_v40 = vmax.f32 %v3454_v46, %v5775_v51  ;;  %v3631_v2 = vadd.f32 %v6041_v15, %v3453_v26 }
 0x1a9   : > { %v4872_v16 = vpop.f32.mrf.mxu0  ;;  %v6052_v41 = vpop.f32.mrf.mxu1 }
 0x1aa   : > { %v3629_v55 = vadd.f32 %v6041_v15, %v3447_v57  ;;  %v3449_v47 = vmax.f32 %v3448_v56, %v5744_v37  ;;  %v3463_v48 = vmax.f32 %v5809_v6, %v4872_v16  ;;  %v3456_v28 = vmax.f32 %v3455_v40, %v3216_v43 }
 0x1ab   : > { %v2733_v36 = vpop.f32.mrf.mxu0  ;;  %v3229_v14 = vpop.f32.mrf.mxu1  ;;  %v3692_v58 = vmax.f32 %v3631_v2, 0.0 }
 0x1ac   : > { %v3690_v17 = vmax.f32 %v3629_v55, 0.0  ;;  %v3450_v50 = vmax.f32 %v3449_v47, %v4989_v3  ;;  %v3457_v51 = vmax.f32 %v5777_v52, %v2733_v36  ;;  %v3464_v39 = vmax.f32 %v3463_v48, %v5779_v53 }
 0x1ad   : > { %v4873_v37 = vpop.f32.mrf.mxu0  ;;  %v6065_v6 = vpop.f32.mrf.mxu1  ;;  %v3632_v52 = vadd.f32 %v6041_v15, %v3456_v28 }
 0x1ae   : > { %v4503_v56 = vpack.c.bf16 %v3690_v17, %v3689_v5  ;;  %v3630_v57 = vadd.f32 %v6041_v15, %v3450_v50  ;;  %v3458_v46 = vmax.f32 %v3457_v51, %v5787_v59  ;;  %v3466_v3 = vmax.f32 %v5789_v60, %v4873_v37 }
 0x1af   : > { %v3465_v53 = vmax.f32 %v3464_v39, %v3229_v14  ;;  %v2736_v26 = vpop.f32.mrf.mxu0  ;;  %v3232_v27 = vpop.f32.mrf.mxu1  ;;  %v3693_v28 = vmax.f32 %v3632_v52, 0.0 }
 0x1b0   : > { %4645 = vst [vmem:[%s6063_s14 + $0x8] sm:$0xff] %v4503_v56   ;;  %v3691_v43 = vmax.f32 %v3630_v57, 0.0  ;;  %v3459_v40 = vmax.f32 %v3458_v46, %v4992_v38  ;;  %v3460_v16 = vmax.f32 %v5797_v62, %v2736_v26  ;;  %v3467_v55 = vmax.f32 %v3466_v3, %v5799_v63 }
 0x1b1   : > { %v4876_v47 = vpop.f32.mrf.mxu0  ;;  %v6074_v48 = vpop.f32.mrf.mxu1  ;;  %v3635_v36 = vadd.f32 %v6041_v15, %v3465_v53 }
 0x1b2   : > { %v4508_v59 = vpack.c.bf16 %v3692_v58, %v3691_v43  ;;  %v3633_v60 = vadd.f32 %v6041_v15, %v3459_v40  ;;  %v3461_v5 = vmax.f32 %v3460_v16, %v5768_v49  ;;  %v3475_v2 = vmax.f32 %v5833_v18, %v4876_v47 }
 0x1b3   : > { %v3468_v14 = vmax.f32 %v3467_v55, %v3232_v27  ;;  %v2749_v17 = vpop.f32.mrf.mxu0  ;;  %v3245_v38 = vpop.f32.mrf.mxu1  ;;  %v3696_v46 = vmax.f32 %v3635_v36, 0.0 }
 0x1b4   : > { %4646 = vst [vmem:[%s6063_s14 + $0x10] sm:$0xff] %v4508_v59   ;;  %v3694_v62 = vmax.f32 %v3633_v60, 0.0  ;;  %v3462_v63 = vmax.f32 %v3461_v5, %v6045_v32  ;;  %v3469_v50 = vmax.f32 %v5801_v0, %v2749_v17  ;;  %v3476_v51 = vmax.f32 %v3475_v2, %v5803_v1 }
 0x1b5   : > { %v4877_v39 = vpop.f32.mrf.mxu0  ;;  %v6084_v37 = vpop.f32.mrf.mxu1  ;;  %v3636_v3 = vadd.f32 %v6041_v15, %v3468_v14 }
 0x1b6   : > { %v4513_v49 = vpack.c.bf16 %v3694_v62, %v3693_v28  ;;  %v3634_v18 = vadd.f32 %v6041_v15, %v3462_v63  ;;  %v3470_v56 = vmax.f32 %v3469_v50, %v5811_v7  ;;  %v3478_v57 = vmax.f32 %v5813_v8, %v4877_v39 }
 0x1b7   : > { %v3477_v58 = vmax.f32 %v3476_v51, %v3245_v38  ;;  %v2752_v52 = vpop.f32.mrf.mxu0  ;;  %v3248_v32 = vpop.f32.mrf.mxu1  ;;  %v3697_v55 = vmax.f32 %v3636_v3, 0.0 }
 0x1b8   : > { %4647 = vst [vmem:[%s6063_s14 + $0x18] sm:$0xff] %v4513_v49   ;;  %v3695_v0 = vmax.f32 %v3634_v18, 0.0  ;;  %v3471_v1 = vmax.f32 %v3470_v56, %v6052_v41  ;;  %v3472_v53 = vmax.f32 %v5821_v10, %v2752_v52  ;;  %v3479_v26 = vmax.f32 %v3478_v57, %v5823_v11 }
 0x1b9   : > { %v4880_v27 = vpop.f32.mrf.mxu0  ;;  %v6094_v43 = vpop.f32.mrf.mxu1  ;;  %v3639_v47 = vadd.f32 %v6041_v15, %v3477_v58 }
 0x1ba   : > { %v4518_v7 = vpack.c.bf16 %v3696_v46, %v3695_v0  ;;  %v3637_v8 = vadd.f32 %v6041_v15, %v3471_v1  ;;  %v3473_v40 = vmax.f32 %v3472_v53, %v5792_v61  ;;  %v3487_v16 = vmax.f32 %v5856_v29, %v4880_v27 }
 0x1bb   : > { %v3480_v59 = vmax.f32 %v3479_v26, %v3248_v32  ;;  %v2765_v60 = vpop.f32.mrf.mxu0  ;;  %v3261_v41 = vpop.f32.mrf.mxu1  ;;  %v3700_v38 = vmax.f32 %v3639_v47, 0.0 }
 0x1bc   : > { %4648 = vst [vmem:[%s6063_s14 + $0x20] sm:$0xff] %v4518_v7   ;;  %v3698_v10 = vmax.f32 %v3637_v8, 0.0  ;;  %v3474_v11 = vmax.f32 %v3473_v40, %v6065_v6  ;;  %v3481_v5 = vmax.f32 %v5825_v12, %v2765_v60  ;;  %v3488_v2 = vmax.f32 %v3487_v16, %v5827_v13 }
 0x1bd   : > { %v4881_v28 = vpop.f32.mrf.mxu0  ;;  %v6104_v36 = vpop.f32.mrf.mxu1  ;;  %v3640_v62 = vadd.f32 %v6041_v15, %v3480_v59 }
 0x1be   : > { %v4523_v61 = vpack.c.bf16 %v3698_v10, %v3697_v55  ;;  %v3638_v29 = vadd.f32 %v6041_v15, %v3474_v11  ;;  %v3482_v14 = vmax.f32 %v3481_v5, %v5835_v19  ;;  %v3490_v17 = vmax.f32 %v5837_v20, %v4881_v28 }
 0x1bf   : > { %v3489_v63 = vmax.f32 %v3488_v2, %v3261_v41  ;;  %v2768_v50 = vpop.f32.mrf.mxu0  ;;  %v3264_v6 = vpop.f32.mrf.mxu1  ;;  %v3701_v46 = vmax.f32 %v3640_v62, 0.0 }
 0x1c0   : > { %4649 = vst [vmem:[%s6063_s14 + $0x28] sm:$0xff] %v4523_v61   ;;  %v3699_v12 = vmax.f32 %v3638_v29, 0.0  ;;  %v3483_v13 = vmax.f32 %v3482_v14, %v6074_v48  ;;  %v3484_v51 = vmax.f32 %v5845_v22, %v2768_v50  ;;  %v3491_v39 = vmax.f32 %v3490_v17, %v5847_v23 }
 0x1c1   : > { %v4884_v49 = vpop.f32.mrf.mxu0  ;;  %v6114_v18 = vpop.f32.mrf.mxu1  ;;  %v3643_v3 = vadd.f32 %v6041_v15, %v3489_v63 }
 0x1c2   : > { %v4528_v19 = vpack.c.bf16 %v3700_v38, %v3699_v12  ;;  %v3641_v20 = vadd.f32 %v6041_v15, %v3483_v13  ;;  %v3485_v56 = vmax.f32 %v3484_v51, %v5816_v9  ;;  %v3499_v57 = vmax.f32 %v5876_v44, %v4884_v49  ;;  %v6430_v13 = vld [vmem:[#allocation7_spill] sm:$0xff] }
 0x1c3   : > { %v3492_v58 = vmax.f32 %v3491_v39, %v3264_v6  ;;  %v2781_v52 = vpop.f32.mrf.mxu0  ;;  %v3277_v48 = vpop.f32.mrf.mxu1  ;;  %v3704_v7 = vmax.f32 %v3643_v3, 0.0  ;;  %v6431_v39 = vld [vmem:[#allocation8_spill] sm:$0xff] }
 0x1c4   : > { %4650 = vst [vmem:[%s6063_s14 + $0x30] sm:$0xff] %v4528_v19   ;;  %v3702_v22 = vmax.f32 %v3641_v20, 0.0  ;;  %v3486_v23 = vmax.f32 %v3485_v56, %v6084_v37  ;;  %v3493_v32 = vmax.f32 %v5849_v24, %v2781_v52  ;;  %v3500_v0 = vmax.f32 %v3499_v57, %v5851_v25  ;;  %v6432_v56 = vld [vmem:[#allocation5_spill] sm:$0xff] }
 0x1c5   : > { %v4885_v1 = vpop.f32.mrf.mxu0  ;;  %v6124_v53 = vpop.f32.mrf.mxu1  ;;  %v3644_v8 = vadd.f32 %v6041_v15, %v3492_v58 }
 0x1c6   : > { %v4533_v9 = vpack.c.bf16 %v3702_v22, %v3701_v46  ;;  %v3642_v44 = vadd.f32 %v6041_v15, %v3486_v23  ;;  %v3494_v26 = vmax.f32 %v3493_v32, %v5858_v30  ;;  %v3502_v27 = vmax.f32 %v5860_v31, %v4885_v1  ;;  %v6433_v46 = vld [vmem:[#allocation18_spill] sm:$0xff] }
 0x1c7   : > { %v3501_v40 = vmax.f32 %v3500_v0, %v3277_v48  ;;  %v2784_v16 = vpop.f32.mrf.mxu0  ;;  %v3280_v37 = vpop.f32.mrf.mxu1  ;;  %v3705_v11 = vmax.f32 %v3644_v8, 0.0  ;;  %v6434_v0 = vld [vmem:[#allocation9_spill] sm:$0xff] }
 0x1c8   : > { %4651 = vst [vmem:[%s6063_s14 + $0x38] sm:$0xff] %v4533_v9   ;;  %v3703_v24 = vmax.f32 %v3642_v44, 0.0  ;;  %v3495_v25 = vmax.f32 %v3494_v26, %v6094_v43  ;;  %v3496_v55 = vmax.f32 %v5867_v33, %v2784_v16  ;;  %v3503_v47 = vmax.f32 %v3502_v27, %v5869_v34  ;;  %v6435_v9 = vld [vmem:[#allocation10_spill] sm:$0xff] }
 0x1c9   : > { %v4888_v59 = vpop.f32.mrf.mxu0  ;;  %v6134_v60 = vpop.f32.mrf.mxu1  ;;  %v3647_v5 = vadd.f32 %v6041_v15, %v3501_v40  ;;  %v6436_v40 = vld [vmem:[#allocation11_spill] sm:$0xff] }
 0x1ca   : > { %v4538_v30 = vpack.c.bf16 %v3704_v7, %v3703_v24  ;;  %v3645_v31 = vadd.f32 %v6041_v15, %v3495_v25  ;;  %v3497_v41 = vmax.f32 %v3496_v55, %v5840_v21  ;;  %v3511_v10 = vmax.f32 %v5893_v4, %v4888_v59 }
 0x1cb   : > { %v3504_v2 = vmax.f32 %v3503_v47, %v3280_v37  ;;  %v2797_v28 = vpop.f32.mrf.mxu0  ;;  %v3293_v43 = vpop.f32.mrf.mxu1  ;;  %v3708_v63 = vmax.f32 %v3647_v5, 0.0  ;;  %v6437_v37 = vld [vmem:[#allocation12_spill] sm:$0xff] }
 0x1cc   : > { %4652 = vst [vmem:[%s6063_s14 + $0x40] sm:$0xff] %v4538_v30   ;;  %v3706_v33 = vmax.f32 %v3645_v31, 0.0  ;;  %v3498_v34 = vmax.f32 %v3497_v41, %v6104_v36  ;;  %v3505_v61 = vmax.f32 %v5871_v35, %v2797_v28  ;;  %v3512_v29 = vmax.f32 %v3511_v10, %v5873_v42  ;;  %v6438_v41 = vld [vmem:[#allocation14_spill] sm:$0xff] }
 0x1cd   : > { %v4889_v14 = vpop.f32.mrf.mxu0  ;;  %v6144_v17 = vpop.f32.mrf.mxu1  ;;  %v3648_v50 = vadd.f32 %v6041_v15, %v3504_v2 }
 0x1ce   : > { %v4543_v21 = vpack.c.bf16 %v3706_v33, %v3705_v11  ;;  %v3646_v4 = vadd.f32 %v6041_v15, %v3498_v34  ;;  %v3506_v38 = vmax.f32 %v3505_v61, %v5878_v45  ;;  %v3514_v62 = vmax.f32 %v5880_v54, %v4889_v14  ;;  %v6439_v11 = vld [vmem:[#allocation15_spill] sm:$0xff]  ;;  %v6440_v34 = vld [vmem:[#allocation6_spill] sm:$0xff] }
 0x1cf   : > { %v3513_v6 = vmax.f32 %v3512_v29, %v3293_v43  ;;  %v2800_v12 = vpop.f32.mrf.mxu0  ;;  %v3296_v36 = vpop.f32.mrf.mxu1  ;;  %v3709_v58 = vmax.f32 %v3648_v50, 0.0  ;;  %v6441_v29 = vld [vmem:[#allocation26_spill] sm:$0xff] }
 0x1d0   : > { %4653 = vst [vmem:[%s6063_s14 + $0x48] sm:$0xff] %v4543_v21   ;;  %v3707_v35 = vmax.f32 %v3646_v4, 0.0  ;;  %v3507_v42 = vmax.f32 %v3506_v38, %v6114_v18  ;;  %v3508_v51 = vmax.f32 %v6430_v13, %v2800_v12  ;;  %v3515_v49 = vmax.f32 %v3514_v62, %v6431_v39 }
 0x1d1   : > { %v4892_v19 = vpop.f32.mrf.mxu0  ;;  %v6154_v20 = vpop.f32.mrf.mxu1  ;;  %v3651_v52 = vadd.f32 %v6041_v15, %v3513_v6  ;;  %v6442_v6 = vld [vmem:[#allocation16_spill] sm:$0xff] }
 0x1d2   : > { %v4548_v45 = vpack.c.bf16 %v3708_v63, %v3707_v35  ;;  %v3649_v54 = vadd.f32 %v6041_v15, %v3507_v42  ;;  %v3509_v57 = vmax.f32 %v3508_v51, %v6432_v56  ;;  %v3523_v3 = vmax.f32 %v6433_v46, %v4892_v19 }
 0x1d3   : > { %v3516_v48 = vmax.f32 %v3515_v49, %v3296_v36  ;;  %v2813_v22 = vpop.f32.mrf.mxu0  ;;  %v3309_v18 = vpop.f32.mrf.mxu1  ;;  %v3712_v25 = vmax.f32 %v3651_v52, 0.0  ;;  %v6443_v36 = vld [vmem:[#allocation17_spill] sm:$0xff]  ;;  %v6444_v49 = vld [vmem:[#allocation19_spill] sm:$0xff] }
 0x1d4   : > { %4654 = vst [vmem:[%s6063_s14 + $0x50] sm:$0xff] %v4548_v45   ;;  %v3710_v23 = vmax.f32 %v3649_v54, 0.0  ;;  %v3510_v32 = vmax.f32 %v3509_v57, %v6124_v53  ;;  %v3517_v1 = vmax.f32 %v6434_v0, %v2813_v22  ;;  %v3524_v44 = vmax.f32 %v3523_v3, %v6435_v9  ;;  %v6445_v45 = vld [vmem:[#allocation20_spill] sm:$0xff] }
 0x1d5   : > { %v4893_v26 = vpop.f32.mrf.mxu0  ;;  %v6164_v27 = vpop.f32.mrf.mxu1  ;;  %v3652_v55 = vadd.f32 %v6041_v15, %v3516_v48  ;;  %v6446_v48 = vld [vmem:[#allocation22_spill] sm:$0xff] }
 0x1d6   : > { %v4553_v7 = vpack.c.bf16 %v3710_v23, %v3709_v58  ;;  %v3650_v8 = vadd.f32 %v6041_v15, %v3510_v32  ;;  %v3518_v16 = vmax.f32 %v3517_v1, %v6436_v40  ;;  %v3526_v24 = vmax.f32 %v6437_v37, %v4893_v26 }
 0x1d7   : > { %v3525_v47 = vmax.f32 %v3524_v44, %v3309_v18  ;;  %v2816_v59 = vpop.f32.mrf.mxu0  ;;  %v3312_v53 = vpop.f32.mrf.mxu1  ;;  %v3713_v21 = vmax.f32 %v3652_v55, 0.0  ;;  %v6447_v18 = vld [vmem:[#allocation23_spill] sm:$0xff]  ;;  %v6448_v44 = vld [vmem:[#allocation13_spill] sm:$0xff] }
 0x1d8   : > { %4655 = vst [vmem:[%s6063_s14 + $0x58] sm:$0xff] %v4553_v7   ;;  %v3711_v30 = vmax.f32 %v3650_v8, 0.0  ;;  %v3519_v31 = vmax.f32 %v3518_v16, %v6134_v60  ;;  %v3520_v10 = vmax.f32 %v6438_v41, %v2816_v59  ;;  %v3527_v5 = vmax.f32 %v3526_v24, %v6439_v11  ;;  %v6449_v7 = vld [vmem:[#allocation34_spill] sm:$0xff] }
 0x1d9   : > { %v4896_v2 = vpop.f32.mrf.mxu0  ;;  %v6174_v28 = vpop.f32.mrf.mxu1  ;;  %v3655_v4 = vadd.f32 %v6041_v15, %v3525_v47  ;;  %v6450_v47 = vld [vmem:[#allocation24_spill] sm:$0xff] }
 0x1da   : > { %v4558_v43 = vpack.c.bf16 %v3712_v25, %v3711_v30  ;;  %v3653_v33 = vadd.f32 %v6041_v15, %v3519_v31  ;;  %v3521_v61 = vmax.f32 %v3520_v10, %v6440_v34  ;;  %v3535_v14 = vmax.f32 %v6441_v29, %v4896_v2 }
 0x1db   : > { %v3528_v38 = vmax.f32 %v3527_v5, %v3312_v53  ;;  %v2829_v62 = vpop.f32.mrf.mxu0  ;;  %v3325_v60 = vpop.f32.mrf.mxu1  ;;  %v3716_v56 = vmax.f32 %v3655_v4, 0.0  ;;  %v6451_v53 = vld [vmem:[#allocation25_spill] sm:$0xff]  ;;  %v6452_v5 = vld [vmem:[#allocation27_spill] sm:$0xff] }
 0x1dc   : > { %4656 = vst [vmem:[%s6063_s14 + $0x60] sm:$0xff] %v4558_v43   ;;  %v3714_v63 = vmax.f32 %v3653_v33, 0.0  ;;  %v3522_v50 = vmax.f32 %v3521_v61, %v6144_v17  ;;  %v3529_v12 = vmax.f32 %v6442_v6, %v2829_v62  ;;  %v3536_v35 = vmax.f32 %v3535_v14, %v6443_v36  ;;  %v6453_v43 = vld [vmem:[#allocation28_spill] sm:$0xff] }
 0x1dd   : > { %v4897_v42 = vpop.f32.mrf.mxu0  ;;  %v6184_v13 = vpop.f32.mrf.mxu1  ;;  %v3656_v57 = vadd.f32 %v6041_v15, %v3528_v38  ;;  %v6454_v38 = vld [vmem:[#allocation30_spill] sm:$0xff] }
 0x1de   : > { %v4563_v51 = vpack.c.bf16 %v3714_v63, %v3713_v21  ;;  %v3654_v39 = vadd.f32 %v6041_v15, %v3522_v50  ;;  %v3530_v19 = vmax.f32 %v3529_v12, %v6444_v49  ;;  %v3538_v54 = vmax.f32 %v6445_v45, %v4897_v42 }
 0x1df   : > { %v3537_v46 = vmax.f32 %v3536_v35, %v3325_v60  ;;  %v2832_v3 = vpop.f32.mrf.mxu0  ;;  %v3328_v17 = vpop.f32.mrf.mxu1  ;;  %v3717_v40 = vmax.f32 %v3656_v57, 0.0  ;;  %v6455_v60 = vld [vmem:[#allocation31_spill] sm:$0xff]  ;;  %v6456_v35 = vld [vmem:[#allocation21_spill] sm:$0xff] }
 0x1e0   : > { %4657 = vst [vmem:[%s6063_s14 + $0x68] sm:$0xff] %v4563_v51   ;;  %v3715_v58 = vmax.f32 %v3654_v39, 0.0  ;;  %v3531_v52 = vmax.f32 %v3530_v19, %v6154_v20  ;;  %v3532_v22 = vmax.f32 %v6446_v48, %v2832_v3  ;;  %v3539_v23 = vmax.f32 %v3538_v54, %v6447_v18  ;;  %v6457_v51 = vld [vmem:[#allocation42_spill] sm:$0xff] }
 0x1e1   : > { %v4900_v32 = vpop.f32.mrf.mxu0  ;;  %v6194_v0 = vpop.f32.mrf.mxu1  ;;  %v3659_v16 = vadd.f32 %v6041_v15, %v3537_v46  ;;  %v6458_v46 = vld [vmem:[#allocation32_spill] sm:$0xff] }
 0x1e2   : > { %v4568_v1 = vpack.c.bf16 %v3716_v56, %v3715_v58  ;;  %v3657_v9 = vadd.f32 %v6041_v15, %v3531_v52  ;;  %v3533_v26 = vmax.f32 %v3532_v22, %v6448_v44  ;;  %v3547_v8 = vmax.f32 %v6449_v7, %v4900_v32 }
 0x1e3   : > { %v3540_v37 = vmax.f32 %v3539_v23, %v3328_v17  ;;  %v2845_v24 = vpop.f32.mrf.mxu0  ;;  %v3341_v20 = vpop.f32.mrf.mxu1  ;;  %v3720_v34 = vmax.f32 %v3659_v16, 0.0  ;;  %v6459_v17 = vld [vmem:[#allocation33_spill] sm:$0xff]  ;;  %v6460_v23 = vld [vmem:[#allocation35_spill] sm:$0xff] }
 0x1e4   : > { %4658 = vst [vmem:[%s6063_s14 + $0x70] sm:$0xff] %v4568_v1   ;;  %v3718_v25 = vmax.f32 %v3657_v9, 0.0  ;;  %v3534_v55 = vmax.f32 %v3533_v26, %v6164_v27  ;;  %v3541_v59 = vmax.f32 %v6450_v47, %v2845_v24  ;;  %v3548_v30 = vmax.f32 %v3547_v8, %v6451_v53  ;;  %v6461_v1 = vld [vmem:[#allocation36_spill] sm:$0xff] }
 0x1e5   : > { %v4901_v31 = vpop.f32.mrf.mxu0  ;;  %v6204_v41 = vpop.f32.mrf.mxu1  ;;  %v3660_v61 = vadd.f32 %v6041_v15, %v3540_v37  ;;  %v6462_v37 = vld [vmem:[#allocation38_spill] sm:$0xff] }
 0x1e6   : > { %v4573_v10 = vpack.c.bf16 %v3718_v25, %v3717_v40  ;;  %v3658_v11 = vadd.f32 %v6041_v15, %v3534_v55  ;;  %v3542_v2 = vmax.f32 %v3541_v59, %v6452_v5  ;;  %v3550_v33 = vmax.f32 %v6453_v43, %v4901_v31 }
 0x1e7   : > { %v3549_v29 = vmax.f32 %v3548_v30, %v3341_v20  ;;  %v2848_v14 = vpop.f32.mrf.mxu0  ;;  %v3344_v27 = vpop.f32.mrf.mxu1  ;;  %v3721_v49 = vmax.f32 %v3660_v61, 0.0  ;;  %v6463_v20 = vld [vmem:[#allocation39_spill] sm:$0xff]  ;;  %v6464_v30 = vld [vmem:[#allocation29_spill] sm:$0xff] }
 0x1e8   : > { %4659 = vst [vmem:[%s6063_s14 + $0x78] sm:$0xff] %v4573_v10   ;;  %v3719_v21 = vmax.f32 %v3658_v11, 0.0  ;;  %v3543_v4 = vmax.f32 %v3542_v2, %v6174_v28  ;;  %v3544_v62 = vmax.f32 %v6454_v38, %v2848_v14  ;;  %v3551_v63 = vmax.f32 %v3550_v33, %v6455_v60  ;;  %v6465_v10 = vld [vmem:[#allocation50_spill] sm:$0xff] }
 0x1e9   : > { %v4904_v50 = vpop.f32.mrf.mxu0  ;;  %v6214_v6 = vpop.f32.mrf.mxu1  ;;  %v3663_v19 = vadd.f32 %v6041_v15, %v3549_v29  ;;  %v6466_v29 = vld [vmem:[#allocation40_spill] sm:$0xff] }
 0x1ea   : > { %v4578_v12 = vpack.c.bf16 %v3720_v34, %v3719_v21  ;;  %v3661_v36 = vadd.f32 %v6041_v15, %v3543_v4  ;;  %v3545_v42 = vmax.f32 %v3544_v62, %v6456_v35  ;;  %v3559_v39 = vmax.f32 %v6457_v51, %v4904_v50 }
 0x1eb   : > { %v3552_v45 = vmax.f32 %v3551_v63, %v3344_v27  ;;  %v2861_v54 = vpop.f32.mrf.mxu0  ;;  %v3357_v28 = vpop.f32.mrf.mxu1  ;;  %v3724_v44 = vmax.f32 %v3663_v19, 0.0  ;;  %v6467_v27 = vld [vmem:[#allocation41_spill] sm:$0xff]  ;;  %v6468_v63 = vld [vmem:[#allocation43_spill] sm:$0xff] }
 0x1ec   : > { %4660 = vst [vmem:[%s6063_s14 + $0x80] sm:$0xff] %v4578_v12   ;;  %v3722_v56 = vmax.f32 %v3661_v36, 0.0  ;;  %v3546_v57 = vmax.f32 %v3545_v42, %v6184_v13  ;;  %v3553_v3 = vmax.f32 %v6458_v46, %v2861_v54  ;;  %v3560_v58 = vmax.f32 %v3559_v39, %v6459_v17  ;;  %v6469_v12 = vld [vmem:[#allocation44_spill] sm:$0xff] }
 0x1ed   : > { %v4905_v52 = vpop.f32.mrf.mxu0  ;;  %v6224_v48 = vpop.f32.mrf.mxu1  ;;  %v3664_v26 = vadd.f32 %v6041_v15, %v3552_v45  ;;  %v6470_v45 = vld [vmem:[#allocation46_spill] sm:$0xff] }
 0x1ee   : > { %v4583_v22 = vpack.c.bf16 %v3722_v56, %v3721_v49  ;;  %v3662_v18 = vadd.f32 %v6041_v15, %v3546_v57  ;;  %v3554_v32 = vmax.f32 %v3553_v3, %v6460_v23  ;;  %v3562_v9 = vmax.f32 %v6461_v1, %v4905_v52 }
 0x1ef   : > { %v3561_v7 = vmax.f32 %v3560_v58, %v3357_v28  ;;  %v2864_v8 = vpop.f32.mrf.mxu0  ;;  %v3360_v13 = vpop.f32.mrf.mxu1  ;;  %v3725_v5 = vmax.f32 %v3664_v26, 0.0  ;;  %v6471_v28 = vld [vmem:[#allocation47_spill] sm:$0xff]  ;;  %v6472_v58 = vld [vmem:[#allocation37_spill] sm:$0xff] }
 0x1f0   : > { %4661 = vst [vmem:[%s6063_s14 + $0x88] sm:$0xff] %v4583_v22   ;;  %v3723_v40 = vmax.f32 %v3662_v18, 0.0  ;;  %v3555_v16 = vmax.f32 %v3554_v32, %v6194_v0  ;;  %v3556_v24 = vmax.f32 %v6462_v37, %v2864_v8  ;;  %v3563_v25 = vmax.f32 %v3562_v9, %v6463_v20  ;;  %v6473_v22 = vld [vmem:[#allocation58_spill] sm:$0xff] }
 0x1f1   : > { %v4908_v55 = vpop.f32.mrf.mxu0  ;;  %v6234_v47 = vpop.f32.mrf.mxu1  ;;  %v3667_v2 = vadd.f32 %v6041_v15, %v3561_v7  ;;  %v6474_v7 = vld [vmem:[#allocation48_spill] sm:$0xff] }
 0x1f2   : > { %v4588_v59 = vpack.c.bf16 %v3724_v44, %v3723_v40  ;;  %v3665_v53 = vadd.f32 %v6041_v15, %v3555_v16  ;;  %v3557_v31 = vmax.f32 %v3556_v24, %v6464_v30  ;;  %v3571_v11 = vmax.f32 %v6465_v10, %v4908_v55 }
 0x1f3   : > { %v3564_v43 = vmax.f32 %v3563_v25, %v3360_v13  ;;  %v2877_v33 = vpop.f32.mrf.mxu0  ;;  %v3373_v0 = vpop.f32.mrf.mxu1  ;;  %v3728_v35 = vmax.f32 %v3667_v2, 0.0  ;;  %v6475_v13 = vld [vmem:[#allocation49_spill] sm:$0xff]  ;;  %v6476_v25 = vld [vmem:[#allocation51_spill] sm:$0xff] }
 0x1f4   : > { %4662 = vst [vmem:[%s6063_s14 + $0x90] sm:$0xff] %v4588_v59   ;;  %v3726_v34 = vmax.f32 %v3665_v53, 0.0  ;;  %v3558_v61 = vmax.f32 %v3557_v31, %v6204_v41  ;;  %v3565_v14 = vmax.f32 %v6466_v29, %v2877_v33  ;;  %v3572_v21 = vmax.f32 %v3571_v11, %v6467_v27  ;;  %v6477_v59 = vld [vmem:[#allocation52_spill] sm:$0xff] }
 0x1f5   : > { %v4909_v4 = vpop.f32.mrf.mxu0  ;;  %v6244_v38 = vpop.f32.mrf.mxu1  ;;  %v3668_v42 = vadd.f32 %v6041_v15, %v3564_v43  ;;  %v6478_v43 = vld [vmem:[#allocation54_spill] sm:$0xff] }
 0x1f6   : > { %v4593_v62 = vpack.c.bf16 %v3726_v34, %v3725_v5  ;;  %v3666_v60 = vadd.f32 %v6041_v15, %v3558_v61  ;;  %v3566_v50 = vmax.f32 %v3565_v14, %v6468_v63  ;;  %v3574_v36 = vmax.f32 %v6469_v12, %v4909_v4 }
 0x1f7   : > { %v3573_v51 = vmax.f32 %v3572_v21, %v3373_v0  ;;  %v2880_v39 = vpop.f32.mrf.mxu0  ;;  %v3376_v41 = vpop.f32.mrf.mxu1  ;;  %v3729_v23 = vmax.f32 %v3668_v42, 0.0  ;;  %v6479_v0 = vld [vmem:[#allocation55_spill] sm:$0xff]  ;;  %v6480_v21 = vld [vmem:[#allocation45_spill] sm:$0xff] }
 0x1f8   : > { %4663 = vst [vmem:[%s6063_s14 + $0x98] sm:$0xff] %v4593_v62   ;;  %v3727_v49 = vmax.f32 %v3666_v60, 0.0  ;;  %v3567_v19 = vmax.f32 %v3566_v50, %v6214_v6  ;;  %v3568_v54 = vmax.f32 %v6470_v45, %v2880_v39  ;;  %v3575_v56 = vmax.f32 %v3574_v36, %v6471_v28  ;;  %v6481_v62 = vld [vmem:[#allocation66_spill] sm:$0xff] }
 0x1f9   : > { %v4912_v57 = vpop.f32.mrf.mxu0  ;;  %v6254_v46 = vpop.f32.mrf.mxu1  ;;  %v3671_v32 = vadd.f32 %v6041_v15, %v3573_v51  ;;  %v6482_v51 = vld [vmem:[#allocation56_spill] sm:$0xff] }
 0x1fa   : > { %v4598_v3 = vpack.c.bf16 %v3728_v35, %v3727_v49  ;;  %v3669_v17 = vadd.f32 %v6041_v15, %v3567_v19  ;;  %v3569_v52 = vmax.f32 %v3568_v54, %v6472_v58  ;;  %v3583_v18 = vmax.f32 %v6473_v22, %v4912_v57 }
 0x1fb   : > { %v3576_v1 = vmax.f32 %v3575_v56, %v3376_v41  ;;  %v2893_v9 = vpop.f32.mrf.mxu0  ;;  %v3389_v6 = vpop.f32.mrf.mxu1  ;;  %v3732_v30 = vmax.f32 %v3671_v32, 0.0  ;;  %v6483_v41 = vld [vmem:[#allocation57_spill] sm:$0xff]  ;;  %v6484_v56 = vld [vmem:[#allocation59_spill] sm:$0xff] }
 0x1fc   : > { %4664 = vst [vmem:[%s6063_s14 + $0xa0] sm:$0xff] %v4598_v3   ;;  %v3730_v44 = vmax.f32 %v3669_v17, 0.0  ;;  %v3570_v26 = vmax.f32 %v3569_v52, %v6224_v48  ;;  %v3577_v8 = vmax.f32 %v6474_v7, %v2893_v9  ;;  %v3584_v40 = vmax.f32 %v3583_v18, %v6475_v13  ;;  %v6485_v3 = vld [vmem:[#allocation60_spill] sm:$0xff] }
 0x1fd   : > { %v4913_v16 = vpop.f32.mrf.mxu0  ;;  %v6264_v37 = vpop.f32.mrf.mxu1  ;;  %v3672_v31 = vadd.f32 %v6041_v15, %v3576_v1  ;;  %v6486_v1 = vld [vmem:[#allocation62_spill] sm:$0xff] }
 0x1fe   : > { %v4603_v24 = vpack.c.bf16 %v3730_v44, %v3729_v23  ;;  %v3670_v20 = vadd.f32 %v6041_v15, %v3570_v26  ;;  %v3578_v55 = vmax.f32 %v3577_v8, %v6476_v25  ;;  %v3586_v53 = vmax.f32 %v6477_v59, %v4913_v16 }
 0x1ff   : > { %v3585_v10 = vmax.f32 %v3584_v40, %v3389_v6  ;;  %v2896_v11 = vpop.f32.mrf.mxu0  ;;  %v3392_v48 = vpop.f32.mrf.mxu1  ;;  %v3733_v63 = vmax.f32 %v3672_v31, 0.0  ;;  %v6487_v6 = vld [vmem:[#allocation63_spill] sm:$0xff]  ;;  %v6488_v40 = vld [vmem:[#allocation53_spill] sm:$0xff] }
 0x200   : > { %4665 = vst [vmem:[%s6063_s14 + $0xa8] sm:$0xff] %v4603_v24   ;;  %v3731_v5 = vmax.f32 %v3670_v20, 0.0  ;;  %v3579_v2 = vmax.f32 %v3578_v55, %v6234_v47  ;;  %v3580_v33 = vmax.f32 %v6478_v43, %v2896_v11  ;;  %v3587_v34 = vmax.f32 %v3586_v53, %v6479_v0  ;;  %v6489_v24 = vld [vmem:[#allocation74_spill] sm:$0xff] }
 0x201   : > { %v4916_v61 = vpop.f32.mrf.mxu0  ;;  %v6274_v29 = vpop.f32.mrf.mxu1  ;;  %v3675_v50 = vadd.f32 %v6041_v15, %v3585_v10  ;;  %v6490_v10 = vld [vmem:[#allocation64_spill] sm:$0xff] }
 0x202   : > { %v4608_v14 = vpack.c.bf16 %v3732_v30, %v3731_v5  ;;  %v3673_v27 = vadd.f32 %v6041_v15, %v3579_v2  ;;  %v3581_v4 = vmax.f32 %v3580_v33, %v6480_v21  ;;  %v3595_v60 = vmax.f32 %v6481_v62, %v4916_v61  ;;  %v6494_v21 = vld [vmem:[#allocation79_spill] sm:$0xff] }
 0x203   : > { %v3588_v12 = vmax.f32 %v3587_v34, %v3392_v48  ;;  %v2909_v36 = vpop.f32.mrf.mxu0  ;;  %v3405_v47 = vpop.f32.mrf.mxu1  ;;  %v3736_v58 = vmax.f32 %v3675_v50, 0.0  ;;  %v6491_v48 = vld [vmem:[#allocation65_spill] sm:$0xff]  ;;  %v6492_v34 = vld [vmem:[#allocation67_spill] sm:$0xff] }
 0x204   : > { %4666 = vst [vmem:[%s6063_s14 + $0xb0] sm:$0xff] %v4608_v14   ;;  %v3734_v35 = vmax.f32 %v3673_v27, 0.0  ;;  %v3582_v42 = vmax.f32 %v3581_v4, %v6244_v38  ;;  %v3589_v39 = vmax.f32 %v6482_v51, %v2909_v36  ;;  %v3596_v49 = vmax.f32 %v3595_v60, %v6483_v41  ;;  %v6493_v14 = vld [vmem:[#allocation68_spill] sm:$0xff]  ;;  %v6495_v4 = vld [vmem:[#allocation3_spill] sm:$0xff] }
 0x205   : > { %v4917_v19 = vpop.f32.mrf.mxu0  ;;  %v6284_v45 = vpop.f32.mrf.mxu1  ;;  %v3676_v52 = vadd.f32 %v6041_v15, %v3588_v12  ;;  %v3436_v62 = vmax.f32 %v6495_v4, %v6494_v21 }
 0x206   : > { %v4613_v54 = vpack.c.bf16 %v3734_v35, %v3733_v63  ;;  %v3674_v28 = vadd.f32 %v6041_v15, %v3582_v42  ;;  %v3590_v57 = vmax.f32 %v3589_v39, %v6484_v56  ;;  %v3598_v17 = vmax.f32 %v6485_v3, %v4917_v19  ;;  %v6497_v42 = vld [vmem:[#allocation71_spill] sm:$0xff] }
 0x207   : > { %v3597_v22 = vmax.f32 %v3596_v49, %v3405_v47  ;;  %v2912_v18 = vpop.f32.mrf.mxu0  ;;  %v3408_v38 = vpop.f32.mrf.mxu1  ;;  %v3737_v25 = vmax.f32 %v3676_v52, 0.0  ;;  %v6496_v47 = vld [vmem:[#allocation70_spill] sm:$0xff] }
 0x208   : > { %4667 = vst [vmem:[%s6063_s14 + $0xb8] sm:$0xff] %v4613_v54   ;;  %v3735_v23 = vmax.f32 %v3674_v28, 0.0  ;;  %v3591_v32 = vmax.f32 %v3590_v57, %v6254_v46  ;;  %v3592_v9 = vmax.f32 %v6486_v1, %v2912_v18  ;;  %v3599_v44 = vmax.f32 %v3598_v17, %v6487_v6  ;;  %v6498_v54 = vld [vmem:[#allocation61_spill] sm:$0xff] }
 0x209   : > { %v4920_v26 = vpop.f32.mrf.mxu0  ;;  %v6294_v7 = vpop.f32.mrf.mxu1  ;;  %v3679_v55 = vadd.f32 %v6041_v15, %v3597_v22  ;;  %v6499_v22 = vld [vmem:[#allocation72_spill] sm:$0xff]  ;;  %v6502_v1 = vld [vmem:[#allocation73_spill] sm:$0xff] }
 0x20a   : > { %v4618_v8 = vpack.c.bf16 %v3736_v58, %v3735_v23  ;;  %v3677_v13 = vadd.f32 %v6041_v15, %v3591_v32  ;;  %v3593_v16 = vmax.f32 %v3592_v9, %v6488_v40  ;;  %v3607_v20 = vmax.f32 %v6489_v24, %v4920_v26  ;;  %v6501_v23 = vld [vmem:[#allocation4_spill] sm:$0xff] }
 0x20b   : > { %v3600_v59 = vmax.f32 %v3599_v44, %v3408_v38  ;;  %v2925_v53 = vpop.f32.mrf.mxu0  ;;  %v3421_v46 = vpop.f32.mrf.mxu1  ;;  %v3740_v60 = vmax.f32 %v3679_v55, 0.0  ;;  %v6500_v38 = vld [vmem:[#allocation76_spill] sm:$0xff]  ;;  %v6504_v55 = vld [vmem:[#allocation77_spill] sm:$0xff] }
 0x20c   : > { %4668 = vst [vmem:[%s6063_s14 + $0xc0] sm:$0xff] %v4618_v8   ;;  %v3738_v30 = vmax.f32 %v3677_v13, 0.0  ;;  %v3594_v31 = vmax.f32 %v3593_v16, %v6264_v37  ;;  %v3601_v11 = vmax.f32 %v6490_v10, %v2925_v53  ;;  %v3608_v5 = vmax.f32 %v3607_v20, %v6491_v48  ;;  %v6503_v8 = vld [vmem:[#allocation75_spill] sm:$0xff] }
 0x20d   : > { %v4921_v2 = vpop.f32.mrf.mxu0  ;;  %v5045_v43 = vpop.f32.mrf.mxu1  ;;  %v3680_v63 = vadd.f32 %v6041_v15, %v3600_v59  ;;  %v3439_v32 = vmax.f32 %v6501_v23, %v6500_v38 }
 0x20e   : > { %v4623_v33 = vpack.c.bf16 %v3738_v30, %v3737_v25  ;;  %v3678_v0 = vadd.f32 %v6041_v15, %v3594_v31  ;;  %v3602_v61 = vmax.f32 %v3601_v11, %v6492_v34  ;;  %v3610_v27 = vmax.f32 %v6493_v14, %v4921_v2  ;;  %v6506_v11 = vld [vmem:[#allocation69_spill] sm:$0xff] }
 0x20f   : > { %v3609_v37 = vmax.f32 %v3608_v5, %v3421_v46  ;;  %v2928_v50 = vpop.f32.mrf.mxu0  ;;  %v3424_v41 = vpop.f32.mrf.mxu1  ;;  %v3741_v57 = vmax.f32 %v3680_v63, 0.0  ;;  %v6505_v46 = vld [vmem:[#allocation78_spill] sm:$0xff] }
 0x210   : > { %4669 = vst [vmem:[%s6063_s14 + $0xc8] sm:$0xff] %v4623_v33   ;;  %v3739_v12 = vmax.f32 %v3678_v0, 0.0  ;;  %v3603_v36 = vmax.f32 %v3602_v61, %v6274_v29  ;;  %v3604_v35 = vmax.f32 %v6496_v47, %v2928_v50  ;;  %v3611_v51 = vmax.f32 %v3610_v27, %v6497_v42 }
 0x211   : > { %v4924_v39 = vpop.f32.mrf.mxu0  ;;  %v3683_v3 = vadd.f32 %v6041_v15, %v3609_v37 }
 0x212   : > { %v4628_v49 = vpack.c.bf16 %v3740_v60, %v3739_v12  ;;  %v3681_v19 = vadd.f32 %v6041_v15, %v3603_v36  ;;  %v3605_v28 = vmax.f32 %v3604_v35, %v6498_v54  ;;  %v3437_v56 = vmax.f32 %v3436_v62, %v4924_v39 }
 0x213   : > { %v2941_v17 = vpop.f32.mrf.mxu0  ;;  %v3612_v52 = vmax.f32 %v3611_v51, %v3424_v41  ;;  %v3744_v40 = vmax.f32 %v3683_v3, 0.0 }
 0x214   : > { %4670 = vst [vmem:[%s6063_s14 + $0xd0] sm:$0xff] %v4628_v49   ;;  %v3742_v58 = vmax.f32 %v3681_v19, 0.0  ;;  %v3606_v29 = vmax.f32 %v3605_v28, %v6284_v45  ;;  %v3613_v18 = vmax.f32 %v6499_v22, %v2941_v17  ;;  %v3438_v9 = vmax.f32 %v3437_v56, %v6502_v1 }
 0x215   : > { %v4925_v6 = vpop.f32.mrf.mxu0  ;;  %v3684_v20 = vadd.f32 %v6041_v15, %v3612_v52 }
 0x216   : > { %v4633_v44 = vpack.c.bf16 %v3742_v58, %v3741_v57  ;;  %v3682_v26 = vadd.f32 %v6041_v15, %v3606_v29  ;;  %v3614_v13 = vmax.f32 %v3613_v18, %v6503_v8  ;;  %v3440_v16 = vmax.f32 %v3439_v32, %v4925_v6 }
 0x217   : > { %v2944_v24 = vpop.f32.mrf.mxu0  ;;  %v3626_v53 = vadd.f32 %v6041_v15, %v3438_v9  ;;  %v3745_v2 = vmax.f32 %v3684_v20, 0.0 }
 0x218   : > { %4671 = vst [vmem:[%s6063_s14 + $0xd8] sm:$0xff] %v4633_v44   ;;  %v3743_v45 = vmax.f32 %v3682_v26, 0.0  ;;  %v3615_v25 = vmax.f32 %v3614_v13, %v6294_v7  ;;  %v3616_v59 = vmax.f32 %v6504_v55, %v2944_v24  ;;  %v3441_v30 = vmax.f32 %v3440_v16, %v6505_v46 }
 0x219   : > { %v3687_v0 = vmax.f32 %v3626_v53, 0.0 }
 0x21a   : > { %v4638_v31 = vpack.c.bf16 %v3744_v40, %v3743_v45  ;;  %v3685_v10 = vadd.f32 %v6041_v15, %v3615_v25  ;;  %v3617_v48 = vmax.f32 %v3616_v59, %v6506_v11  ;;  %v3627_v5 = vadd.f32 %v6041_v15, %v3441_v30 }
 0x21c   : > { %4672 = vst [vmem:[%s6063_s14 + $0xe0] sm:$0xff] %v4638_v31   ;;  %v3746_v33 = vmax.f32 %v3685_v10, 0.0  ;;  %v3618_v7 = vmax.f32 %v3617_v48, %v5045_v43  ;;  %v3688_v34 = vmax.f32 %v3627_v5, 0.0 }
 0x21e   : > { %v4643_v61 = vpack.c.bf16 %v3746_v33, %v3745_v2  ;;  %v3686_v14 = vadd.f32 %v6041_v15, %v3618_v7  ;;  %v4498_v27 = vpack.c.bf16 %v3688_v34, %v3687_v0 }
 0x220   : > { %4673 = vst [vmem:[%s6063_s14 + $0xe8] sm:$0xff] %v4643_v61   ;;  %v3747_v21 = vmax.f32 %v3686_v14, 0.0  ;;  %4499 = vst [vmem:[%s6063_s14] sm:$0xff] %v4498_v27  }
 0x222   : > { %v4494_v4 = vpack.c.bf16 %v3747_v21, %v3747_v21 }
 0x224   : > { %4053 = vst [vmem:[%s6063_s14 + $0xf0] sm:$0xf] %v4494_v4 }
 0x225 PF: > { %p10_p9 = scmp.ge.s32.totalorder %s5261_s16, 4   ;;  %s6507_s12 = smov %s5218_s13 }
 0x226   : > { %s6508_s13 = smov %s5270_s19  ;;  %s6509_s14 = smov %s5261_s16 }
 0x227   :  { %12 = sbr.rel (!%p10_p9) target bundleno = 2 (0x2), region = 108 }

// kernel: simple_cnn_forward.4
= control target key start
LH: loop header
LB: loop body
LE: loop exit
PB: predicated region body
PF: predicated region fallthrough
CT: control target
= control target key end

     0   :  { %s2443_s12 = smov 0   ;;  %s2445_s13 = smov 0   ;;  %s3122_s0 = inlined_call_operand.vmem [shape: bf16[4,208,400], index: 0, kind: input, shape index: {}]   ;;  %s3123_s1 = inlined_call_operand.vmem [shape: bf16[400,128], index: 1, kind: input, shape index: {}]   ;;  %s3124_s2 = inlined_call_operand.vmem [shape: f32[1,128], index: 2, kind: input, shape index: {}]   ;;  %s3125_s3 = inlined_call_operand.vmem [shape: bf16[208,128], index: 3, kind: output, shape index: {}]  }
   0x1   :  { %s2447_s14 = smov 0  }
   0x2 LB: > { %s1960_s15 = sadd.s32 4294967295, %s2420_s14   ;;  %s2460_s16 = sadd.s32 1, %s2420_s14   ;;  %s2420_s14 = sphi %s2447_s14, %s3128_s14   ;;  %s2416_s13 = sphi %s2445_s13, %s3127_s13   ;;  %s2412_s12 = sphi %s2443_s12, %s3126_s12  }
   0x3   : > { %s17_s17 = ssub.s32 %s2420_s14, %s2460_s16  ;;  %s20_s18 = sadd.s32 1, %s2416_s13 }
   0x4   : > { %p18_p0 = scmp.eq.s32.totalorder %s17_s17, 0  ;;  %p27_p1 = scmp.ne.s32.totalorder %s2416_s13, %s2412_s12 }
   0x5   : > { %p28_p2 = scmp.eq.s32.totalorder %s2420_s14, 0  ;;  %p1963_p4 = scmp.ge.s32.totalorder %s2420_s14, 2 }
   0x6   : > { %s2469_s19 = scalar_select %p18_p0, %s2416_s13, %s20_s18  }
   0x7   : > { %p29_p3 = por %p28_p2, %p27_p1  ;;  %127 = sbr.rel (%p1963_p4) target bundleno = 69 (0x45), region = 24 }
   0xc   : > { %130 = sbr.rel (!%p29_p3) target bundleno = 69 (0x45), region = 28  ;;  %s132_s20 = sand.u32 (%p29_p3), 1, %s2416_s13  }
   0xd   : > { %s2184_s21 = smul.u32 (%p29_p3), 208, %s2420_s14 }
   0xe   : > { %s2190_s22 = smul.u32 (%p29_p3), 832, %s132_s20 }
   0xf   : > { %s2477_s25 = scalar_lea.vmem (%p29_p3), %s3122_s0, %s2184_s21 }
  0x10   : > { %v151_v0 = vld [vmem:[%s2477_s25] sm:$0xff] (%p29_p3)  ;;  %v153_v1 = vld [vmem:[%s2477_s25 + $0x8] sm:$0xff] (%p29_p3)  ;;  %v155_v2 = vld [vmem:[%s2477_s25 + $0x10] sm:$0xff] (%p29_p3)  ;;  %s2482_s26 = scalar_lea.vmem (%p29_p3), [#allocation2], %s2190_s22 }
  0x11   : > { %152 = vst [vmem:[%s2482_s26] sm:$0xff] %v151_v0  ;;  %154 = vst [vmem:[%s2482_s26 + $0x8] sm:$0xff] %v153_v1  ;;  %v157_v3 = vld [vmem:[%s2477_s25 + $0x18] sm:$0xff]  ;;  %v159_v4 = vld [vmem:[%s2477_s25 + $0x20] sm:$0xff] }
  0x12   : > { %156 = vst [vmem:[%s2482_s26 + $0x10] sm:$0xff] %v155_v2  ;;  %v161_v5 = vld [vmem:[%s2477_s25 + $0x28] sm:$0xff]  ;;  %158 = vst [vmem:[%s2482_s26 + $0x18] sm:$0xff] %v157_v3  ;;  %v163_v6 = vld [vmem:[%s2477_s25 + $0x30] sm:$0xff] }
  0x13   : > { %160 = vst [vmem:[%s2482_s26 + $0x20] sm:$0xff] %v159_v4  ;;  %162 = vst [vmem:[%s2482_s26 + $0x28] sm:$0xff] %v161_v5  ;;  %v165_v7 = vld [vmem:[%s2477_s25 + $0x38] sm:$0xff]  ;;  %v167_v8 = vld [vmem:[%s2477_s25 + $0x40] sm:$0xff] }
  0x14   : > { %164 = vst [vmem:[%s2482_s26 + $0x30] sm:$0xff] %v163_v6  ;;  %166 = vst [vmem:[%s2482_s26 + $0x38] sm:$0xff] %v165_v7  ;;  %v169_v9 = vld [vmem:[%s2477_s25 + $0x48] sm:$0xff]  ;;  %v171_v10 = vld [vmem:[%s2477_s25 + $0x50] sm:$0xff] }
  0x15   : > { %168 = vst [vmem:[%s2482_s26 + $0x40] sm:$0xff] %v167_v8  ;;  %v173_v11 = vld [vmem:[%s2477_s25 + $0x58] sm:$0xff]  ;;  %170 = vst [vmem:[%s2482_s26 + $0x48] sm:$0xff] %v169_v9  ;;  %v175_v12 = vld [vmem:[%s2477_s25 + $0x60] sm:$0xff] }
  0x16   : > { %172 = vst [vmem:[%s2482_s26 + $0x50] sm:$0xff] %v171_v10  ;;  %174 = vst [vmem:[%s2482_s26 + $0x58] sm:$0xff] %v173_v11  ;;  %v177_v13 = vld [vmem:[%s2477_s25 + $0x68] sm:$0xff]  ;;  %v179_v14 = vld [vmem:[%s2477_s25 + $0x70] sm:$0xff] }
  0x17   : > { %176 = vst [vmem:[%s2482_s26 + $0x60] sm:$0xff] %v175_v12  ;;  %178 = vst [vmem:[%s2482_s26 + $0x68] sm:$0xff] %v177_v13  ;;  %v181_v15 = vld [vmem:[%s2477_s25 + $0x78] sm:$0xff]  ;;  %v183_v16 = vld [vmem:[%s2477_s25 + $0x80] sm:$0xff] }
  0x18   : > { %180 = vst [vmem:[%s2482_s26 + $0x70] sm:$0xff] %v179_v14  ;;  %v185_v17 = vld [vmem:[%s2477_s25 + $0x88] sm:$0xff]  ;;  %182 = vst [vmem:[%s2482_s26 + $0x78] sm:$0xff] %v181_v15  ;;  %v187_v18 = vld [vmem:[%s2477_s25 + $0x90] sm:$0xff] }
  0x19   : > { %184 = vst [vmem:[%s2482_s26 + $0x80] sm:$0xff] %v183_v16  ;;  %186 = vst [vmem:[%s2482_s26 + $0x88] sm:$0xff] %v185_v17  ;;  %v189_v19 = vld [vmem:[%s2477_s25 + $0x98] sm:$0xff]  ;;  %v191_v20 = vld [vmem:[%s2477_s25 + $0xa0] sm:$0xff] }
  0x1a   : > { %188 = vst [vmem:[%s2482_s26 + $0x90] sm:$0xff] %v187_v18  ;;  %190 = vst [vmem:[%s2482_s26 + $0x98] sm:$0xff] %v189_v19  ;;  %v193_v21 = vld [vmem:[%s2477_s25 + $0xa8] sm:$0xff]  ;;  %v195_v22 = vld [vmem:[%s2477_s25 + $0xb0] sm:$0xff] }
  0x1b   : > { %192 = vst [vmem:[%s2482_s26 + $0xa0] sm:$0xff] %v191_v20  ;;  %v197_v23 = vld [vmem:[%s2477_s25 + $0xb8] sm:$0xff]  ;;  %194 = vst [vmem:[%s2482_s26 + $0xa8] sm:$0xff] %v193_v21  ;;  %v199_v24 = vld [vmem:[%s2477_s25 + $0xc0] sm:$0xff] }
  0x1c   : > { %196 = vst [vmem:[%s2482_s26 + $0xb0] sm:$0xff] %v195_v22  ;;  %198 = vst [vmem:[%s2482_s26 + $0xb8] sm:$0xff] %v197_v23  ;;  %v201_v25 = vld [vmem:[%s2477_s25 + $0xc8] sm:$0xff]  ;;  %v203_v26 = vld [vmem:[%s2477_s25 + $0x1a0] sm:$0xff] }
  0x1d   : > { %200 = vst [vmem:[%s2482_s26 + $0xc0] sm:$0xff] %v199_v24  ;;  %202 = vst [vmem:[%s2482_s26 + $0xc8] sm:$0xff] %v201_v25  ;;  %v205_v27 = vld [vmem:[%s2477_s25 + $0x1a8] sm:$0xff]  ;;  %v207_v28 = vld [vmem:[%s2477_s25 + $0x1b0] sm:$0xff] }
  0x1e   : > { %204 = vst [vmem:[%s2482_s26 + $0xd0] sm:$0xff] %v203_v26  ;;  %v209_v29 = vld [vmem:[%s2477_s25 + $0x1b8] sm:$0xff]  ;;  %206 = vst [vmem:[%s2482_s26 + $0xd8] sm:$0xff] %v205_v27  ;;  %v211_v30 = vld [vmem:[%s2477_s25 + $0x1c0] sm:$0xff] }
  0x1f   : > { %208 = vst [vmem:[%s2482_s26 + $0xe0] sm:$0xff] %v207_v28  ;;  %210 = vst [vmem:[%s2482_s26 + $0xe8] sm:$0xff] %v209_v29  ;;  %v213_v31 = vld [vmem:[%s2477_s25 + $0x1c8] sm:$0xff]  ;;  %v215_v32 = vld [vmem:[%s2477_s25 + $0x1d0] sm:$0xff] }
  0x20   : > { %212 = vst [vmem:[%s2482_s26 + $0xf0] sm:$0xff] %v211_v30  ;;  %214 = vst [vmem:[%s2482_s26 + $0xf8] sm:$0xff] %v213_v31  ;;  %v217_v33 = vld [vmem:[%s2477_s25 + $0x1d8] sm:$0xff]  ;;  %v219_v34 = vld [vmem:[%s2477_s25 + $0x1e0] sm:$0xff] }
  0x21   : > { %216 = vst [vmem:[%s2482_s26 + $0x100] sm:$0xff] %v215_v32  ;;  %v221_v35 = vld [vmem:[%s2477_s25 + $0x1e8] sm:$0xff]  ;;  %218 = vst [vmem:[%s2482_s26 + $0x108] sm:$0xff] %v217_v33  ;;  %v223_v36 = vld [vmem:[%s2477_s25 + $0x1f0] sm:$0xff] }
  0x22   : > { %220 = vst [vmem:[%s2482_s26 + $0x110] sm:$0xff] %v219_v34  ;;  %222 = vst [vmem:[%s2482_s26 + $0x118] sm:$0xff] %v221_v35  ;;  %v225_v37 = vld [vmem:[%s2477_s25 + $0x1f8] sm:$0xff]  ;;  %v227_v38 = vld [vmem:[%s2477_s25 + $0x200] sm:$0xff] }
  0x23   : > { %224 = vst [vmem:[%s2482_s26 + $0x120] sm:$0xff] %v223_v36  ;;  %226 = vst [vmem:[%s2482_s26 + $0x128] sm:$0xff] %v225_v37  ;;  %v229_v39 = vld [vmem:[%s2477_s25 + $0x208] sm:$0xff]  ;;  %v231_v40 = vld [vmem:[%s2477_s25 + $0x210] sm:$0xff] }
  0x24   : > { %228 = vst [vmem:[%s2482_s26 + $0x130] sm:$0xff] %v227_v38  ;;  %v233_v41 = vld [vmem:[%s2477_s25 + $0x218] sm:$0xff]  ;;  %230 = vst [vmem:[%s2482_s26 + $0x138] sm:$0xff] %v229_v39  ;;  %v235_v42 = vld [vmem:[%s2477_s25 + $0x220] sm:$0xff] }
  0x25   : > { %232 = vst [vmem:[%s2482_s26 + $0x140] sm:$0xff] %v231_v40  ;;  %234 = vst [vmem:[%s2482_s26 + $0x148] sm:$0xff] %v233_v41  ;;  %v237_v43 = vld [vmem:[%s2477_s25 + $0x228] sm:$0xff]  ;;  %v239_v44 = vld [vmem:[%s2477_s25 + $0x230] sm:$0xff] }
  0x26   : > { %236 = vst [vmem:[%s2482_s26 + $0x150] sm:$0xff] %v235_v42  ;;  %238 = vst [vmem:[%s2482_s26 + $0x158] sm:$0xff] %v237_v43  ;;  %v241_v45 = vld [vmem:[%s2477_s25 + $0x238] sm:$0xff]  ;;  %v243_v46 = vld [vmem:[%s2477_s25 + $0x240] sm:$0xff] }
  0x27   : > { %240 = vst [vmem:[%s2482_s26 + $0x160] sm:$0xff] %v239_v44  ;;  %v245_v47 = vld [vmem:[%s2477_s25 + $0x248] sm:$0xff]  ;;  %242 = vst [vmem:[%s2482_s26 + $0x168] sm:$0xff] %v241_v45  ;;  %v247_v48 = vld [vmem:[%s2477_s25 + $0x250] sm:$0xff] }
  0x28   : > { %244 = vst [vmem:[%s2482_s26 + $0x170] sm:$0xff] %v243_v46  ;;  %246 = vst [vmem:[%s2482_s26 + $0x178] sm:$0xff] %v245_v47  ;;  %v249_v49 = vld [vmem:[%s2477_s25 + $0x258] sm:$0xff]  ;;  %v251_v50 = vld [vmem:[%s2477_s25 + $0x260] sm:$0xff] }
  0x29   : > { %248 = vst [vmem:[%s2482_s26 + $0x180] sm:$0xff] %v247_v48  ;;  %250 = vst [vmem:[%s2482_s26 + $0x188] sm:$0xff] %v249_v49  ;;  %v253_v51 = vld [vmem:[%s2477_s25 + $0x268] sm:$0xff]  ;;  %v255_v52 = vld [vmem:[%s2477_s25 + $0x340] sm:$0xff] }
  0x2a   : > { %252 = vst [vmem:[%s2482_s26 + $0x190] sm:$0xff] %v251_v50  ;;  %v257_v53 = vld [vmem:[%s2477_s25 + $0x348] sm:$0xff]  ;;  %254 = vst [vmem:[%s2482_s26 + $0x198] sm:$0xff] %v253_v51  ;;  %v259_v54 = vld [vmem:[%s2477_s25 + $0x350] sm:$0xff] }
  0x2b   : > { %256 = vst [vmem:[%s2482_s26 + $0x1a0] sm:$0xff] %v255_v52  ;;  %258 = vst [vmem:[%s2482_s26 + $0x1a8] sm:$0xff] %v257_v53  ;;  %v261_v55 = vld [vmem:[%s2477_s25 + $0x358] sm:$0xff]  ;;  %v263_v56 = vld [vmem:[%s2477_s25 + $0x360] sm:$0xff] }
  0x2c   : > { %260 = vst [vmem:[%s2482_s26 + $0x1b0] sm:$0xff] %v259_v54  ;;  %262 = vst [vmem:[%s2482_s26 + $0x1b8] sm:$0xff] %v261_v55  ;;  %v265_v57 = vld [vmem:[%s2477_s25 + $0x368] sm:$0xff]  ;;  %v267_v58 = vld [vmem:[%s2477_s25 + $0x370] sm:$0xff] }
  0x2d   : > { %264 = vst [vmem:[%s2482_s26 + $0x1c0] sm:$0xff] %v263_v56  ;;  %v269_v59 = vld [vmem:[%s2477_s25 + $0x378] sm:$0xff]  ;;  %266 = vst [vmem:[%s2482_s26 + $0x1c8] sm:$0xff] %v265_v57  ;;  %v271_v60 = vld [vmem:[%s2477_s25 + $0x380] sm:$0xff] }
  0x2e   : > { %268 = vst [vmem:[%s2482_s26 + $0x1d0] sm:$0xff] %v267_v58  ;;  %270 = vst [vmem:[%s2482_s26 + $0x1d8] sm:$0xff] %v269_v59  ;;  %v273_v61 = vld [vmem:[%s2477_s25 + $0x388] sm:$0xff]  ;;  %v275_v62 = vld [vmem:[%s2477_s25 + $0x390] sm:$0xff] }
  0x2f   : > { %272 = vst [vmem:[%s2482_s26 + $0x1e0] sm:$0xff] %v271_v60  ;;  %274 = vst [vmem:[%s2482_s26 + $0x1e8] sm:$0xff] %v273_v61  ;;  %v277_v63 = vld [vmem:[%s2477_s25 + $0x398] sm:$0xff]  ;;  %v279_v0 = vld [vmem:[%s2477_s25 + $0x3a0] sm:$0xff] }
  0x30   : > { %276 = vst [vmem:[%s2482_s26 + $0x1f0] sm:$0xff] %v275_v62  ;;  %v281_v1 = vld [vmem:[%s2477_s25 + $0x3a8] sm:$0xff]  ;;  %278 = vst [vmem:[%s2482_s26 + $0x1f8] sm:$0xff] %v277_v63  ;;  %v283_v2 = vld [vmem:[%s2477_s25 + $0x3b0] sm:$0xff] }
  0x31   : > { %280 = vst [vmem:[%s2482_s26 + $0x200] sm:$0xff] %v279_v0  ;;  %282 = vst [vmem:[%s2482_s26 + $0x208] sm:$0xff] %v281_v1  ;;  %v285_v3 = vld [vmem:[%s2477_s25 + $0x3b8] sm:$0xff]  ;;  %v287_v4 = vld [vmem:[%s2477_s25 + $0x3c0] sm:$0xff] }
  0x32   : > { %284 = vst [vmem:[%s2482_s26 + $0x210] sm:$0xff] %v283_v2  ;;  %286 = vst [vmem:[%s2482_s26 + $0x218] sm:$0xff] %v285_v3  ;;  %v289_v5 = vld [vmem:[%s2477_s25 + $0x3c8] sm:$0xff]  ;;  %v291_v6 = vld [vmem:[%s2477_s25 + $0x3d0] sm:$0xff] }
  0x33   : > { %288 = vst [vmem:[%s2482_s26 + $0x220] sm:$0xff] %v287_v4  ;;  %v293_v7 = vld [vmem:[%s2477_s25 + $0x3d8] sm:$0xff]  ;;  %290 = vst [vmem:[%s2482_s26 + $0x228] sm:$0xff] %v289_v5  ;;  %v295_v8 = vld [vmem:[%s2477_s25 + $0x3e0] sm:$0xff] }
  0x34   : > { %292 = vst [vmem:[%s2482_s26 + $0x230] sm:$0xff] %v291_v6  ;;  %294 = vst [vmem:[%s2482_s26 + $0x238] sm:$0xff] %v293_v7  ;;  %v297_v9 = vld [vmem:[%s2477_s25 + $0x3e8] sm:$0xff]  ;;  %v299_v10 = vld [vmem:[%s2477_s25 + $0x3f0] sm:$0xff] }
  0x35   : > { %296 = vst [vmem:[%s2482_s26 + $0x240] sm:$0xff] %v295_v8  ;;  %298 = vst [vmem:[%s2482_s26 + $0x248] sm:$0xff] %v297_v9  ;;  %v301_v11 = vld [vmem:[%s2477_s25 + $0x3f8] sm:$0xff]  ;;  %v303_v12 = vld [vmem:[%s2477_s25 + $0x400] sm:$0xff] }
  0x36   : > { %300 = vst [vmem:[%s2482_s26 + $0x250] sm:$0xff] %v299_v10  ;;  %v305_v13 = vld [vmem:[%s2477_s25 + $0x408] sm:$0xff]  ;;  %302 = vst [vmem:[%s2482_s26 + $0x258] sm:$0xff] %v301_v11  ;;  %v307_v14 = vld [vmem:[%s2477_s25 + $0x4e0] sm:$0xff] }
  0x37   : > { %304 = vst [vmem:[%s2482_s26 + $0x260] sm:$0xff] %v303_v12  ;;  %306 = vst [vmem:[%s2482_s26 + $0x268] sm:$0xff] %v305_v13  ;;  %v309_v15 = vld [vmem:[%s2477_s25 + $0x4e8] sm:$0xff]  ;;  %v311_v16 = vld [vmem:[%s2477_s25 + $0x4f0] sm:$0xff] }
  0x38   : > { %308 = vst [vmem:[%s2482_s26 + $0x270] sm:$0xff] %v307_v14  ;;  %310 = vst [vmem:[%s2482_s26 + $0x278] sm:$0xff] %v309_v15  ;;  %v313_v17 = vld [vmem:[%s2477_s25 + $0x4f8] sm:$0xff]  ;;  %v315_v18 = vld [vmem:[%s2477_s25 + $0x500] sm:$0xff] }
  0x39   : > { %312 = vst [vmem:[%s2482_s26 + $0x280] sm:$0xff] %v311_v16  ;;  %v317_v19 = vld [vmem:[%s2477_s25 + $0x508] sm:$0xff]  ;;  %314 = vst [vmem:[%s2482_s26 + $0x288] sm:$0xff] %v313_v17  ;;  %v319_v20 = vld [vmem:[%s2477_s25 + $0x510] sm:$0xff] }
  0x3a   : > { %316 = vst [vmem:[%s2482_s26 + $0x290] sm:$0xff] %v315_v18  ;;  %318 = vst [vmem:[%s2482_s26 + $0x298] sm:$0xff] %v317_v19  ;;  %v321_v21 = vld [vmem:[%s2477_s25 + $0x518] sm:$0xff]  ;;  %v323_v22 = vld [vmem:[%s2477_s25 + $0x520] sm:$0xff] }
  0x3b   : > { %320 = vst [vmem:[%s2482_s26 + $0x2a0] sm:$0xff] %v319_v20  ;;  %322 = vst [vmem:[%s2482_s26 + $0x2a8] sm:$0xff] %v321_v21  ;;  %v325_v23 = vld [vmem:[%s2477_s25 + $0x528] sm:$0xff]  ;;  %v327_v24 = vld [vmem:[%s2477_s25 + $0x530] sm:$0xff] }
  0x3c   : > { %324 = vst [vmem:[%s2482_s26 + $0x2b0] sm:$0xff] %v323_v22  ;;  %v329_v25 = vld [vmem:[%s2477_s25 + $0x538] sm:$0xff]  ;;  %326 = vst [vmem:[%s2482_s26 + $0x2b8] sm:$0xff] %v325_v23  ;;  %v331_v26 = vld [vmem:[%s2477_s25 + $0x540] sm:$0xff] }
  0x3d   : > { %328 = vst [vmem:[%s2482_s26 + $0x2c0] sm:$0xff] %v327_v24  ;;  %330 = vst [vmem:[%s2482_s26 + $0x2c8] sm:$0xff] %v329_v25  ;;  %v333_v27 = vld [vmem:[%s2477_s25 + $0x548] sm:$0xff]  ;;  %v335_v28 = vld [vmem:[%s2477_s25 + $0x550] sm:$0xff] }
  0x3e   : > { %332 = vst [vmem:[%s2482_s26 + $0x2d0] sm:$0xff] %v331_v26  ;;  %334 = vst [vmem:[%s2482_s26 + $0x2d8] sm:$0xff] %v333_v27  ;;  %v337_v29 = vld [vmem:[%s2477_s25 + $0x558] sm:$0xff]  ;;  %v339_v30 = vld [vmem:[%s2477_s25 + $0x560] sm:$0xff] }
  0x3f   : > { %336 = vst [vmem:[%s2482_s26 + $0x2e0] sm:$0xff] %v335_v28  ;;  %v341_v31 = vld [vmem:[%s2477_s25 + $0x568] sm:$0xff]  ;;  %338 = vst [vmem:[%s2482_s26 + $0x2e8] sm:$0xff] %v337_v29  ;;  %v343_v32 = vld [vmem:[%s2477_s25 + $0x570] sm:$0xff] }
  0x40   : > { %340 = vst [vmem:[%s2482_s26 + $0x2f0] sm:$0xff] %v339_v30  ;;  %342 = vst [vmem:[%s2482_s26 + $0x2f8] sm:$0xff] %v341_v31  ;;  %v345_v33 = vld [vmem:[%s2477_s25 + $0x578] sm:$0xff]  ;;  %v347_v34 = vld [vmem:[%s2477_s25 + $0x580] sm:$0xff] }
  0x41   : > { %344 = vst [vmem:[%s2482_s26 + $0x300] sm:$0xff] %v343_v32  ;;  %346 = vst [vmem:[%s2482_s26 + $0x308] sm:$0xff] %v345_v33  ;;  %v349_v35 = vld [vmem:[%s2477_s25 + $0x588] sm:$0xff]  ;;  %v351_v36 = vld [vmem:[%s2477_s25 + $0x590] sm:$0xff] }
  0x42   : > { %348 = vst [vmem:[%s2482_s26 + $0x310] sm:$0xff] %v347_v34  ;;  %v353_v37 = vld [vmem:[%s2477_s25 + $0x598] sm:$0xff]  ;;  %350 = vst [vmem:[%s2482_s26 + $0x318] sm:$0xff] %v349_v35  ;;  %v355_v38 = vld [vmem:[%s2477_s25 + $0x5a0] sm:$0xff] }
  0x43   : > { %352 = vst [vmem:[%s2482_s26 + $0x320] sm:$0xff] %v351_v36  ;;  %354 = vst [vmem:[%s2482_s26 + $0x328] sm:$0xff] %v353_v37  ;;  %v357_v39 = vld [vmem:[%s2477_s25 + $0x5a8] sm:$0xff] }
  0x44   : > { %356 = vst [vmem:[%s2482_s26 + $0x330] sm:$0xff] %v355_v38  ;;  %358 = vst [vmem:[%s2482_s26 + $0x338] sm:$0xff] %v357_v39 }
  0x45 PF: > { %p1966_p5 = scmp.ge.s32.totalorder %s2420_s14, 1  ;;  %p363_p6 = scmp.lt.s32.totalorder %s2420_s14, 3 }
  0x47   : > { %p364_p7 = pnand %p1966_p5, %p363_p6 }
  0x48   : > { %s370_s22 = sand.u32 (!%p364_p7), 1, %s2412_s12  }
  0x49   : > { %367 = sbr.rel (%p364_p7) target bundleno = 551 (0x227), region = 51 }
  0x4a   : > { %s2191_s27 = smul.u32 (!%p364_p7), 832, %s370_s22 }
  0x4c   : > { %s2743_s6 = scalar_lea.vmem (!%p364_p7), [#allocation2], %s2191_s27 }
  0x4e   : > { %v2217_v40 = vld [vmem:[%s3123_s1 + $0x38] sm:$0xff]   ;;  %v2422_v41 = vmov 0   ;;  %v2218_v42 = vld [vmem:[%s3123_s1 + $0x30] sm:$0xff]   ;;  %v2219_v43 = vld [vmem:[%s3123_s1 + $0x28] sm:$0xff]   ;;  %vm1199_vm0 = vcmask 130048  }
  0x4f   : > { %1278 = vmatprep.subr.bf16.mxu0 %v2422_v41  ;;  %1519 = vmatprep.subr.bf16.mxu1 %v2422_v41  ;;  %v2223_v44 = vld [vmem:[%s3123_s1 + $0xb8] sm:$0xff]   ;;  %v2225_v45 = vld [vmem:[%s3123_s1 + $0xb0] sm:$0xff]   ;;  %v2220_v46 = vld [vmem:[%s3123_s1 + $0x20] sm:$0xff]  }
  0x50   : > { %1279 = vmatpush1.bf16.msra.mxu0 %v2217_v40  ;;  %1520 = vmatpush1.bf16.msra.mxu1 %v2223_v44  ;;  %v2227_v47 = vld [vmem:[%s3123_s1 + $0xa8] sm:$0xff]   ;;  %v2221_v48 = vld [vmem:[%s3123_s1 + $0x18] sm:$0xff]   ;;  %v2229_v49 = vld [vmem:[%s3123_s1 + $0xa0] sm:$0xff]  }
  0x51   : > { %1280 = vmatprep.subr.bf16.mxu0 %v2422_v41  ;;  %1521 = vmatprep.subr.bf16.mxu1 %v2422_v41  ;;  %v2222_v50 = vld [vmem:[%s3123_s1 + $0x10] sm:$0xff]   ;;  %v2231_v51 = vld [vmem:[%s3123_s1 + $0x98] sm:$0xff]   ;;  %v2224_v52 = vld [vmem:[%s3123_s1 + $0x8] sm:$0xff]  }
  0x52   : > { %v2233_v53 = vld [vmem:[%s3123_s1 + $0x90] sm:$0xff]   ;;  %v2243_v54 = vld [vmem:[%s2743_s6 + $0xc] ss:$16 sps:$4 sm:$0xff]   ;;  %v2226_v55 = vld [vmem:[%s3123_s1] sm:$0xff]  }
  0x53   : > { %2097 = vmatprep.mubr.msk.bf16.mxu1 %vm1199_vm0, %v2243_v54  ;;  %v2247_v56 = vld [vmem:[%s2743_s6 + $0x4] ss:$16 sps:$4 sm:$0xff]   ;;  %v2235_v57 = vld [vmem:[%s3123_s1 + $0x88] sm:$0xff]   ;;  %v2228_v58 = vld [vmem:[%s3123_s1 + $0x78] sm:$0xff]  }
  0x54   : > { %1281 = vmatpush1.bf16.msra.mxu0 %v2218_v42  ;;  %1522 = vmatpush1.bf16.msra.mxu1 %v2225_v45  ;;  %v2237_v59 = vld [vmem:[%s3123_s1 + $0x80] sm:$0xff]   ;;  %v2230_v60 = vld [vmem:[%s3123_s1 + $0x70] sm:$0xff]   ;;  %v2232_v62 = vld [vmem:[%s3123_s1 + $0x68] sm:$0xff]  }
  0x55   : > { %1282 = vmatprep.subr.bf16.mxu0 %v2422_v41  ;;  %1523 = vmatprep.subr.bf16.mxu1 %v2422_v41  ;;  %v2239_v61 = vld [vmem:[%s3123_s1 + $0xc0] sm:$0xff]   ;;  %v2241_v63 = vld [vmem:[%s2743_s6 + $0x8] ss:$16 sps:$4 sm:$0xff]   ;;  %v2248_v0 = vld [vmem:[%s2743_s6 + $0x2c] ss:$16 sps:$4 sm:$0xff]  }
  0x56   : > { %1310 = vmatprep.mubr.bf16.mxu0 %v2247_v56  ;;  %v2234_v1 = vld [vmem:[%s3123_s1 + $0x60] sm:$0xff]   ;;  %v2236_v2 = vld [vmem:[%s3123_s1 + $0x58] sm:$0xff]   ;;  %v2238_v5 = vld [vmem:[%s3123_s1 + $0x50] sm:$0xff]  }
  0x57   : > { %v2250_v3 = vld [vmem:[%s2743_s6 + $0x28] ss:$16 sps:$4 sm:$0xff]   ;;  %v2254_v4 = vld [vmem:[%s2743_s6 + $0x4c] ss:$16 sps:$4 sm:$0xff]   ;;  %v2244_v9 = vld [vmem:[%s3123_s1 + $0x40] sm:$0xff]  }
  0x58   : > { %1283 = vmatpush1.bf16.msra.mxu0 %v2219_v43  ;;  %1524 = vmatpush1.bf16.msra.mxu1 %v2227_v47  ;;  %v2240_v6 = vld [vmem:[%s3123_s1 + $0x48] sm:$0xff]   ;;  %v2245_v10 = vld [vmem:[%s2743_s6] ss:$16 sps:$4 sm:$0xff]   ;;  %v2251_v11 = vld [vmem:[%s2743_s6 + $0x24] ss:$16 sps:$4 sm:$0xff]  }
  0x59   : > { %1284 = vmatprep.subr.bf16.mxu0 %v2422_v41  ;;  %1525 = vmatprep.subr.bf16.mxu1 %v2422_v41  ;;  %v2256_v7 = vld [vmem:[%s2743_s6 + $0x48] ss:$16 sps:$4 sm:$0xff]   ;;  %v2260_v8 = vld [vmem:[%s2743_s6 + $0x6c] ss:$16 sps:$4 sm:$0xff]   ;;  %v2253_v14 = vld [vmem:[%s2743_s6 + $0x20] ss:$16 sps:$4 sm:$0xff]  }
  0x5a   : > { %v2262_v12 = vld [vmem:[%s2743_s6 + $0x68] ss:$16 sps:$4 sm:$0xff]   ;;  %v2266_v13 = vld [vmem:[%s2743_s6 + $0x8c] ss:$16 sps:$4 sm:$0xff]   ;;  %v2257_v15 = vld [vmem:[%s2743_s6 + $0x44] ss:$16 sps:$4 sm:$0xff]  }
  0x5b   : > { %v2268_v16 = vld [vmem:[%s2743_s6 + $0x88] ss:$16 sps:$4 sm:$0xff]   ;;  %v2272_v17 = vld [vmem:[%s2743_s6 + $0xac] ss:$16 sps:$4 sm:$0xff]   ;;  %v2259_v18 = vld [vmem:[%s2743_s6 + $0x40] ss:$16 sps:$4 sm:$0xff]  }
  0x5c   : > { %1285 = vmatpush1.bf16.msra.mxu0 %v2220_v46  ;;  %1526 = vmatpush1.bf16.msra.mxu1 %v2229_v49  ;;  %v2263_v19 = vld [vmem:[%s2743_s6 + $0x64] ss:$16 sps:$4 sm:$0xff]   ;;  %v2274_v20 = vld [vmem:[%s2743_s6 + $0xa8] ss:$16 sps:$4 sm:$0xff]   ;;  %v2278_v21 = vld [vmem:[%s2743_s6 + $0xcc] ss:$16 sps:$4 sm:$0xff]  }
  0x5d   : > { %1286 = vmatprep.subr.bf16.mxu0 %v2422_v41  ;;  %1527 = vmatprep.subr.bf16.mxu1 %v2422_v41  ;;  %v2265_v22 = vld [vmem:[%s2743_s6 + $0x60] ss:$16 sps:$4 sm:$0xff]   ;;  %v2269_v23 = vld [vmem:[%s2743_s6 + $0x84] ss:$16 sps:$4 sm:$0xff]   ;;  %v2280_v24 = vld [vmem:[%s2743_s6 + $0xc8] ss:$16 sps:$4 sm:$0xff]  }
  0x5e   : > { %v2284_v25 = vld [vmem:[%s2743_s6 + $0xec] ss:$16 sps:$4 sm:$0xff]   ;;  %v2271_v26 = vld [vmem:[%s2743_s6 + $0x80] ss:$16 sps:$4 sm:$0xff]   ;;  %v2275_v27 = vld [vmem:[%s2743_s6 + $0xa4] ss:$16 sps:$4 sm:$0xff]  }
  0x5f   : > { %v2286_v28 = vld [vmem:[%s2743_s6 + $0xe8] ss:$16 sps:$4 sm:$0xff]   ;;  %v2290_v29 = vld [vmem:[%s2743_s6 + $0x10c] ss:$16 sps:$4 sm:$0xff]   ;;  %v2277_v30 = vld [vmem:[%s2743_s6 + $0xa0] ss:$16 sps:$4 sm:$0xff]  }
  0x60   : > { %1287 = vmatpush1.bf16.msra.mxu0 %v2221_v48  ;;  %1528 = vmatpush1.bf16.msra.mxu1 %v2231_v51  ;;  %v2281_v31 = vld [vmem:[%s2743_s6 + $0xc4] ss:$16 sps:$4 sm:$0xff]   ;;  %v2292_v32 = vld [vmem:[%s2743_s6 + $0x108] ss:$16 sps:$4 sm:$0xff]   ;;  %v2296_v33 = vld [vmem:[%s2743_s6 + $0x12c] ss:$16 sps:$4 sm:$0xff]  }
  0x61   : > { %1288 = vmatprep.subr.bf16.mxu0 %v2422_v41  ;;  %1529 = vmatprep.subr.bf16.mxu1 %v2422_v41  ;;  %v2283_v34 = vld [vmem:[%s2743_s6 + $0xc0] ss:$16 sps:$4 sm:$0xff]   ;;  %v2287_v35 = vld [vmem:[%s2743_s6 + $0xe4] ss:$16 sps:$4 sm:$0xff]   ;;  %v2298_v36 = vld [vmem:[%s2743_s6 + $0x128] ss:$16 sps:$4 sm:$0xff]  }
  0x62   : > { %v2302_v37 = vld [vmem:[%s2743_s6 + $0x14c] ss:$16 sps:$4 sm:$0xff]   ;;  %v2289_v38 = vld [vmem:[%s2743_s6 + $0xe0] ss:$16 sps:$4 sm:$0xff]   ;;  %v2293_v39 = vld [vmem:[%s2743_s6 + $0x104] ss:$16 sps:$4 sm:$0xff]  }
  0x63   : > { %v2304_v40 = vld [vmem:[%s2743_s6 + $0x148] ss:$16 sps:$4 sm:$0xff]   ;;  %v2295_v42 = vld [vmem:[%s2743_s6 + $0x100] ss:$16 sps:$4 sm:$0xff]   ;;  %v2299_v43 = vld [vmem:[%s2743_s6 + $0x124] ss:$16 sps:$4 sm:$0xff]  }
  0x64   : > { %1289 = vmatpush1.bf16.msra.mxu0 %v2222_v50  ;;  %1530 = vmatpush1.bf16.msra.mxu1 %v2233_v53  ;;  %v2310_v44 = vld [vmem:[%s2743_s6 + $0x168] ss:$16 sps:$4 sm:$0xff]   ;;  %v2314_v45 = vld [vmem:[%s2743_s6 + $0x18c] ss:$16 sps:$4 sm:$0xff]   ;;  %v2301_v46 = vld [vmem:[%s2743_s6 + $0x120] ss:$16 sps:$4 sm:$0xff]  }
  0x65   : > { %1290 = vmatprep.subr.bf16.mxu0 %v2422_v41  ;;  %1531 = vmatprep.subr.bf16.mxu1 %v2422_v41  ;;  %v2305_v47 = vld [vmem:[%s2743_s6 + $0x144] ss:$16 sps:$4 sm:$0xff]   ;;  %v2316_v48 = vld [vmem:[%s2743_s6 + $0x188] ss:$16 sps:$4 sm:$0xff]   ;;  %v2320_v49 = vld [vmem:[%s2743_s6 + $0x1ac] ss:$16 sps:$4 sm:$0xff]  }
  0x66   : > { %v2307_v50 = vld [vmem:[%s2743_s6 + $0x140] ss:$16 sps:$4 sm:$0xff]   ;;  %v2311_v51 = vld [vmem:[%s2743_s6 + $0x164] ss:$16 sps:$4 sm:$0xff]   ;;  %v2326_v53 = vld [vmem:[%s2743_s6 + $0x1cc] ss:$16 sps:$4 sm:$0xff]  }
  0x67   : > { %v2313_v54 = vld [vmem:[%s2743_s6 + $0x160] ss:$16 sps:$4 sm:$0xff]   ;;  %v2328_v56 = vld [vmem:[%s2743_s6 + $0x1c8] ss:$16 sps:$4 sm:$0xff]  }
  0x68   : > { %1291 = vmatpush1.bf16.msra.mxu0 %v2224_v52  ;;  %1532 = vmatpush1.bf16.msra.mxu1 %v2235_v57  ;;  %v2322_v52 = vld [vmem:[%s2743_s6 + $0x1a8] ss:$16 sps:$4 sm:$0xff]   ;;  %v2332_v57 = vld [vmem:[%s2743_s6 + $0x1ec] ss:$16 sps:$4 sm:$0xff]  }
  0x69   : > { %1292 = vmatprep.subr.bf16.mxu0 %v2422_v41  ;;  %1533 = vmatprep.subr.bf16.mxu1 %v2422_v41 }
  0x6c   : > { %1293 = vmatpush1.bf16.msra.mxu0 %v2226_v55  ;;  %1534 = vmatpush1.bf16.msra.mxu1 %v2237_v59  ;;  %v2317_v55 = vld [vmem:[%s2743_s6 + $0x184] ss:$16 sps:$4 sm:$0xff]  }
  0x6d   : > { %1294 = vmatprep.subr.bf16.mxu0 %v2422_v41  ;;  %1549 = vmatprep.subr.bf16.mxu1 %v2422_v41  ;;  %v2323_v59 = vld [vmem:[%s2743_s6 + $0x1a4] ss:$16 sps:$4 sm:$0xff]  }
  0x70   : > { %1295 = vmatpush2.bf16.msra.mxu0 %v2228_v58  ;;  %1550 = vmatpush2.bf16.msra.mxu1 %v2239_v61  ;;  %v2319_v58 = vld [vmem:[%s2743_s6 + $0x180] ss:$16 sps:$4 sm:$0xff]   ;;  %v2338_v61 = vld [vmem:[%s2743_s6 + $0x20c] ss:$16 sps:$4 sm:$0xff]  }
  0x71   : > { %1296 = vmatprep.subr.bf16.mxu0 %v2422_v41 }
  0x73   : > { %1552 = vmatmul.mubr.bf16.vlgmr.msra.gmra.mxu1 %v2241_v63  ;;  %v2329_v63 = vld [vmem:[%s2743_s6 + $0x1c4] ss:$16 sps:$4 sm:$0xff]  }
  0x74   : > { %1297 = vmatpush2.bf16.msra.mxu0 %v2230_v60  ;;  %2098 = vmatprep.mubr.msk.bf16.mxu1 %vm1199_vm0, %v2248_v0  ;;  %v2334_v60 = vld [vmem:[%s2743_s6 + $0x1e8] ss:$16 sps:$4 sm:$0xff]  }
  0x75   : > { %1298 = vmatprep.subr.bf16.mxu0 %v2422_v41  ;;  %v2340_v0 = vld [vmem:[%s2743_s6 + $0x208] ss:$16 sps:$4 sm:$0xff]  }
  0x78   : > { %1299 = vmatpush2.bf16.msra.mxu0 %v2232_v62  ;;  %v2325_v62 = vld [vmem:[%s2743_s6 + $0x1a0] ss:$16 sps:$4 sm:$0xff]  }
  0x79   : > { %1300 = vmatprep.subr.bf16.mxu0 %v2422_v41 }
  0x7b   : > { %1560 = vmatmul.mubr.bf16.gmra.mxu1 %v2250_v3  ;;  %v2335_v3 = vld [vmem:[%s2743_s6 + $0x1e4] ss:$16 sps:$4 sm:$0xff]  }
  0x7c   : > { %1301 = vmatpush2.bf16.msra.mxu0 %v2234_v1  ;;  %2099 = vmatprep.mubr.msk.bf16.mxu1 %vm1199_vm0, %v2254_v4  ;;  %v2344_v1 = vld [vmem:[%s2743_s6 + $0x22c] ss:$16 sps:$4 sm:$0xff]   ;;  %v2346_v4 = vld [vmem:[%s2743_s6 + $0x228] ss:$16 sps:$4 sm:$0xff]  }
  0x7d   : > { %1302 = vmatprep.subr.bf16.mxu0 %v2422_v41 }
  0x80   : > { %1303 = vmatpush2.bf16.msra.mxu0 %v2236_v2  ;;  %v2331_v2 = vld [vmem:[%s2743_s6 + $0x1c0] ss:$16 sps:$4 sm:$0xff]  }
  0x81   : > { %1304 = vmatprep.subr.bf16.mxu0 %v2422_v41 }
  0x83   : > { %1568 = vmatmul.mubr.bf16.gmra.mxu1 %v2256_v7  ;;  %v2341_v7 = vld [vmem:[%s2743_s6 + $0x204] ss:$16 sps:$4 sm:$0xff]  }
  0x84   : > { %1305 = vmatpush2.bf16.msra.mxu0 %v2238_v5  ;;  %2100 = vmatprep.mubr.msk.bf16.mxu1 %vm1199_vm0, %v2260_v8  ;;  %v2350_v5 = vld [vmem:[%s2743_s6 + $0x24c] ss:$16 sps:$4 sm:$0xff]   ;;  %v2352_v8 = vld [vmem:[%s2743_s6 + $0x248] ss:$16 sps:$4 sm:$0xff]  }
  0x85   : > { %1306 = vmatprep.subr.bf16.mxu0 %v2422_v41 }
  0x88   : > { %1307 = vmatpush2.bf16.msra.mxu0 %v2240_v6  ;;  %v2337_v6 = vld [vmem:[%s2743_s6 + $0x1e0] ss:$16 sps:$4 sm:$0xff]  }
  0x89   : > { %1308 = vmatprep.subr.bf16.mxu0 %v2422_v41  ;;  %v2308_v41 = vld [vmem:[%s2743_s6 + $0x16c] ss:$16 sps:$4 sm:$0xff]  }
  0x8b   : > { %1576 = vmatmul.mubr.bf16.gmra.mxu1 %v2262_v12  ;;  %v2358_v12 = vld [vmem:[%s2743_s6 + $0x268] ss:$16 sps:$4 sm:$0xff]  }
  0x8c   : > { %1309 = vmatpush2.bf16.msra.mxu0 %v2244_v9  ;;  %2101 = vmatprep.mubr.msk.bf16.mxu1 %vm1199_vm0, %v2266_v13  ;;  %v2356_v9 = vld [vmem:[%s2743_s6 + $0x26c] ss:$16 sps:$4 sm:$0xff]  }
  0x8d   : > { %v2362_v13 = vld [vmem:[%s2743_s6 + $0x28c] ss:$16 sps:$4 sm:$0xff]  }
  0x8f   : > { %1311 = vmatmul.mubr.bf16.vlgmr.msra.gmra.mxu0 %v2245_v10  ;;  %v2343_v10 = vld [vmem:[%s2743_s6 + $0x200] ss:$16 sps:$4 sm:$0xff]  }
  0x90   : > { %1318 = vmatprep.mubr.bf16.mxu0 %v2251_v11  ;;  %v2347_v11 = vld [vmem:[%s2743_s6 + $0x224] ss:$16 sps:$4 sm:$0xff]  }
  0x93   : > { %1584 = vmatmul.mubr.bf16.gmra.mxu1 %v2268_v16  ;;  %v2364_v16 = vld [vmem:[%s2743_s6 + $0x288] ss:$16 sps:$4 sm:$0xff]  }
  0x94   : > { %2102 = vmatprep.mubr.msk.bf16.mxu1 %vm1199_vm0, %v2272_v17  ;;  %v2368_v17 = vld [vmem:[%s2743_s6 + $0x2ac] ss:$16 sps:$4 sm:$0xff]  }
  0x97   : > { %1319 = vmatmul.mubr.bf16.gmra.mxu0 %v2253_v14  ;;  %v2349_v14 = vld [vmem:[%s2743_s6 + $0x220] ss:$16 sps:$4 sm:$0xff]  }
  0x98   : > { %1326 = vmatprep.mubr.bf16.mxu0 %v2257_v15  ;;  %v2353_v15 = vld [vmem:[%s2743_s6 + $0x244] ss:$16 sps:$4 sm:$0xff]  }
  0x9b   : > { %1592 = vmatmul.mubr.bf16.gmra.mxu1 %v2274_v20  ;;  %v2370_v20 = vld [vmem:[%s2743_s6 + $0x2a8] ss:$16 sps:$4 sm:$0xff]  }
  0x9c   : > { %2103 = vmatprep.mubr.msk.bf16.mxu1 %vm1199_vm0, %v2278_v21  ;;  %v2374_v21 = vld [vmem:[%s2743_s6 + $0x2cc] ss:$16 sps:$4 sm:$0xff]  }
  0x9f   : > { %1327 = vmatmul.mubr.bf16.gmra.mxu0 %v2259_v18  ;;  %v2355_v18 = vld [vmem:[%s2743_s6 + $0x240] ss:$16 sps:$4 sm:$0xff]  }
  0xa0   : > { %1334 = vmatprep.mubr.bf16.mxu0 %v2263_v19  ;;  %v2359_v19 = vld [vmem:[%s2743_s6 + $0x264] ss:$16 sps:$4 sm:$0xff]  }
  0xa3   : > { %1600 = vmatmul.mubr.bf16.gmra.mxu1 %v2280_v24  ;;  %v2376_v24 = vld [vmem:[%s2743_s6 + $0x2c8] ss:$16 sps:$4 sm:$0xff]  }
  0xa4   : > { %2104 = vmatprep.mubr.msk.bf16.mxu1 %vm1199_vm0, %v2284_v25  ;;  %v2380_v25 = vld [vmem:[%s2743_s6 + $0x2ec] ss:$16 sps:$4 sm:$0xff]  }
  0xa7   : > { %1335 = vmatmul.mubr.bf16.gmra.mxu0 %v2265_v22  ;;  %v2361_v22 = vld [vmem:[%s2743_s6 + $0x260] ss:$16 sps:$4 sm:$0xff]  }
  0xa8   : > { %1342 = vmatprep.mubr.bf16.mxu0 %v2269_v23  ;;  %v2365_v23 = vld [vmem:[%s2743_s6 + $0x284] ss:$16 sps:$4 sm:$0xff]  }
  0xab   : > { %1608 = vmatmul.mubr.bf16.gmra.mxu1 %v2286_v28  ;;  %v2382_v28 = vld [vmem:[%s2743_s6 + $0x2e8] ss:$16 sps:$4 sm:$0xff]  }
  0xac   : > { %2105 = vmatprep.mubr.msk.bf16.mxu1 %vm1199_vm0, %v2290_v29  ;;  %v2386_v29 = vld [vmem:[%s2743_s6 + $0x30c] ss:$16 sps:$4 sm:$0xff]  }
  0xaf   : > { %1343 = vmatmul.mubr.bf16.gmra.mxu0 %v2271_v26  ;;  %v2367_v26 = vld [vmem:[%s2743_s6 + $0x280] ss:$16 sps:$4 sm:$0xff]  }
  0xb0   : > { %1350 = vmatprep.mubr.bf16.mxu0 %v2275_v27  ;;  %v2371_v27 = vld [vmem:[%s2743_s6 + $0x2a4] ss:$16 sps:$4 sm:$0xff]  }
  0xb3   : > { %1616 = vmatmul.mubr.bf16.gmra.mxu1 %v2292_v32  ;;  %v2388_v32 = vld [vmem:[%s2743_s6 + $0x308] ss:$16 sps:$4 sm:$0xff]  }
  0xb4   : > { %2106 = vmatprep.mubr.msk.bf16.mxu1 %vm1199_vm0, %v2296_v33  ;;  %v2392_v33 = vld [vmem:[%s2743_s6 + $0x32c] ss:$16 sps:$4 sm:$0xff]  }
  0xb7   : > { %1351 = vmatmul.mubr.bf16.gmra.mxu0 %v2277_v30  ;;  %v2373_v30 = vld [vmem:[%s2743_s6 + $0x2a0] ss:$16 sps:$4 sm:$0xff]  }
  0xb8   : > { %1358 = vmatprep.mubr.bf16.mxu0 %v2281_v31  ;;  %v2377_v31 = vld [vmem:[%s2743_s6 + $0x2c4] ss:$16 sps:$4 sm:$0xff]  }
  0xbb   : > { %1624 = vmatmul.mubr.bf16.gmra.mxu1 %v2298_v36 }
  0xbc   : > { %2107 = vmatprep.mubr.msk.bf16.mxu1 %vm1199_vm0, %v2302_v37  ;;  %v2383_v37 = vld [vmem:[%s2743_s6 + $0x2e4] ss:$16 sps:$4 sm:$0xff]  }
  0xbf   : > { %1359 = vmatmul.mubr.bf16.gmra.mxu0 %v2283_v34 }
  0xc0   : > { %1366 = vmatprep.mubr.bf16.mxu0 %v2287_v35  ;;  %v2379_v35 = vld [vmem:[%s2743_s6 + $0x2c0] ss:$16 sps:$4 sm:$0xff]  }
  0xc3   : > { %1632 = vmatmul.mubr.bf16.gmra.mxu1 %v2304_v40 }
  0xc4   : > { %2108 = vmatprep.mubr.msk.bf16.mxu1 %vm1199_vm0, %v2308_v41 }
  0xc7   : > { %1367 = vmatmul.mubr.bf16.gmra.mxu0 %v2289_v38 }
  0xc8   : > { %1374 = vmatprep.mubr.bf16.mxu0 %v2293_v39  ;;  %v2394_v39 = vld [vmem:[%s2743_s6 + $0x328] ss:$16 sps:$4 sm:$0xff]  }
  0xcb   : > { %1640 = vmatmul.mubr.bf16.gmra.mxu1 %v2310_v44  ;;  %v2389_v44 = vld [vmem:[%s2743_s6 + $0x304] ss:$16 sps:$4 sm:$0xff]  }
  0xcc   : > { %2109 = vmatprep.mubr.msk.bf16.mxu1 %vm1199_vm0, %v2314_v45 }
  0xcf   : > { %1375 = vmatmul.mubr.bf16.gmra.mxu0 %v2295_v42  ;;  %v2385_v42 = vld [vmem:[%s2743_s6 + $0x2e0] ss:$16 sps:$4 sm:$0xff]  }
  0xd0   : > { %1382 = vmatprep.mubr.bf16.mxu0 %v2299_v43 }
  0xd3   : > { %1648 = vmatmul.mubr.bf16.gmra.mxu1 %v2316_v48  ;;  %v2391_v48 = vld [vmem:[%s2743_s6 + $0x300] ss:$16 sps:$4 sm:$0xff]  }
  0xd4   : > { %2110 = vmatprep.mubr.msk.bf16.mxu1 %vm1199_vm0, %v2320_v49 }
  0xd7   : > { %1383 = vmatmul.mubr.bf16.gmra.mxu0 %v2301_v46 }
  0xd8   : > { %1390 = vmatprep.mubr.bf16.mxu0 %v2305_v47 }
  0xdb   : > { %1656 = vmatmul.mubr.bf16.gmra.mxu1 %v2322_v52 }
  0xdc   : > { %2111 = vmatprep.mubr.msk.bf16.mxu1 %vm1199_vm0, %v2326_v53 }
  0xdf   : > { %1391 = vmatmul.mubr.bf16.gmra.mxu0 %v2307_v50  ;;  %v2395_v50 = vld [vmem:[%s2743_s6 + $0x324] ss:$16 sps:$4 sm:$0xff]  }
  0xe0   : > { %1398 = vmatprep.mubr.bf16.mxu0 %v2311_v51 }
  0xe3   : > { %1664 = vmatmul.mubr.bf16.gmra.mxu1 %v2328_v56 }
  0xe4   : > { %2112 = vmatprep.mubr.msk.bf16.mxu1 %vm1199_vm0, %v2332_v57 }
  0xe7   : > { %1399 = vmatmul.mubr.bf16.gmra.mxu0 %v2313_v54 }
  0xe8   : > { %1406 = vmatprep.mubr.bf16.mxu0 %v2317_v55 }
  0xeb   : > { %1672 = vmatmul.mubr.bf16.gmra.mxu1 %v2334_v60 }
  0xec   : > { %2113 = vmatprep.mubr.msk.bf16.mxu1 %vm1199_vm0, %v2338_v61 }
  0xef   : > { %1407 = vmatmul.mubr.bf16.gmra.mxu0 %v2319_v58  ;;  %v2397_v58 = vld [vmem:[%s2743_s6 + $0x320] ss:$16 sps:$4 sm:$0xff]   ;;  %s394_s6 = smul.u32 13, %s1960_s15 }
  0xf0   : > { %1414 = vmatprep.mubr.bf16.mxu0 %v2323_v59 }
  0xf1   : > { %p395_p8 = scmp.lt.s32.totalorder %s394_s6, 25 }
  0xf3   : > { %1680 = vmatmul.mubr.bf16.gmra.mxu1 %v2340_v0  ;;  %s3130_s6 = smov (!%p395_p8, %s394_s6), 25 }
  0xf4   : > { %2114 = vmatprep.mubr.msk.bf16.mxu1 %vm1199_vm0, %v2344_v1  ;;  %s1967_s14 = sshll.u32 %s3130_s6, 2 }
  0xf5   : > { %s3082_s18 = scalar_lea.vmem %s3125_s3, %s1967_s14 }
  0xf7   : > { %1415 = vmatmul.mubr.bf16.gmra.mxu0 %v2325_v62 }
  0xf8   : > { %1422 = vmatprep.mubr.bf16.mxu0 %v2329_v63 }
  0xfb   : > { %1688 = vmatmul.mubr.bf16.gmra.mxu1 %v2346_v4 }
  0xfc   : > { %2115 = vmatprep.mubr.msk.bf16.mxu1 %vm1199_vm0, %v2350_v5 }
  0xff   : > { %1423 = vmatmul.mubr.bf16.gmra.mxu0 %v2331_v2 }
 0x100   : > { %1430 = vmatprep.mubr.bf16.mxu0 %v2335_v3 }
 0x103   : > { %1696 = vmatmul.mubr.bf16.gmra.mxu1 %v2352_v8 }
 0x104   : > { %2116 = vmatprep.mubr.msk.bf16.mxu1 %vm1199_vm0, %v2356_v9 }
 0x107   : > { %1431 = vmatmul.mubr.bf16.gmra.mxu0 %v2337_v6 }
 0x108   : > { %1438 = vmatprep.mubr.bf16.mxu0 %v2341_v7 }
 0x10b   : > { %1704 = vmatmul.mubr.bf16.gmra.mxu1 %v2358_v12 }
 0x10c   : > { %2117 = vmatprep.mubr.msk.bf16.mxu1 %vm1199_vm0, %v2362_v13 }
 0x10f   : > { %1439 = vmatmul.mubr.bf16.gmra.mxu0 %v2343_v10 }
 0x110   : > { %1446 = vmatprep.mubr.bf16.mxu0 %v2347_v11 }
 0x113   : > { %1712 = vmatmul.mubr.bf16.gmra.mxu1 %v2364_v16 }
 0x114   : > { %2118 = vmatprep.mubr.msk.bf16.mxu1 %vm1199_vm0, %v2368_v17 }
 0x117   : > { %1447 = vmatmul.mubr.bf16.gmra.mxu0 %v2349_v14 }
 0x118   : > { %1454 = vmatprep.mubr.bf16.mxu0 %v2353_v15 }
 0x11b   : > { %1720 = vmatmul.mubr.bf16.gmra.mxu1 %v2370_v20 }
 0x11c   : > { %2119 = vmatprep.mubr.msk.bf16.mxu1 %vm1199_vm0, %v2374_v21 }
 0x11f   : > { %1455 = vmatmul.mubr.bf16.gmra.mxu0 %v2355_v18 }
 0x120   : > { %1462 = vmatprep.mubr.bf16.mxu0 %v2359_v19 }
 0x123   : > { %1728 = vmatmul.mubr.bf16.gmra.mxu1 %v2376_v24 }
 0x124   : > { %2120 = vmatprep.mubr.msk.bf16.mxu1 %vm1199_vm0, %v2380_v25 }
 0x127   : > { %1463 = vmatmul.mubr.bf16.gmra.mxu0 %v2361_v22 }
 0x128   : > { %1470 = vmatprep.mubr.bf16.mxu0 %v2365_v23 }
 0x12b   : > { %1736 = vmatmul.mubr.bf16.gmra.mxu1 %v2382_v28 }
 0x12c   : > { %2121 = vmatprep.mubr.msk.bf16.mxu1 %vm1199_vm0, %v2386_v29 }
 0x12f   : > { %1471 = vmatmul.mubr.bf16.gmra.mxu0 %v2367_v26 }
 0x130   : > { %1478 = vmatprep.mubr.bf16.mxu0 %v2371_v27 }
 0x133   : > { %v1553_v34 = vpop.f32.mrf.mxu1  ;;  %1744 = vmatmul.mubr.bf16.gmra.mxu1 %v2388_v32 }
 0x134   : > { %2122 = vmatprep.mubr.msk.bf16.mxu1 %vm1199_vm0, %v2392_v33 }
 0x135   : > { %v1555_v36 = vpop.f32.mrf.mxu1 }
 0x137   : > { %1479 = vmatmul.mubr.bf16.gmra.mxu0 %v2373_v30  ;;  %v1556_v38 = vpop.f32.mrf.mxu1 }
 0x138   : > { %1486 = vmatprep.mubr.bf16.mxu0 %v2377_v31 }
 0x139   : > { %v1558_v40 = vpop.f32.mrf.mxu1 }
 0x13b   : > { %v1561_v41 = vpop.f32.mrf.mxu1  ;;  %1752 = vmatmul.mubr.bf16.gmra.mxu1 %v2394_v39 }
 0x13d   : > { %v1563_v43 = vpop.f32.mrf.mxu1 }
 0x13f   : > { %1487 = vmatmul.mubr.bf16.gmra.mxu0 %v2379_v35  ;;  %v1564_v45 = vpop.f32.mrf.mxu1 }
 0x140   : > { %1494 = vmatprep.mubr.bf16.mxu0 %v2383_v37 }
 0x141   : > { %v1566_v46 = vpop.f32.mrf.mxu1 }
 0x143   : > { %v1569_v47 = vpop.f32.mrf.mxu1 }
 0x145   : > { %v1571_v49 = vpop.f32.mrf.mxu1 }
 0x147   : > { %1495 = vmatmul.mubr.bf16.gmra.mxu0 %v2385_v42  ;;  %v1572_v51 = vpop.f32.mrf.mxu1 }
 0x148   : > { %1502 = vmatprep.mubr.bf16.mxu0 %v2389_v44 }
 0x149   : > { %v1574_v53 = vpop.f32.mrf.mxu1 }
 0x14b   : > { %v1577_v56 = vpop.f32.mrf.mxu1 }
 0x14d   : > { %v1579_v59 = vpop.f32.mrf.mxu1 }
 0x14f   : > { %v1312_v52 = vpop.f32.mrf.mxu0  ;;  %1503 = vmatmul.mubr.bf16.gmra.mxu0 %v2391_v48  ;;  %v1580_v62 = vpop.f32.mrf.mxu1 }
 0x150   : > { %v2923_v54 = vadd.f32 %v1553_v34, %v1312_v52  ;;  %1510 = vmatprep.mubr.bf16.mxu0 %v2395_v50 }
 0x151   : > { %v1314_v55 = vpop.f32.mrf.mxu0  ;;  %v1582_v0 = vpop.f32.mrf.mxu1 }
 0x153   : > { %v1315_v57 = vpop.f32.mrf.mxu0  ;;  %v1585_v3 = vpop.f32.mrf.mxu1 }
 0x154   : > { %v2926_v60 = vadd.f32 %v1556_v38, %v1315_v57 }
 0x155   : > { %v1317_v61 = vpop.f32.mrf.mxu0  ;;  %v1587_v5 = vpop.f32.mrf.mxu1 }
 0x157   : > { %v1320_v63 = vpop.f32.mrf.mxu0  ;;  %1511 = vmatmul.mubr.bf16.gmra.mxu0 %v2397_v58  ;;  %v1588_v8 = vpop.f32.mrf.mxu1 }
 0x158   : > { %v2928_v1 = vadd.f32 %v1561_v41, %v1320_v63 }
 0x159   : > { %v1322_v2 = vpop.f32.mrf.mxu0  ;;  %v1590_v10 = vpop.f32.mrf.mxu1 }
 0x15b   : > { %v1323_v4 = vpop.f32.mrf.mxu0  ;;  %v1593_v13 = vpop.f32.mrf.mxu1 }
 0x15c   : > { %v2930_v6 = vadd.f32 %v1564_v45, %v1323_v4 }
 0x15d   : > { %v1325_v7 = vpop.f32.mrf.mxu0  ;;  %v1595_v15 = vpop.f32.mrf.mxu1 }
 0x15f   : > { %v1328_v9 = vpop.f32.mrf.mxu0  ;;  %v1596_v18 = vpop.f32.mrf.mxu1 }
 0x160   : > { %v2932_v11 = vadd.f32 %v1569_v47, %v1328_v9 }
 0x161   : > { %v1330_v12 = vpop.f32.mrf.mxu0  ;;  %v1598_v20 = vpop.f32.mrf.mxu1 }
 0x163   : > { %v1331_v14 = vpop.f32.mrf.mxu0  ;;  %v1601_v23 = vpop.f32.mrf.mxu1 }
 0x164   : > { %v2934_v16 = vadd.f32 %v1572_v51, %v1331_v14 }
 0x165   : > { %v1333_v17 = vpop.f32.mrf.mxu0  ;;  %v1603_v25 = vpop.f32.mrf.mxu1 }
 0x167   : > { %v1336_v19 = vpop.f32.mrf.mxu0  ;;  %v1604_v28 = vpop.f32.mrf.mxu1 }
 0x168   : > { %v2936_v21 = vadd.f32 %v1577_v56, %v1336_v19 }
 0x169   : > { %v1338_v22 = vpop.f32.mrf.mxu0  ;;  %v1606_v30 = vpop.f32.mrf.mxu1 }
 0x16b   : > { %v1339_v24 = vpop.f32.mrf.mxu0  ;;  %v1609_v33 = vpop.f32.mrf.mxu1 }
 0x16c   : > { %v2938_v26 = vadd.f32 %v1580_v62, %v1339_v24 }
 0x16d   : > { %v1341_v27 = vpop.f32.mrf.mxu0  ;;  %v1611_v35 = vpop.f32.mrf.mxu1 }
 0x16f   : > { %v1344_v29 = vpop.f32.mrf.mxu0  ;;  %v1612_v38 = vpop.f32.mrf.mxu1 }
 0x170   : > { %v2940_v31 = vadd.f32 %v1585_v3, %v1344_v29 }
 0x171   : > { %v1346_v32 = vpop.f32.mrf.mxu0  ;;  %v1614_v40 = vpop.f32.mrf.mxu1 }
 0x173   : > { %v1347_v34 = vpop.f32.mrf.mxu0  ;;  %v1617_v43 = vpop.f32.mrf.mxu1 }
 0x174   : > { %v2942_v36 = vadd.f32 %v1588_v8, %v1347_v34 }
 0x175   : > { %v1349_v37 = vpop.f32.mrf.mxu0  ;;  %v1619_v45 = vpop.f32.mrf.mxu1 }
 0x177   : > { %v1352_v39 = vpop.f32.mrf.mxu0  ;;  %v1620_v48 = vpop.f32.mrf.mxu1 }
 0x178   : > { %v2944_v41 = vadd.f32 %v1593_v13, %v1352_v39 }
 0x179   : > { %v1354_v42 = vpop.f32.mrf.mxu0  ;;  %v1622_v50 = vpop.f32.mrf.mxu1 }
 0x17b   : > { %v1355_v44 = vpop.f32.mrf.mxu0  ;;  %v1625_v53 = vpop.f32.mrf.mxu1 }
 0x17c   : > { %v2946_v46 = vadd.f32 %v1596_v18, %v1355_v44 }
 0x17d   : > { %v1357_v47 = vpop.f32.mrf.mxu0  ;;  %v1627_v56 = vpop.f32.mrf.mxu1 }
 0x17f   : > { %v1360_v49 = vpop.f32.mrf.mxu0  ;;  %v1628_v59 = vpop.f32.mrf.mxu1 }
 0x180   : > { %v2948_v51 = vadd.f32 %v1601_v23, %v1360_v49 }
 0x181   : > { %v1362_v52 = vpop.f32.mrf.mxu0  ;;  %v1630_v63 = vpop.f32.mrf.mxu1 }
 0x183   : > { %v1363_v55 = vpop.f32.mrf.mxu0  ;;  %v1633_v3 = vpop.f32.mrf.mxu1 }
 0x184   : > { %v2950_v57 = vadd.f32 %v1604_v28, %v1363_v55 }
 0x185   : > { %v1365_v58 = vpop.f32.mrf.mxu0  ;;  %v1635_v7 = vpop.f32.mrf.mxu1 }
 0x186   : > { %v1760_v61 = vmax.f32 %v2923_v54, %v2950_v57 }
 0x187   : > { %v1368_v62 = vpop.f32.mrf.mxu0  ;;  %v1636_v10 = vpop.f32.mrf.mxu1 }
 0x188   : > { %v2954_v0 = vadd.f32 %v1609_v33, %v1368_v62 }
 0x189   : > { %v1370_v2 = vpop.f32.mrf.mxu0  ;;  %v1638_v14 = vpop.f32.mrf.mxu1 }
 0x18a   : > { %v1763_v4 = vmax.f32 %v2926_v60, %v2954_v0 }
 0x18b   : > { %v1371_v5 = vpop.f32.mrf.mxu0  ;;  %v1641_v18 = vpop.f32.mrf.mxu1 }
 0x18c   : > { %v2958_v8 = vadd.f32 %v1612_v38, %v1371_v5 }
 0x18d   : > { %v1373_v9 = vpop.f32.mrf.mxu0  ;;  %v1643_v22 = vpop.f32.mrf.mxu1 }
 0x18e   : > { %v1766_v12 = vmax.f32 %v2928_v1, %v2958_v8 }
 0x18f   : > { %v1376_v13 = vpop.f32.mrf.mxu0  ;;  %v1644_v25 = vpop.f32.mrf.mxu1 }
 0x190   : > { %v2962_v15 = vadd.f32 %v1617_v43, %v1376_v13 }
 0x191   : > { %v1378_v17 = vpop.f32.mrf.mxu0  ;;  %v1646_v29 = vpop.f32.mrf.mxu1 }
 0x192   : > { %v1769_v19 = vmax.f32 %v2930_v6, %v2962_v15 }
 0x193   : > { %v1379_v20 = vpop.f32.mrf.mxu0  ;;  %v1649_v33 = vpop.f32.mrf.mxu1 }
 0x194   : > { %v2966_v23 = vadd.f32 %v1620_v48, %v1379_v20 }
 0x195   : > { %v1381_v24 = vpop.f32.mrf.mxu0  ;;  %v1651_v37 = vpop.f32.mrf.mxu1 }
 0x196   : > { %v1772_v27 = vmax.f32 %v2932_v11, %v2966_v23 }
 0x197   : > { %v1384_v28 = vpop.f32.mrf.mxu0  ;;  %v1652_v40 = vpop.f32.mrf.mxu1 }
 0x198   : > { %v2970_v30 = vadd.f32 %v1625_v53, %v1384_v28 }
 0x199   : > { %v1386_v32 = vpop.f32.mrf.mxu0  ;;  %v1654_v44 = vpop.f32.mrf.mxu1 }
 0x19a   : > { %v1775_v34 = vmax.f32 %v2934_v16, %v2970_v30 }
 0x19b   : > { %v1387_v35 = vpop.f32.mrf.mxu0  ;;  %v1657_v48 = vpop.f32.mrf.mxu1 }
 0x19c   : > { %v2974_v38 = vadd.f32 %v1628_v59, %v1387_v35 }
 0x19d   : > { %v1389_v39 = vpop.f32.mrf.mxu0  ;;  %v1659_v52 = vpop.f32.mrf.mxu1 }
 0x19e   : > { %v1778_v42 = vmax.f32 %v2936_v21, %v2974_v38 }
 0x19f   : > { %v1392_v43 = vpop.f32.mrf.mxu0  ;;  %v1660_v56 = vpop.f32.mrf.mxu1 }
 0x1a0   : > { %v2978_v45 = vadd.f32 %v1633_v3, %v1392_v43 }
 0x1a1   : > { %v1394_v47 = vpop.f32.mrf.mxu0  ;;  %v1662_v62 = vpop.f32.mrf.mxu1 }
 0x1a2   : > { %v1781_v49 = vmax.f32 %v2938_v26, %v2978_v45 }
 0x1a3   : > { %v1395_v50 = vpop.f32.mrf.mxu0  ;;  %v1665_v3 = vpop.f32.mrf.mxu1 }
 0x1a4   : > { %v2982_v53 = vadd.f32 %v1636_v10, %v1395_v50 }
 0x1a5   : > { %v1397_v55 = vpop.f32.mrf.mxu0  ;;  %v1667_v9 = vpop.f32.mrf.mxu1 }
 0x1a6   : > { %v1784_v58 = vmax.f32 %v2940_v31, %v2982_v53 }
 0x1a7   : > { %v1400_v59 = vpop.f32.mrf.mxu0  ;;  %v1668_v14 = vpop.f32.mrf.mxu1 }
 0x1a8   : > { %v2986_v63 = vadd.f32 %v1641_v18, %v1400_v59 }
 0x1a9   : > { %v1402_v2 = vpop.f32.mrf.mxu0  ;;  %v1670_v22 = vpop.f32.mrf.mxu1 }
 0x1aa   : > { %v1787_v5 = vmax.f32 %v2942_v36, %v2986_v63 }
 0x1ab   : > { %v1403_v7 = vpop.f32.mrf.mxu0  ;;  %v1673_v28 = vpop.f32.mrf.mxu1 }
 0x1ac   : > { %v2990_v13 = vadd.f32 %v1644_v25, %v1403_v7 }
 0x1ad   : > { %v1405_v10 = vpop.f32.mrf.mxu0  ;;  %v1675_v35 = vpop.f32.mrf.mxu1 }
 0x1ae   : > { %v1790_v17 = vmax.f32 %v2944_v41, %v2990_v13 }
 0x1af   : > { %v1408_v20 = vpop.f32.mrf.mxu0  ;;  %v1676_v39 = vpop.f32.mrf.mxu1 }
 0x1b0   : > { %v2994_v24 = vadd.f32 %v1649_v33, %v1408_v20 }
 0x1b1   : > { %v1410_v18 = vpop.f32.mrf.mxu0  ;;  %v1678_v47 = vpop.f32.mrf.mxu1 }
 0x1b2   : > { %v1793_v29 = vmax.f32 %v2946_v46, %v2994_v24 }
 0x1b3   : > { %v1411_v32 = vpop.f32.mrf.mxu0  ;;  %v1681_v33 = vpop.f32.mrf.mxu1 }
 0x1b4   : > { %v2998_v37 = vadd.f32 %v1652_v40, %v1411_v32 }
 0x1b5   : > { %v1413_v25 = vpop.f32.mrf.mxu0  ;;  %v1683_v62 = vpop.f32.mrf.mxu1 }
 0x1b6   : > { %v1796_v43 = vmax.f32 %v2948_v51, %v2998_v37 }
 0x1b7   : > { %v1416_v44 = vpop.f32.mrf.mxu0  ;;  %v1684_v7 = vpop.f32.mrf.mxu1 }
 0x1b8   : > { %v1658_v50 = vadd.f32 %v1657_v48, %v1416_v44 }
 0x1b9   : > { %v1418_v52 = vpop.f32.mrf.mxu0  ;;  %v1686_v20 = vpop.f32.mrf.mxu1 }
 0x1ba   : > { %v3005_v55 = vmax.f32 %v1760_v61, %v1658_v50 }
 0x1bb   : > { %v1419_v59 = vpop.f32.mrf.mxu0  ;;  %v1689_v18 = vpop.f32.mrf.mxu1 }
 0x1bc   : > { %v1661_v2 = vadd.f32 %v1660_v56, %v1419_v59 }
 0x1bd   : > { %v1421_v40 = vpop.f32.mrf.mxu0  ;;  %v1691_v61 = vpop.f32.mrf.mxu1 }
 0x1be   : > { %v3010_v9 = vmax.f32 %v1763_v4, %v1661_v2 }
 0x1bf   : > { %v1424_v10 = vpop.f32.mrf.mxu0  ;;  %v1692_v35 = vpop.f32.mrf.mxu1 }
 0x1c0   : > { %v1666_v48 = vadd.f32 %v1665_v3, %v1424_v10 }
 0x1c1   : > { %v1426_v22 = vpop.f32.mrf.mxu0  ;;  %v1694_v4 = vpop.f32.mrf.mxu1 }
 0x1c2   : > { %v3015_v54 = vmax.f32 %v1766_v12, %v1666_v48 }
 0x1c3   : > { %v1427_v57 = vpop.f32.mrf.mxu0  ;;  %v1697_v44 = vpop.f32.mrf.mxu1 }
 0x1c4   : > { %v1669_v56 = vadd.f32 %v1668_v14, %v1427_v57 }
 0x1c5   : > { %v1429_v32 = vpop.f32.mrf.mxu0  ;;  %v1699_v12 = vpop.f32.mrf.mxu1 }
 0x1c6   : > { %v3020_v60 = vmax.f32 %v1769_v19, %v1669_v56 }
 0x1c7   : > { %v1432_v0 = vpop.f32.mrf.mxu0  ;;  %v1700_v50 = vpop.f32.mrf.mxu1 }
 0x1c8   : > { %v1674_v3 = vadd.f32 %v1673_v28, %v1432_v0 }
 0x1c9   : > { %v1434_v25 = vpop.f32.mrf.mxu0  ;;  %v1702_v19 = vpop.f32.mrf.mxu1 }
 0x1ca   : > { %v3025_v1 = vmax.f32 %v1772_v27, %v1674_v3 }
 0x1cb   : > { %v1435_v8 = vpop.f32.mrf.mxu0  ;;  %v1705_v59 = vpop.f32.mrf.mxu1 }
 0x1cc   : > { %v1677_v14 = vadd.f32 %v1676_v39, %v1435_v8 }
 0x1cd   : > { %v1437_v47 = vpop.f32.mrf.mxu0  ;;  %v1707_v27 = vpop.f32.mrf.mxu1 }
 0x1ce   : > { %v3030_v6 = vmax.f32 %v1775_v34, %v1677_v14 }
 0x1cf   : > { %v1440_v15 = vpop.f32.mrf.mxu0  ;;  %v1708_v2 = vpop.f32.mrf.mxu1 }
 0x1d0   : > { %v1682_v28 = vadd.f32 %v1681_v33, %v1440_v15 }
 0x1d1   : > { %v1442_v52 = vpop.f32.mrf.mxu0  ;;  %v1710_v34 = vpop.f32.mrf.mxu1 }
 0x1d2   : > { %v3035_v11 = vmax.f32 %v1778_v42, %v1682_v28 }
 0x1d3   : > { %v1443_v23 = vpop.f32.mrf.mxu0  ;;  %v1713_v10 = vpop.f32.mrf.mxu1 }
 0x1d4   : > { %v1685_v39 = vadd.f32 %v1684_v7, %v1443_v23 }
 0x1d5   : > { %v1445_v62 = vpop.f32.mrf.mxu0  ;;  %v1715_v42 = vpop.f32.mrf.mxu1 }
 0x1d6   : > { %v3040_v16 = vmax.f32 %v1781_v49, %v1685_v39 }
 0x1d7   : > { %v1448_v30 = vpop.f32.mrf.mxu0  ;;  %v1716_v48 = vpop.f32.mrf.mxu1 }
 0x1d8   : > { %v1690_v33 = vadd.f32 %v1689_v18, %v1448_v30 }
 0x1d9   : > { %v1450_v40 = vpop.f32.mrf.mxu0  ;;  %v1718_v49 = vpop.f32.mrf.mxu1 }
 0x1da   : > { %v3045_v21 = vmax.f32 %v1784_v58, %v1690_v33 }
 0x1db   : > { %v1451_v38 = vpop.f32.mrf.mxu0  ;;  %v1721_v57 = vpop.f32.mrf.mxu1 }
 0x1dc   : > { %v1693_v7 = vadd.f32 %v1692_v35, %v1451_v38 }
 0x1dd   : > { %v1453_v20 = vpop.f32.mrf.mxu0  ;;  %v1723_v58 = vpop.f32.mrf.mxu1 }
 0x1de   : > { %v3050_v26 = vmax.f32 %v1787_v5, %v1693_v7 }
 0x1df   : > { %v1456_v45 = vpop.f32.mrf.mxu0  ;;  %v1724_v32 = vpop.f32.mrf.mxu1 }
 0x1e0   : > { %v1698_v22 = vadd.f32 %v1697_v44, %v1456_v45 }
 0x1e1   : > { %v1458_v18 = vpop.f32.mrf.mxu0  ;;  %v1726_v5 = vpop.f32.mrf.mxu1 }
 0x1e2   : > { %v3055_v31 = vmax.f32 %v1790_v17, %v1698_v22 }
 0x1e3   : > { %v1459_v53 = vpop.f32.mrf.mxu0  ;;  %v1729_v4 = vpop.f32.mrf.mxu1 }
 0x1e4   : > { %v1701_v61 = vadd.f32 %v1700_v50, %v1459_v53 }
 0x1e5   : > { %v1461_v56 = vpop.f32.mrf.mxu0  ;;  %v1731_v17 = vpop.f32.mrf.mxu1 }
 0x1e6   : > { %v3060_v36 = vmax.f32 %v1793_v29, %v1701_v61  ;;  %v3073_v29 = vld [vmem:[%s3124_s2] ss:$0 sm:$0xff] }
 0x1e7   : > { %v1464_v63 = vpop.f32.mrf.mxu0  ;;  %v1732_v46 = vpop.f32.mrf.mxu1 }
 0x1e8   : > { %v1706_v35 = vadd.f32 %v1705_v59, %v1464_v63 }
 0x1e9   : > { %v1466_v0 = vpop.f32.mrf.mxu0  ;;  %v1734_v8 = vpop.f32.mrf.mxu1 }
 0x1ea   : > { %v3067_v41 = vmax.f32 %v1796_v43, %v1706_v35 }
 0x1eb   : > { %v1467_v13 = vpop.f32.mrf.mxu0  ;;  %v1737_v37 = vpop.f32.mrf.mxu1 }
 0x1ec   : > { %v1709_v3 = vadd.f32 %v1708_v2, %v1467_v13 }
 0x1ed   : > { %v1469_v25 = vpop.f32.mrf.mxu0  ;;  %v1739_v50 = vpop.f32.mrf.mxu1 }
 0x1ee   : > { %v1762_v24 = vmax.f32 %v3005_v55, %v1709_v3 }
 0x1ef   : > { %v1472_v44 = vpop.f32.mrf.mxu0  ;;  %v1740_v28 = vpop.f32.mrf.mxu1 }
 0x1f0   : > { %v1714_v12 = vadd.f32 %v1713_v10, %v1472_v44  ;;  %v1806_v43 = vadd.f32 %v3073_v29, %v1762_v24 }
 0x1f1   : > { %v1474_v51 = vpop.f32.mrf.mxu0 }
 0x1f2   : > { %v1765_v14 = vmax.f32 %v3010_v9, %v1714_v12  ;;  %v1819_v52 = vmax.f32 %v1806_v43, 0.0  ;;  %v1742_v9 = vpop.f32.mrf.mxu1 }
 0x1f3   : > { %v1475_v47 = vpop.f32.mrf.mxu0 }
 0x1f4   : > { %v1807_v55 = vadd.f32 %v3073_v29, %v1765_v14  ;;  %v1717_v15 = vadd.f32 %v1716_v48, %v1475_v47  ;;  %v1745_v30 = vpop.f32.mrf.mxu1 }
 0x1f5   : > { %v1477_v19 = vpop.f32.mrf.mxu0 }
 0x1f6   : > { %v1820_v59 = vmax.f32 %v1807_v55, 0.0  ;;  %v1768_v23 = vmax.f32 %v3015_v54, %v1717_v15  ;;  %v1747_v54 = vpop.f32.mrf.mxu1 }
 0x1f7   : > { %v1480_v27 = vpop.f32.mrf.mxu0 }
 0x1f8   : > { %v2157_v39 = vpack.c.bf16 %v1820_v59, %v1819_v52  ;;  %v1722_v62 = vadd.f32 %v1721_v57, %v1480_v27  ;;  %v1808_v34 = vadd.f32 %v3073_v29, %v1768_v23  ;;  %v1748_v7 = vpop.f32.mrf.mxu1 }
 0x1f9   : > { %v1482_v2 = vpop.f32.mrf.mxu0 }
 0x1fa   : > { %2158 = vst [vmem:[%s3082_s18] sm:$0xff] %v2157_v39   ;;  %v1771_v33 = vmax.f32 %v3020_v60, %v1722_v62  ;;  %v1821_v20 = vmax.f32 %v1808_v34, 0.0  ;;  %v1750_v22 = vpop.f32.mrf.mxu1 }
 0x1fb   : > { %v1483_v40 = vpop.f32.mrf.mxu0 }
 0x1fc   : > { %v1809_v10 = vadd.f32 %v3073_v29, %v1771_v33  ;;  %v1725_v38 = vadd.f32 %v1724_v32, %v1483_v40  ;;  %v1753_v58 = vpop.f32.mrf.mxu1 }
 0x1fd   : > { %v1485_v42 = vpop.f32.mrf.mxu0 }
 0x1fe   : > { %v1822_v48 = vmax.f32 %v1809_v10, 0.0  ;;  %v1774_v45 = vmax.f32 %v3025_v1, %v1725_v38  ;;  %v1755_v32 = vpop.f32.mrf.mxu1 }
 0x1ff   : > { %v1488_v49 = vpop.f32.mrf.mxu0 }
 0x200   : > { %v2162_v18 = vpack.c.bf16 %v1822_v48, %v1821_v20  ;;  %v1730_v57 = vadd.f32 %v1729_v4, %v1488_v49  ;;  %v1810_v60 = vadd.f32 %v3073_v29, %v1774_v45  ;;  %v1756_v0 = vpop.f32.mrf.mxu1 }
 0x201   : > { %v1490_v53 = vpop.f32.mrf.mxu0 }
 0x202   : > { %2185 = vst [vmem:[%s3082_s18 + $0x8] sm:$0xff] %v2162_v18   ;;  %v1777_v61 = vmax.f32 %v3030_v6, %v1730_v57  ;;  %v1823_v1 = vmax.f32 %v1810_v60, 0.0  ;;  %v1758_v3 = vpop.f32.mrf.mxu1 }
 0x203   : > { %v1491_v56 = vpop.f32.mrf.mxu0 }
 0x204   : > { %v1811_v63 = vadd.f32 %v3073_v29, %v1777_v61  ;;  %v1733_v5 = vadd.f32 %v1732_v46, %v1491_v56 }
 0x205   : > { %v1493_v35 = vpop.f32.mrf.mxu0 }
 0x206   : > { %v1824_v13 = vmax.f32 %v1811_v63, 0.0  ;;  %v1780_v17 = vmax.f32 %v3035_v11, %v1733_v5 }
 0x207   : > { %v1496_v4 = vpop.f32.mrf.mxu0 }
 0x208   : > { %v2167_v25 = vpack.c.bf16 %v1824_v13, %v1823_v1  ;;  %v1738_v24 = vadd.f32 %v1737_v37, %v1496_v4  ;;  %v1812_v6 = vadd.f32 %v3073_v29, %v1780_v17 }
 0x209   : > { %v1498_v44 = vpop.f32.mrf.mxu0 }
 0x20a   : > { %2186 = vst [vmem:[%s3082_s18 + $0x10] sm:$0xff] %v2167_v25   ;;  %v1783_v8 = vmax.f32 %v3040_v16, %v1738_v24  ;;  %v1825_v14 = vmax.f32 %v1812_v6, 0.0 }
 0x20b   : > { %v1499_v12 = vpop.f32.mrf.mxu0 }
 0x20c   : > { %v1813_v46 = vadd.f32 %v3073_v29, %v1783_v8  ;;  %v1741_v51 = vadd.f32 %v1740_v28, %v1499_v12 }
 0x20d   : > { %v1501_v43 = vpop.f32.mrf.mxu0 }
 0x20e   : > { %v1826_v47 = vmax.f32 %v1813_v46, 0.0  ;;  %v1786_v11 = vmax.f32 %v3045_v21, %v1741_v51 }
 0x20f   : > { %v1504_v50 = vpop.f32.mrf.mxu0 }
 0x210   : > { %v2172_v55 = vpack.c.bf16 %v1826_v47, %v1825_v14  ;;  %v1746_v15 = vadd.f32 %v1745_v30, %v1504_v50  ;;  %v1814_v19 = vadd.f32 %v3073_v29, %v1786_v11 }
 0x211   : > { %v1506_v37 = vpop.f32.mrf.mxu0 }
 0x212   : > { %2187 = vst [vmem:[%s3082_s18 + $0x18] sm:$0xff] %v2172_v55   ;;  %v1789_v52 = vmax.f32 %v3050_v26, %v1746_v15  ;;  %v1827_v27 = vmax.f32 %v1814_v19, 0.0 }
 0x213   : > { %v1507_v16 = vpop.f32.mrf.mxu0 }
 0x214   : > { %v1815_v59 = vadd.f32 %v3073_v29, %v1789_v52  ;;  %v1749_v23 = vadd.f32 %v1748_v7, %v1507_v16 }
 0x215   : > { %v1509_v28 = vpop.f32.mrf.mxu0 }
 0x216   : > { %v1828_v9 = vmax.f32 %v1815_v59, 0.0  ;;  %v1792_v39 = vmax.f32 %v3055_v31, %v1749_v23 }
 0x217   : > { %v1512_v21 = vpop.f32.mrf.mxu0 }
 0x218   : > { %v2177_v62 = vpack.c.bf16 %v1828_v9, %v1827_v27  ;;  %v1754_v2 = vadd.f32 %v1753_v58, %v1512_v21  ;;  %v1816_v34 = vadd.f32 %v3073_v29, %v1792_v39 }
 0x219   : > { %v1514_v30 = vpop.f32.mrf.mxu0 }
 0x21a   : > { %2188 = vst [vmem:[%s3082_s18 + $0x20] sm:$0xff] %v2177_v62   ;;  %v1795_v26 = vmax.f32 %v3060_v36, %v1754_v2  ;;  %v1829_v38 = vmax.f32 %v1816_v34, 0.0 }
 0x21b   : > { %v1515_v33 = vpop.f32.mrf.mxu0 }
 0x21c   : > { %v1817_v40 = vadd.f32 %v3073_v29, %v1795_v26  ;;  %v1757_v54 = vadd.f32 %v1756_v0, %v1515_v33 }
 0x21d   : > { %v1517_v10 = vpop.f32.mrf.mxu0 }
 0x21e   : > { %v1830_v42 = vmax.f32 %v1817_v40, 0.0  ;;  %v1798_v31 = vmax.f32 %v3067_v41, %v1757_v54 }
 0x220   : > { %v2182_v7 = vpack.c.bf16 %v1830_v42, %v1829_v38  ;;  %v1818_v20 = vadd.f32 %v3073_v29, %v1798_v31 }
 0x222   : > { %2189 = vst [vmem:[%s3082_s18 + $0x28] sm:$0xff] %v2182_v7   ;;  %v1831_v48 = vmax.f32 %v1818_v20, 0.0 }
 0x224   : > { %v2153_v45 = vpack.c.bf16 %v1831_v48, %v1831_v48 }
 0x226   : > { %1897 = vst [vmem:[%s3082_s18 + $0x30] sm:$0xf] %v2153_v45 }
 0x227 PF: > { %p10_p9 = scmp.ge.s32.totalorder %s2460_s16, 4   ;;  %s3126_s12 = smov %s2416_s13 }
 0x228   : > { %s3127_s13 = smov %s2469_s19  ;;  %s3128_s14 = smov %s2460_s16 }
 0x229   :  { %12 = sbr.rel (!%p10_p9) target bundleno = 2 (0x2), region = 90 }

// kernel: simple_cnn_forward.5
= control target key start
LH: loop header
LB: loop body
LE: loop exit
PB: predicated region body
PF: predicated region fallthrough
CT: control target
= control target key end

     0   :  { %s1032_s12 = smov 0   ;;  %s1034_s13 = smov 0   ;;  %s1125_s0 = inlined_call_operand.vmem [shape: bf16[8,3200], index: 0, kind: input, shape index: {}]   ;;  %s1126_s1 = inlined_call_operand.vmem [shape: bf16[3200,128], index: 1, kind: input, shape index: {}]   ;;  %s1127_s2 = inlined_call_operand.vmem [shape: f32[1,128], index: 2, kind: input, shape index: {}]   ;;  %s1128_s3 = inlined_call_operand.vmem [shape: f32[8,128], index: 3, kind: output, shape index: {}]  }
   0x1   :  { %s1036_s14 = smov 0  }
   0x2 LB: > { %s22_s15 = sadd.s32 1, %s1004_s13  ;;  %p787_p0 = scmp.ge.s32.totalorder %s1008_s14, 1  ;;  %s1008_s14 = sphi %s1036_s14, %s13_s14   ;;  %s1004_s13 = sphi %s1034_s13, %s1130_s13   ;;  %s1000_s12 = sphi %s1032_s12, %s1129_s12  }
   0x3   : > { %p23_p1 = scmp.ge.s32.totalorder %s22_s15, 5  ;;  %p167_p2 = scmp.lt.s32.totalorder %s1008_s14, 6 }
   0x5   : > { %s1132_s15 = smov (%p23_p1, %s22_s15), 0  ;;  %p168_p3 = pnand %p787_p0, %p167_p2 }
   0x6   : > { %s209_s16 = smul.u32 (!%p168_p3), 80, %s1000_s12  ;;  %p835_p6 = scmp.ne.s32.totalorder (!%p168_p3), %s1000_s12, 0 }
   0x7   : > { %171 = sbr.rel (%p168_p3) target bundleno = 304 (0x130), region = 32 }
   0x8   : > { %p210_p4 = scmp.lt.s32.totalorder (!%p168_p3), %s209_s16, 399  ;;  %s199_s21 = smul.u32 (!%p168_p3), 5, %s1000_s12 }
   0xa   : > { %p202_p5 = scmp.lt.s32.totalorder (!%p168_p3), %s199_s21, 24 }
   0xc   : > { %s1134_s16 = smov (!%p210_p4, %s209_s16), 399  ;;  %s1136_s21 = smov (!%p202_p5, %s199_s21), 24  ;;  %v1010_v36 = vmov 0.0   ;;  %vm1011_vm0 = vmmov 0  }
   0xd   : > { %s789_s17 = sshll.u32 %s1134_s16, 2  ;;  %s788_s22 = sshll.u32 %s1136_s21, 2 }
   0xe   : > { %s1056_s20 = scalar_lea.vmem %s1126_s1, %s789_s17  ;;  %s1092_s25 = scalar_lea.vmem %s1125_s0, %s788_s22 }
   0xf   : > { %v941_v0 = vld [vmem:[%s1056_s20 + $0x78] sm:$0xff]   ;;  %v945_v4 = vld [vmem:[%s1056_s20 + $0x70] sm:$0xff]   ;;  %v949_v8 = vld [vmem:[%s1056_s20 + $0x68] sm:$0xff]  }
  0x10   : > { %v942_v1 = vld [vmem:[%s1056_s20 + $0xf8] sm:$0xff]   ;;  %842 = vmatprep.subr.bf16.mxu0 %v941_v0  ;;  %v946_v5 = vld [vmem:[%s1056_s20 + $0xf0] sm:$0xff]   ;;  %v950_v9 = vld [vmem:[%s1056_s20 + $0xe8] sm:$0xff]  }
  0x11   : > { %v943_v2 = vld [vmem:[%s1056_s20 + $0x38] sm:$0xff]   ;;  %864 = vmatprep.subr.bf16.mxu1 %v942_v1  ;;  %v947_v6 = vld [vmem:[%s1056_s20 + $0x30] sm:$0xff]   ;;  %v951_v10 = vld [vmem:[%s1056_s20 + $0x28] sm:$0xff]  }
  0x12   : > { %v944_v3 = vld [vmem:[%s1056_s20 + $0xb8] sm:$0xff]   ;;  %843 = vmatpush3.bf16.msra.mxu0 %v943_v2  ;;  %v948_v7 = vld [vmem:[%s1056_s20 + $0xb0] sm:$0xff]   ;;  %v952_v11 = vld [vmem:[%s1056_s20 + $0xa8] sm:$0xff]  }
  0x13   : > { %865 = vmatpush3.bf16.msra.mxu1 %v944_v3  ;;  %844 = vmatprep.subr.bf16.mxu0 %v945_v4  ;;  %v953_v12 = vld [vmem:[%s1056_s20 + $0x60] sm:$0xff]   ;;  %v957_v16 = vld [vmem:[%s1056_s20 + $0x58] sm:$0xff]   ;;  %v961_v20 = vld [vmem:[%s1056_s20 + $0x50] sm:$0xff]  }
  0x14   : > { %866 = vmatprep.subr.bf16.mxu1 %v946_v5  ;;  %v954_v13 = vld [vmem:[%s1056_s20 + $0xe0] sm:$0xff]   ;;  %v958_v17 = vld [vmem:[%s1056_s20 + $0xd8] sm:$0xff]   ;;  %v962_v21 = vld [vmem:[%s1056_s20 + $0xd0] sm:$0xff]  }
  0x15   : > { %v955_v14 = vld [vmem:[%s1056_s20 + $0x20] sm:$0xff]   ;;  %v959_v18 = vld [vmem:[%s1056_s20 + $0x18] sm:$0xff]   ;;  %v963_v22 = vld [vmem:[%s1056_s20 + $0x10] sm:$0xff]  }
  0x16   : > { %845 = vmatpush3.bf16.msra.mxu0 %v947_v6  ;;  %v956_v15 = vld [vmem:[%s1056_s20 + $0xa0] sm:$0xff]   ;;  %v960_v19 = vld [vmem:[%s1056_s20 + $0x98] sm:$0xff]   ;;  %v964_v23 = vld [vmem:[%s1056_s20 + $0x90] sm:$0xff]  }
  0x17   : > { %867 = vmatpush3.bf16.msra.mxu1 %v948_v7  ;;  %846 = vmatprep.subr.bf16.mxu0 %v949_v8  ;;  %v965_v24 = vld [vmem:[%s1056_s20 + $0x48] sm:$0xff]   ;;  %v969_v28 = vld [vmem:[%s1056_s20 + $0x40] sm:$0xff]   ;;  %v978_v39 = vld [vmem:[%s1056_s20 + $0x138] sm:$0xff]  }
  0x18   : > { %868 = vmatprep.subr.bf16.mxu1 %v950_v9  ;;  %v966_v25 = vld [vmem:[%s1056_s20 + $0xc8] sm:$0xff]   ;;  %v970_v29 = vld [vmem:[%s1056_s20 + $0xc0] sm:$0xff]   ;;  %v979_v40 = vld [vmem:[%s1056_s20 + $0x130] sm:$0xff]  }
  0x19   : > { %v967_v26 = vld [vmem:[%s1056_s20 + $0x8] sm:$0xff]   ;;  %v971_v30 = vld [vmem:[%s1056_s20] sm:$0xff]   ;;  %v982_v43 = vld [vmem:[%s1056_s20 + $0x118] sm:$0xff]  }
  0x1a   : > { %847 = vmatpush3.bf16.msra.mxu0 %v951_v10  ;;  %v968_v27 = vld [vmem:[%s1056_s20 + $0x88] sm:$0xff]   ;;  %v972_v31 = vld [vmem:[%s1056_s20 + $0x80] sm:$0xff]   ;;  %v983_v44 = vld [vmem:[%s1056_s20 + $0x110] sm:$0xff]  }
  0x1b   : > { %869 = vmatpush3.bf16.msra.mxu1 %v952_v11  ;;  %848 = vmatprep.subr.bf16.mxu0 %v953_v12  ;;  %v220_v32 = vld [vmem:[%s1092_s25] sm:$0xff]  ;;  %v221_v35 = vld [vmem:[%s1092_s25 + $0x8] sm:$0xff]  ;;  %v975_v47 = vld [vmem:[%s1092_s25 + $0x10] ss:$0 sps:$4 sm:$0xff]  }
  0x1c   : > { %870 = vmatprep.subr.bf16.mxu1 %v954_v13  ;;  %v790_v33 = vcombine.low %v220_v32, %v220_v32  ;;  %v791_v34 = vcombine.high %v220_v32, %v220_v32  ;;  %v792_v37 = vcombine.low %v221_v35, %v221_v35  ;;  %v793_v38 = vcombine.high %v221_v35, %v221_v35  ;;  %v980_v41 = vld [vmem:[%s1056_s20 + $0x128] sm:$0xff]   ;;  %v981_v42 = vld [vmem:[%s1056_s20 + $0x120] sm:$0xff]  }
  0x1d   : > { %v984_v45 = vld [vmem:[%s1056_s20 + $0x108] sm:$0xff]   ;;  %v985_v46 = vld [vmem:[%s1056_s20 + $0x100] sm:$0xff]  }
  0x1e   : > { %849 = vmatpush3.bf16.msra.mxu0 %v955_v14  ;;  %593 = vmatprep.mubr.bf16.mxu0 %v791_v34 }
  0x1f   : > { %871 = vmatpush3.bf16.msra.mxu1 %v956_v15  ;;  %850 = vmatprep.subr.bf16.mxu0 %v957_v16 }
  0x20   : > { %872 = vmatprep.subr.bf16.mxu1 %v958_v17  ;;  %633 = vmatprep.mubr.bf16.mxu1 %v793_v38 }
  0x22   : > { %851 = vmatpush3.bf16.msra.mxu0 %v959_v18 }
  0x23   : > { %873 = vmatpush3.bf16.msra.mxu1 %v960_v19  ;;  %852 = vmatprep.subr.bf16.mxu0 %v961_v20 }
  0x24   : > { %874 = vmatprep.subr.bf16.mxu1 %v962_v21 }
  0x26   : > { %853 = vmatpush3.bf16.msra.mxu0 %v963_v22 }
  0x27   : > { %875 = vmatpush3.bf16.msra.mxu1 %v964_v23  ;;  %854 = vmatprep.subr.bf16.mxu0 %v965_v24 }
  0x28   : > { %876 = vmatprep.subr.bf16.mxu1 %v966_v25 }
  0x2a   : > { %855 = vmatpush3.bf16.msra.mxu0 %v967_v26 }
  0x2b   : > { %877 = vmatpush3.bf16.msra.mxu1 %v968_v27  ;;  %856 = vmatprep.subr.bf16.mxu0 %v969_v28 }
  0x2c   : > { %878 = vmatprep.subr.bf16.mxu1 %v970_v29 }
  0x2e   : > { %857 = vmatpush3.bf16.msra.mxu0 %v971_v30 }
  0x2f   : > { %879 = vmatpush3.bf16.msra.mxu1 %v972_v31  ;;  %895 = vmatprep.subr.bf16.mxu0 %v1010_v36 }
  0x31   : > { %594 = vmatmul.mubr.bf16.vlgmr.msra.gmra.mxu0 %v790_v33 }
  0x32   : > { %634 = vmatmul.mubr.bf16.vlgmr.msra.gmra.mxu1 %v792_v37  ;;  %896 = vmatpush3.bf16.msra.mxu0 %v978_v39 }
  0x33   : > { %897 = vmatprep.subr.bf16.mxu0 %v1010_v36  ;;  %911 = vmatprep.mubr.msk.bf16.mxu0 %vm1011_vm0, %v1010_v36 }
  0x36   : > { %898 = vmatpush3.bf16.msra.mxu0 %v979_v40 }
  0x37   : > { %899 = vmatprep.subr.bf16.mxu0 %v1010_v36 }
  0x3a   : > { %900 = vmatpush3.bf16.msra.mxu0 %v980_v41 }
  0x3b   : > { %901 = vmatprep.subr.bf16.mxu0 %v1010_v36 }
  0x3e   : > { %902 = vmatpush3.bf16.msra.mxu0 %v981_v42 }
  0x3f   : > { %903 = vmatprep.subr.bf16.mxu0 %v1010_v36 }
  0x42   : > { %904 = vmatpush3.bf16.msra.mxu0 %v982_v43 }
  0x43   : > { %905 = vmatprep.subr.bf16.mxu0 %v1010_v36 }
  0x46   : > { %906 = vmatpush3.bf16.msra.mxu0 %v983_v44 }
  0x47   : > { %907 = vmatprep.subr.bf16.mxu0 %v1010_v36 }
  0x4a   : > { %908 = vmatpush3.bf16.msra.mxu0 %v984_v45 }
  0x4b   : > { %909 = vmatprep.subr.bf16.mxu0 %v1010_v36 }
  0x4e   : > { %910 = vmatpush3.bf16.msra.mxu0 %v985_v46 }
  0x51   : > { %912 = vmatmul.mubr.bf16.vlgmr.msra.gmra.mxu0 %v975_v47 }
  0xf1   : > { %v858_v48 = vpop.f32.mrf.mxu0 }
  0xf2   : > { %v880_v49 = vpop.f32.mrf.mxu1 }
  0xf3   : > { %v859_v50 = vpop.f32.mrf.mxu0 }
  0xf4   : > { %v881_v51 = vpop.f32.mrf.mxu1  ;;  %v860_v56 = vadd.f32 %v859_v50, %v858_v48 }
  0xf5   : > { %v861_v52 = vpop.f32.mrf.mxu0  ;;  %v882_v57 = vadd.f32 %v881_v51, %v880_v49 }
  0xf6   : > { %v883_v53 = vpop.f32.mrf.mxu1 }
  0xf7   : > { %v862_v54 = vpop.f32.mrf.mxu0  ;;  %v636_v58 = vadd.f32 %v882_v57, %v860_v56 }
  0xf8   : > { %v884_v55 = vpop.f32.mrf.mxu1 }
 0x111   : > { %v675_v59 = vpop.f32.mrf.mxu0 }
 0x112   : > { %v676_v60 = vadd.f32 %v675_v59, %v636_v58 }
 0x113   : > { %v913_v61 = vpop.f32.mrf.mxu0  ;;  %684 = sbr.rel (%p835_p6) target bundleno = 281 (0x119), region = 36 }
 0x115   : > { %v678_v62 = vpop.f32.mrf.mxu0 }
 0x117   : > { %v914_v63 = vpop.f32.mrf.mxu0 }
 0x118   : > { %685 = vst [vmem:[#allocation2] sm:$0xff] %v676_v60 }
 0x119 PF: > { %p836_p7 = scmp.eq.s32.totalorder %s1000_s12, 0 }
 0x11b   : > { %689 = sbr.rel (%p836_p7) target bundleno = 292 (0x124), region = 40 }
 0x120   : > { %v690_v0 = vld [vmem:[#allocation2] sm:$0xff] }
 0x121   : > { %v691_v1 = vadd.f32 %v690_v0, %v676_v60 }
 0x123   : > { %692 = vst [vmem:[#allocation2] sm:$0xff] %v691_v1 }
 0x124 PF: > { %p837_p8 = scmp.ne.s32.totalorder %s1000_s12, 4 }
 0x126   : > { %696 = sbr.rel (%p837_p8) target bundleno = 304 (0x130), region = 44 }
 0x12b   : > { %v697_v2 = vld [vmem:[#allocation2] sm:$0xff] }
 0x12c   : > { %v838_v3 = vld [vmem:[%s1127_s2] ss:$0 sm:$0xff] }
 0x12d   : > { %v705_v4 = vadd.f32 %v838_v3, %v697_v2 }
 0x12f   : > { %706 = vst [vmem:[%s1128_s3] sm:$0xff] %v705_v4 }
 0x130 PF: > { %s13_s14 = sadd.s32 1, %s1008_s14   ;;  %s1129_s12 = smov %s1004_s13 }
 0x131   : > { %p10_p9 = scmp.ge.s32.totalorder %s13_s14, 7   ;;  %s1130_s13 = smov %s1132_s15 }
 0x133   :  { %12 = sbr.rel (!%p10_p9) target bundleno = 2 (0x2), region = 77 }

</bundles_post_ra>
